<compile_context>
chip_gen: v7x
topology: tpu7x:2x2x1
jax: 0.10.0
libtpu: 0.0.40
codegen_flags: <defaults>
</compile_context>

<pallas_src>
import jax
import jax.numpy as jnp
from jax import lax
from jax.experimental import pallas as pl
from jax.experimental.pallas import tpu as pltpu


def _make_ubneck_kernel(R, Cr, Cout):
    EPS = 1e-5
    inv_cnt = 1.0 / (4.0 * R)   # BN2/BN3 count = N*2H*2W = 4R; BN1 uses 4 identical copies

    def kernel(x4_ref, mask_ref, w1_ref, g1_ref, b1_ref, w2_ref, g2_ref, b2_ref,
               w3_ref, g3_ref, b3_ref, wm_ref, bm_ref, alpha_ref, out_ref):
        alpha = alpha_ref[0]                       # scalar PReLU weight from SMEM

        def prelu(v):
            return jnp.where(v >= 0, v, alpha * v)

        def mm(a, b):
            return jnp.dot(a, b, preferred_element_type=jnp.float32,
                           precision=lax.Precision.HIGHEST)

        def bn(y, g_t, b_t, c):
            # one traversal for sum and sum-of-squares (per lane = per parity*channel)
            s1 = jnp.sum(y, axis=0, keepdims=True)          # (1, 4c)
            s2 = jnp.sum(y * y, axis=0, keepdims=True)      # (1, 4c)
            # fold the 4 parity lane-groups down to per-channel statistics
            s1c = s1[:, 0:c]
            s2c = s2[:, 0:c]
            for g in range(1, 4):
                s1c = s1c + s1[:, g * c:(g + 1) * c]
                s2c = s2c + s2[:, g * c:(g + 1) * c]
            m = s1c * inv_cnt
            v = jnp.maximum(s2c * inv_cnt - m * m, 0.0)
            inv = lax.rsqrt(v + EPS)
            # tile back to the lane-packed layout; fuse into one scale*x + shift
            m4 = jnp.concatenate([m] * 4, axis=1)           # (1, 4c)
            inv4 = jnp.concatenate([inv] * 4, axis=1)
            scale = g_t * inv4
            shift = b_t - m4 * scale
            return y * scale + shift

        x4 = x4_ref[...]                                    # (R, 4*Cin)

        # ---- convt1 (1x1) on [x, x>>1, x>>W, x>>(W+1)] at once, BN1, PReLU ----
        # (rolled copies are row permutations, so the folded stats equal BN1's)
        t = prelu(bn(mm(x4, w1_ref[...]), g1_ref[...], b1_ref[...], Cr))
        # zero the rows whose spatial shift crossed an image / batch boundary
        t = t * mask_ref[...]                               # (R, 4*Cr)

        # ---- convt2 (3x3, stride 2, pad 1, out_pad 1): all 9 taps and all
        #      4 output parities in a single lane-dense matmul ----
        bmid = prelu(bn(mm(t, w2_ref[...]), g2_ref[...], b2_ref[...], Cr))

        # ---- convt3 (1x1) per parity (block-diagonal weight) + BN3 ----
        y = bn(mm(bmid, w3_ref[...]), g3_ref[...], b3_ref[...], Cout)
        # TODO(synk): Dropout2d(p=0.1) treated as identity (eval mode); training RNG not reproduced.

        # ---- main branch: 1x1 conv + bias; nearest 2x upsample == same value
        #      replicated into every parity lane-block ----
        xm = mm(x4, wm_ref[...]) + bm_ref[...]              # (R, 4*Cout)

        out_ref[...] = prelu(y + xm)                        # lane-dense store

    return kernel


def ubneck_forward(x_nchw, indices, params):
    del indices  # the module's skip path uses nn.Upsample, not MaxUnpool2d
    N, Cin, H, W = x_nchw.shape
    Cr = params["w1"].shape[1]
    Cout = params["w3"].shape[1]
    R = N * H * W
    f32 = jnp.float32

    # glue: NCHW -> flattened channels-last rows, plus rolled (shifted) views.
    x2d = jnp.transpose(x_nchw, (0, 2, 3, 1)).reshape(R, Cin).astype(f32)
    x4 = jnp.concatenate(
        [x2d,
         jnp.roll(x2d, -1, axis=0),          # pixel (h, w+1)
         jnp.roll(x2d, -W, axis=0),          # pixel (h+1, w)
         jnp.roll(x2d, -(W + 1), axis=0)],   # pixel (h+1, w+1)
        axis=1)                                             # (R, 4*Cin)

    # boundary mask: zero shifted rows that crossed the right/bottom image edge
    r = jnp.arange(R)
    col_ok = ((r % W) != (W - 1)).astype(f32)
    row_ok = (((r // W) % H) != (H - 1)).astype(f32)
    mask = jnp.stack([jnp.ones((R,), f32), col_ok, row_ok, col_ok * row_ok], axis=1)
    mask = jnp.repeat(mask, Cr, axis=1)                     # (R, 4*Cr)

    eye4 = jnp.eye(4, dtype=f32)
    w1big = jnp.kron(eye4, params["w1"].astype(f32))        # (4*Cin, 4*Cr) block-diag
    w3big = jnp.kron(eye4, params["w3"].astype(f32))        # (4*Cr, 4*Cout) block-diag

    # convt2 weight (Cin=Cr, Cout=Cr, kh, kw) -> fused tap/parity block matrix
    w2 = params["w2"].astype(f32)
    Wt = lambda ky, kx: w2[:, :, ky, kx]                    # (Cr_in, Cr_out)
    Z = jnp.zeros((Cr, Cr), f32)
    # rows: [A, A>>1, A>>W, A>>(W+1)]   cols: parities [ee, eo, oe, oo]
    w2big = jnp.block([
        [Wt(1, 1), Wt(1, 2), Wt(2, 1), Wt(2, 2)],
        [Z,        Wt(1, 0), Z,        Wt(2, 0)],
        [Z,        Z,        Wt(0, 1), Wt(0, 2)],
        [Z,        Z,        Z,        Wt(0, 0)],
    ])                                                      # (4*Cr, 4*Cr)

    # main 1x1 conv replicated into all 4 parity blocks (nearest 2x upsample)
    wmbig = jnp.concatenate(
        [jnp.tile(params["wm"].astype(f32), (1, 4)),
         jnp.zeros((3 * Cin, 4 * Cout), f32)], axis=0)      # (4*Cin, 4*Cout)
    bm4 = jnp.tile(params["bm"].reshape(1, Cout).astype(f32), (1, 4))

    tile4 = lambda v: jnp.tile(v.reshape(1, -1).astype(f32), (1, 4))
    args = (
        x4, mask,
        w1big, tile4(params["g1"]), tile4(params["b1"]),
        w2big, tile4(params["g2"]), tile4(params["b2"]),
        w3big, tile4(params["g3"]), tile4(params["b3"]),
        wmbig, bm4,
        jnp.full((1,), params["alpha"], f32),               # PReLU alpha -> SMEM
    )

    out2d = pl.pallas_call(
        _make_ubneck_kernel(R, Cr, Cout),
        out_shape=jax.ShapeDtypeStruct((R, 4 * Cout), jnp.float32),
        in_specs=[pl.BlockSpec(memory_space=pltpu.MemorySpace.VMEM)] * 13
                 + [pl.BlockSpec(memory_space=pltpu.MemorySpace.SMEM)],
        out_specs=pl.BlockSpec(memory_space=pltpu.MemorySpace.VMEM),
    )(*args)

    # glue: de-interleave parities -> (N, 2H, 2W, C) -> NCHW
    y = out2d.reshape(N, H, W, 2, 2, Cout)                  # (n, h, w, dy, dx, c)
    y = jnp.transpose(y, (0, 1, 3, 2, 4, 5)).reshape(N, 2 * H, 2 * W, Cout)
    return jnp.transpose(y, (0, 3, 1, 2))


def ubneck_reference(x, params):
    """Pure-JAX (XLA) reference with identical semantics, NCHW."""
    eps = 1e-5
    a = params["alpha"]
    hi = lax.Precision.HIGHEST

    def prelu(v):
        return jnp.where(v >= 0, v, a * v)

    def bn(v, g, b):
        m = jnp.mean(v, axis=(0, 2, 3), keepdims=True)
        var = jnp.mean((v - m) ** 2, axis=(0, 2, 3), keepdims=True)
        return (v - m) * lax.rsqrt(var + eps) * g.reshape(1, -1, 1, 1) + b.reshape(1, -1, 1, 1)

    t = jnp.einsum("nchw,cd->ndhw", x, params["w1"], precision=hi)
    t = prelu(bn(t, params["g1"], params["b1"]))
    # ConvTranspose2d(k=3, s=2, p=1, op=1) == lhs-dilated conv with flipped, swapped kernel
    w2c = jnp.transpose(params["w2"], (1, 0, 2, 3))[:, :, ::-1, ::-1]
    t = lax.conv_general_dilated(t, w2c, window_strides=(1, 1),
                                 padding=((1, 2), (1, 2)), lhs_dilation=(2, 2),
                                 dimension_numbers=("NCHW", "OIHW", "NCHW"),
                                 precision=hi)
    t = prelu(bn(t, params["g2"], params["b2"]))
    t = jnp.einsum("nchw,cd->ndhw", t, params["w3"], precision=hi)
    t = bn(t, params["g3"], params["b3"])
    xm = jnp.einsum("nchw,cd->ndhw", x, params["wm"], precision=hi) + params["bm"].reshape(1, -1, 1, 1)
    xm = jnp.repeat(jnp.repeat(xm, 2, axis=2), 2, axis=3)   # nearest 2x upsample
    return prelu(t + xm)


if __name__ == "__main__":
    N, Cin, Cout, H, W = 2, 16, 8, 8, 8
    Cr = Cin // 4                                   # projection_ratio = 4

    key = jax.random.PRNGKey(0)
    ks = jax.random.split(key, 12)
    x = jax.random.normal(ks[0], (N, Cin, H, W), jnp.float32)
    indices = jnp.zeros((N, Cin, H, W), jnp.int32)  # accepted but unused by UBNeck.forward

    params = dict(
        w1=0.3 * jax.random.normal(ks[1], (Cin, Cr), jnp.float32),      # convt1 weight (in, out)
        w2=0.3 * jax.random.normal(ks[2], (Cr, Cr, 3, 3), jnp.float32), # convt2 weight (in, out, kh, kw)
        w3=0.3 * jax.random.normal(ks[3], (Cr, Cout), jnp.float32),     # convt3 weight (in, out)
        wm=0.3 * jax.random.normal(ks[4], (Cin, Cout), jnp.float32),    # main_conv 1x1 weight (in, out)
        bm=0.1 * jax.random.normal(ks[5], (Cout,), jnp.float32),        # main_conv bias
        g1=1.0 + 0.1 * jax.random.normal(ks[6], (Cr,), jnp.float32),
        b1=0.1 * jax.random.normal(ks[7], (Cr,), jnp.float32),
        g2=1.0 + 0.1 * jax.random.normal(ks[8], (Cr,), jnp.float32),
        b2=0.1 * jax.random.normal(ks[9], (Cr,), jnp.float32),
        g3=1.0 + 0.1 * jax.random.normal(ks[10], (Cout,), jnp.float32),
        b3=0.1 * jax.random.normal(ks[11], (Cout,), jnp.float32),
        alpha=jnp.float32(0.25),    # nn.PReLU() default, shared by prelu1/2/3
    )

    y = jax.block_until_ready(ubneck_forward(x, indices, params))
    assert y.shape == (N, Cout, 2 * H, 2 * W), y.shape

    y_ref = ubneck_reference(x, params)
    err = float(jnp.max(jnp.abs(y - y_ref)))
    if err > 1e-2:
        raise AssertionError(f"kernel/reference mismatch, max abs err = {err}")
    print("KERNEL_OK")
</pallas_src>

<mosaic_0001>
module attributes {stable_mosaic.version = 11 : i64} {
  func.func @kernel(%arg0: memref<128x64xf32, #tpu.memory_space<vmem>>, %arg1: memref<128x16xf32, #tpu.memory_space<vmem>>, %arg2: memref<64x16xf32, #tpu.memory_space<vmem>>, %arg3: memref<1x16xf32, #tpu.memory_space<vmem>>, %arg4: memref<1x16xf32, #tpu.memory_space<vmem>>, %arg5: memref<16x16xf32, #tpu.memory_space<vmem>>, %arg6: memref<1x16xf32, #tpu.memory_space<vmem>>, %arg7: memref<1x16xf32, #tpu.memory_space<vmem>>, %arg8: memref<16x32xf32, #tpu.memory_space<vmem>>, %arg9: memref<1x32xf32, #tpu.memory_space<vmem>>, %arg10: memref<1x32xf32, #tpu.memory_space<vmem>>, %arg11: memref<64x32xf32, #tpu.memory_space<vmem>>, %arg12: memref<1x32xf32, #tpu.memory_space<vmem>>, %arg13: memref<1xf32, #tpu.memory_space<smem>>, %arg14: memref<128x32xf32, #tpu.memory_space<vmem>>) attributes {dimension_semantics = [], scalar_prefetch = 0 : i64, scratch_operands = 0 : i64, tpu.core_type = #tpu.core_type<tc>} {
    %c0 = arith.constant 0 : index
    %0 = memref.load %arg13[%c0] : memref<1xf32, #tpu.memory_space<smem>>
    %c0_0 = arith.constant 0 : index
    %c0_1 = arith.constant 0 : index
    %1 = vector.load %arg0[%c0_0, %c0_1] : memref<128x64xf32, #tpu.memory_space<vmem>>, vector<128x64xf32>
    %c0_2 = arith.constant 0 : index
    %c0_3 = arith.constant 0 : index
    %2 = vector.load %arg2[%c0_2, %c0_3] : memref<64x16xf32, #tpu.memory_space<vmem>>, vector<64x16xf32>
    %cst = arith.constant dense<0.000000e+00> : vector<128x16xf32>
    %3 = tpu.matmul %1, %2, %cst {dimension_numbers = #tpu.dot_dimension_numbers<[1], [0], [0], [1], [0, 0, 1, 1], [], []>, precision = #tpu.contract_precision<fp32>} : vector<128x64xf32>, vector<64x16xf32>, vector<128x16xf32> -> vector<128x16xf32>
    %c0_4 = arith.constant 0 : index
    %c0_5 = arith.constant 0 : index
    %4 = vector.load %arg3[%c0_4, %c0_5] : memref<1x16xf32, #tpu.memory_space<vmem>>, vector<1x16xf32>
    %c0_6 = arith.constant 0 : index
    %c0_7 = arith.constant 0 : index
    %5 = vector.load %arg4[%c0_6, %c0_7] : memref<1x16xf32, #tpu.memory_space<vmem>>, vector<1x16xf32>
    %cst_8 = arith.constant dense<0.000000e+00> : vector<16xf32>
    %6 = vector.multi_reduction <add>, %3, %cst_8 [0] : vector<128x16xf32> to vector<16xf32>
    %7 = vector.shape_cast %6 : vector<16xf32> to vector<1x16xf32>
    %8 = arith.mulf %3, %3 : vector<128x16xf32>
    %cst_9 = arith.constant dense<0.000000e+00> : vector<16xf32>
    %9 = vector.multi_reduction <add>, %8, %cst_9 [0] : vector<128x16xf32> to vector<16xf32>
    %10 = vector.shape_cast %9 : vector<16xf32> to vector<1x16xf32>
    %11 = vector.extract_strided_slice %7 {offsets = [0, 0], sizes = [1, 4], strides = [1, 1]} : vector<1x16xf32> to vector<1x4xf32>
    %12 = vector.extract_strided_slice %10 {offsets = [0, 0], sizes = [1, 4], strides = [1, 1]} : vector<1x16xf32> to vector<1x4xf32>
    %13 = vector.extract_strided_slice %7 {offsets = [0, 4], sizes = [1, 4], strides = [1, 1]} : vector<1x16xf32> to vector<1x4xf32>
    %14 = arith.addf %11, %13 : vector<1x4xf32>
    %15 = vector.extract_strided_slice %10 {offsets = [0, 4], sizes = [1, 4], strides = [1, 1]} : vector<1x16xf32> to vector<1x4xf32>
    %16 = arith.addf %12, %15 : vector<1x4xf32>
    %17 = vector.extract_strided_slice %7 {offsets = [0, 8], sizes = [1, 4], strides = [1, 1]} : vector<1x16xf32> to vector<1x4xf32>
    %18 = arith.addf %14, %17 : vector<1x4xf32>
    %19 = vector.extract_strided_slice %10 {offsets = [0, 8], sizes = [1, 4], strides = [1, 1]} : vector<1x16xf32> to vector<1x4xf32>
    %20 = arith.addf %16, %19 : vector<1x4xf32>
    %21 = vector.extract_strided_slice %7 {offsets = [0, 12], sizes = [1, 4], strides = [1, 1]} : vector<1x16xf32> to vector<1x4xf32>
    %22 = arith.addf %18, %21 : vector<1x4xf32>
    %23 = vector.extract_strided_slice %10 {offsets = [0, 12], sizes = [1, 4], strides = [1, 1]} : vector<1x16xf32> to vector<1x4xf32>
    %24 = arith.addf %20, %23 : vector<1x4xf32>
    %cst_10 = arith.constant 0.001953125 : f32
    %25 = vector.broadcast %cst_10 : f32 to vector<1x4xf32>
    %26 = arith.mulf %22, %25 : vector<1x4xf32>
    %cst_11 = arith.constant 0.001953125 : f32
    %27 = vector.broadcast %cst_11 : f32 to vector<1x4xf32>
    %28 = arith.mulf %24, %27 : vector<1x4xf32>
    %29 = arith.mulf %26, %26 : vector<1x4xf32>
    %30 = arith.subf %28, %29 : vector<1x4xf32>
    %cst_12 = arith.constant 0.000000e+00 : f32
    %31 = vector.broadcast %cst_12 : f32 to vector<1x4xf32>
    %32 = arith.maximumf %30, %31 : vector<1x4xf32>
    %cst_13 = arith.constant 9.99999974E-6 : f32
    %33 = vector.broadcast %cst_13 : f32 to vector<1x4xf32>
    %34 = arith.addf %32, %33 : vector<1x4xf32>
    %35 = math.rsqrt %34 : vector<1x4xf32>
    %36 = tpu.concatenate %26, %26, %26, %26 in 1 : vector<1x4xf32>, vector<1x4xf32>, vector<1x4xf32>, vector<1x4xf32> -> vector<1x16xf32>
    %37 = tpu.concatenate %35, %35, %35, %35 in 1 : vector<1x4xf32>, vector<1x4xf32>, vector<1x4xf32>, vector<1x4xf32> -> vector<1x16xf32>
    %38 = arith.mulf %4, %37 : vector<1x16xf32>
    %39 = arith.mulf %36, %38 : vector<1x16xf32>
    %40 = arith.subf %5, %39 : vector<1x16xf32>
    %41 = vector.broadcast %38 : vector<1x16xf32> to vector<128x16xf32>
    %42 = arith.mulf %3, %41 : vector<128x16xf32>
    %43 = vector.broadcast %40 : vector<1x16xf32> to vector<128x16xf32>
    %44 = arith.addf %42, %43 : vector<128x16xf32>
    %cst_14 = arith.constant 0.000000e+00 : f32
    %45 = vector.broadcast %cst_14 : f32 to vector<128x16xf32>
    %46 = arith.cmpf oge, %44, %45 : vector<128x16xf32>
    %47 = vector.broadcast %0 : f32 to vector<128x16xf32>
    %48 = arith.mulf %47, %44 : vector<128x16xf32>
    %49 = arith.select %46, %44, %48 : vector<128x16xi1>, vector<128x16xf32>
    %c0_15 = arith.constant 0 : index
    %c0_16 = arith.constant 0 : index
    %50 = vector.load %arg1[%c0_15, %c0_16] : memref<128x16xf32, #tpu.memory_space<vmem>>, vector<128x16xf32>
    %51 = arith.mulf %49, %50 : vector<128x16xf32>
    %c0_17 = arith.constant 0 : index
    %c0_18 = arith.constant 0 : index
    %52 = vector.load %arg5[%c0_17, %c0_18] : memref<16x16xf32, #tpu.memory_space<vmem>>, vector<16x16xf32>
    %cst_19 = arith.constant dense<0.000000e+00> : vector<128x16xf32>
    %53 = tpu.matmul %51, %52, %cst_19 {dimension_numbers = #tpu.dot_dimension_numbers<[1], [0], [0], [1], [0, 0, 1, 1], [], []>, precision = #tpu.contract_precision<fp32>} : vector<128x16xf32>, vector<16x16xf32>, vector<128x16xf32> -> vector<128x16xf32>
    %c0_20 = arith.constant 0 : index
    %c0_21 = arith.constant 0 : index
    %54 = vector.load %arg6[%c0_20, %c0_21] : memref<1x16xf32, #tpu.memory_space<vmem>>, vector<1x16xf32>
    %c0_22 = arith.constant 0 : index
    %c0_23 = arith.constant 0 : index
    %55 = vector.load %arg7[%c0_22, %c0_23] : memref<1x16xf32, #tpu.memory_space<vmem>>, vector<1x16xf32>
    %cst_24 = arith.constant dense<0.000000e+00> : vector<16xf32>
    %56 = vector.multi_reduction <add>, %53, %cst_24 [0] : vector<128x16xf32> to vector<16xf32>
    %57 = vector.shape_cast %56 : vector<16xf32> to vector<1x16xf32>
    %58 = arith.mulf %53, %53 : vector<128x16xf32>
    %cst_25 = arith.constant dense<0.000000e+00> : vector<16xf32>
    %59 = vector.multi_reduction <add>, %58, %cst_25 [0] : vector<128x16xf32> to vector<16xf32>
    %60 = vector.shape_cast %59 : vector<16xf32> to vector<1x16xf32>
    %61 = vector.extract_strided_slice %57 {offsets = [0, 0], sizes = [1, 4], strides = [1, 1]} : vector<1x16xf32> to vector<1x4xf32>
    %62 = vector.extract_strided_slice %60 {offsets = [0, 0], sizes = [1, 4], strides = [1, 1]} : vector<1x16xf32> to vector<1x4xf32>
    %63 = vector.extract_strided_slice %57 {offsets = [0, 4], sizes = [1, 4], strides = [1, 1]} : vector<1x16xf32> to vector<1x4xf32>
    %64 = arith.addf %61, %63 : vector<1x4xf32>
    %65 = vector.extract_strided_slice %60 {offsets = [0, 4], sizes = [1, 4], strides = [1, 1]} : vector<1x16xf32> to vector<1x4xf32>
    %66 = arith.addf %62, %65 : vector<1x4xf32>
    %67 = vector.extract_strided_slice %57 {offsets = [0, 8], sizes = [1, 4], strides = [1, 1]} : vector<1x16xf32> to vector<1x4xf32>
    %68 = arith.addf %64, %67 : vector<1x4xf32>
    %69 = vector.extract_strided_slice %60 {offsets = [0, 8], sizes = [1, 4], strides = [1, 1]} : vector<1x16xf32> to vector<1x4xf32>
    %70 = arith.addf %66, %69 : vector<1x4xf32>
    %71 = vector.extract_strided_slice %57 {offsets = [0, 12], sizes = [1, 4], strides = [1, 1]} : vector<1x16xf32> to vector<1x4xf32>
    %72 = arith.addf %68, %71 : vector<1x4xf32>
    %73 = vector.extract_strided_slice %60 {offsets = [0, 12], sizes = [1, 4], strides = [1, 1]} : vector<1x16xf32> to vector<1x4xf32>
    %74 = arith.addf %70, %73 : vector<1x4xf32>
    %cst_26 = arith.constant 0.001953125 : f32
    %75 = vector.broadcast %cst_26 : f32 to vector<1x4xf32>
    %76 = arith.mulf %72, %75 : vector<1x4xf32>
    %cst_27 = arith.constant 0.001953125 : f32
    %77 = vector.broadcast %cst_27 : f32 to vector<1x4xf32>
    %78 = arith.mulf %74, %77 : vector<1x4xf32>
    %79 = arith.mulf %76, %76 : vector<1x4xf32>
    %80 = arith.subf %78, %79 : vector<1x4xf32>
    %cst_28 = arith.constant 0.000000e+00 : f32
    %81 = vector.broadcast %cst_28 : f32 to vector<1x4xf32>
    %82 = arith.maximumf %80, %81 : vector<1x4xf32>
    %cst_29 = arith.constant 9.99999974E-6 : f32
    %83 = vector.broadcast %cst_29 : f32 to vector<1x4xf32>
    %84 = arith.addf %82, %83 : vector<1x4xf32>
    %85 = math.rsqrt %84 : vector<1x4xf32>
    %86 = tpu.concatenate %76, %76, %76, %76 in 1 : vector<1x4xf32>, vector<1x4xf32>, vector<1x4xf32>, vector<1x4xf32> -> vector<1x16xf32>
    %87 = tpu.concatenate %85, %85, %85, %85 in 1 : vector<1x4xf32>, vector<1x4xf32>, vector<1x4xf32>, vector<1x4xf32> -> vector<1x16xf32>
    %88 = arith.mulf %54, %87 : vector<1x16xf32>
    %89 = arith.mulf %86, %88 : vector<1x16xf32>
    %90 = arith.subf %55, %89 : vector<1x16xf32>
    %91 = vector.broadcast %88 : vector<1x16xf32> to vector<128x16xf32>
    %92 = arith.mulf %53, %91 : vector<128x16xf32>
    %93 = vector.broadcast %90 : vector<1x16xf32> to vector<128x16xf32>
    %94 = arith.addf %92, %93 : vector<128x16xf32>
    %cst_30 = arith.constant 0.000000e+00 : f32
    %95 = vector.broadcast %cst_30 : f32 to vector<128x16xf32>
    %96 = arith.cmpf oge, %94, %95 : vector<128x16xf32>
    %97 = vector.broadcast %0 : f32 to vector<128x16xf32>
    %98 = arith.mulf %97, %94 : vector<128x16xf32>
    %99 = arith.select %96, %94, %98 : vector<128x16xi1>, vector<128x16xf32>
    %c0_31 = arith.constant 0 : index
    %c0_32 = arith.constant 0 : index
    %100 = vector.load %arg8[%c0_31, %c0_32] : memref<16x32xf32, #tpu.memory_space<vmem>>, vector<16x32xf32>
    %cst_33 = arith.constant dense<0.000000e+00> : vector<128x32xf32>
    %101 = tpu.matmul %99, %100, %cst_33 {dimension_numbers = #tpu.dot_dimension_numbers<[1], [0], [0], [1], [0, 0, 1, 1], [], []>, precision = #tpu.contract_precision<fp32>} : vector<128x16xf32>, vector<16x32xf32>, vector<128x32xf32> -> vector<128x32xf32>
    %c0_34 = arith.constant 0 : index
    %c0_35 = arith.constant 0 : index
    %102 = vector.load %arg9[%c0_34, %c0_35] : memref<1x32xf32, #tpu.memory_space<vmem>>, vector<1x32xf32>
    %c0_36 = arith.constant 0 : index
    %c0_37 = arith.constant 0 : index
    %103 = vector.load %arg10[%c0_36, %c0_37] : memref<1x32xf32, #tpu.memory_space<vmem>>, vector<1x32xf32>
    %cst_38 = arith.constant dense<0.000000e+00> : vector<32xf32>
    %104 = vector.multi_reduction <add>, %101, %cst_38 [0] : vector<128x32xf32> to vector<32xf32>
    %105 = vector.shape_cast %104 : vector<32xf32> to vector<1x32xf32>
    %106 = arith.mulf %101, %101 : vector<128x32xf32>
    %cst_39 = arith.constant dense<0.000000e+00> : vector<32xf32>
    %107 = vector.multi_reduction <add>, %106, %cst_39 [0] : vector<128x32xf32> to vector<32xf32>
    %108 = vector.shape_cast %107 : vector<32xf32> to vector<1x32xf32>
    %109 = vector.extract_strided_slice %105 {offsets = [0, 0], sizes = [1, 8], strides = [1, 1]} : vector<1x32xf32> to vector<1x8xf32>
    %110 = vector.extract_strided_slice %108 {offsets = [0, 0], sizes = [1, 8], strides = [1, 1]} : vector<1x32xf32> to vector<1x8xf32>
    %111 = vector.extract_strided_slice %105 {offsets = [0, 8], sizes = [1, 8], strides = [1, 1]} : vector<1x32xf32> to vector<1x8xf32>
    %112 = arith.addf %109, %111 : vector<1x8xf32>
    %113 = vector.extract_strided_slice %108 {offsets = [0, 8], sizes = [1, 8], strides = [1, 1]} : vector<1x32xf32> to vector<1x8xf32>
    %114 = arith.addf %110, %113 : vector<1x8xf32>
    %115 = vector.extract_strided_slice %105 {offsets = [0, 16], sizes = [1, 8], strides = [1, 1]} : vector<1x32xf32> to vector<1x8xf32>
    %116 = arith.addf %112, %115 : vector<1x8xf32>
    %117 = vector.extract_strided_slice %108 {offsets = [0, 16], sizes = [1, 8], strides = [1, 1]} : vector<1x32xf32> to vector<1x8xf32>
    %118 = arith.addf %114, %117 : vector<1x8xf32>
    %119 = vector.extract_strided_slice %105 {offsets = [0, 24], sizes = [1, 8], strides = [1, 1]} : vector<1x32xf32> to vector<1x8xf32>
    %120 = arith.addf %116, %119 : vector<1x8xf32>
    %121 = vector.extract_strided_slice %108 {offsets = [0, 24], sizes = [1, 8], strides = [1, 1]} : vector<1x32xf32> to vector<1x8xf32>
    %122 = arith.addf %118, %121 : vector<1x8xf32>
    %cst_40 = arith.constant 0.001953125 : f32
    %123 = vector.broadcast %cst_40 : f32 to vector<1x8xf32>
    %124 = arith.mulf %120, %123 : vector<1x8xf32>
    %cst_41 = arith.constant 0.001953125 : f32
    %125 = vector.broadcast %cst_41 : f32 to vector<1x8xf32>
    %126 = arith.mulf %122, %125 : vector<1x8xf32>
    %127 = arith.mulf %124, %124 : vector<1x8xf32>
    %128 = arith.subf %126, %127 : vector<1x8xf32>
    %cst_42 = arith.constant 0.000000e+00 : f32
    %129 = vector.broadcast %cst_42 : f32 to vector<1x8xf32>
    %130 = arith.maximumf %128, %129 : vector<1x8xf32>
    %cst_43 = arith.constant 9.99999974E-6 : f32
    %131 = vector.broadcast %cst_43 : f32 to vector<1x8xf32>
    %132 = arith.addf %130, %131 : vector<1x8xf32>
    %133 = math.rsqrt %132 : vector<1x8xf32>
    %134 = tpu.concatenate %124, %124, %124, %124 in 1 : vector<1x8xf32>, vector<1x8xf32>, vector<1x8xf32>, vector<1x8xf32> -> vector<1x32xf32>
    %135 = tpu.concatenate %133, %133, %133, %133 in 1 : vector<1x8xf32>, vector<1x8xf32>, vector<1x8xf32>, vector<1x8xf32> -> vector<1x32xf32>
    %136 = arith.mulf %102, %135 : vector<1x32xf32>
    %137 = arith.mulf %134, %136 : vector<1x32xf32>
    %138 = arith.subf %103, %137 : vector<1x32xf32>
    %139 = vector.broadcast %136 : vector<1x32xf32> to vector<128x32xf32>
    %140 = arith.mulf %101, %139 : vector<128x32xf32>
    %141 = vector.broadcast %138 : vector<1x32xf32> to vector<128x32xf32>
    %142 = arith.addf %140, %141 : vector<128x32xf32>
    %c0_44 = arith.constant 0 : index
    %c0_45 = arith.constant 0 : index
    %143 = vector.load %arg11[%c0_44, %c0_45] : memref<64x32xf32, #tpu.memory_space<vmem>>, vector<64x32xf32>
    %cst_46 = arith.constant dense<0.000000e+00> : vector<128x32xf32>
    %144 = tpu.matmul %1, %143, %cst_46 {dimension_numbers = #tpu.dot_dimension_numbers<[1], [0], [0], [1], [0, 0, 1, 1], [], []>, precision = #tpu.contract_precision<fp32>} : vector<128x64xf32>, vector<64x32xf32>, vector<128x32xf32> -> vector<128x32xf32>
    %c0_47 = arith.constant 0 : index
    %c0_48 = arith.constant 0 : index
    %145 = vector.load %arg12[%c0_47, %c0_48] : memref<1x32xf32, #tpu.memory_space<vmem>>, vector<1x32xf32>
    %146 = vector.broadcast %145 : vector<1x32xf32> to vector<128x32xf32>
    %147 = arith.addf %144, %146 : vector<128x32xf32>
    %148 = arith.addf %142, %147 : vector<128x32xf32>
    %cst_49 = arith.constant 0.000000e+00 : f32
    %149 = vector.broadcast %cst_49 : f32 to vector<128x32xf32>
    %150 = arith.cmpf oge, %148, %149 : vector<128x32xf32>
    %151 = vector.broadcast %0 : f32 to vector<128x32xf32>
    %152 = arith.mulf %151, %148 : vector<128x32xf32>
    %153 = arith.select %150, %148, %152 : vector<128x32xi1>, vector<128x32xf32>
    %c0_50 = arith.constant 0 : index
    %c0_51 = arith.constant 0 : index
    %154 = vector.load %arg14[%c0_50, %c0_51] : memref<128x32xf32, #tpu.memory_space<vmem>>, vector<128x32xf32>
    tpu.vector_store %arg14[%c0_50, %c0_51], %153 {strides = array<i32>} : memref<128x32xf32, #tpu.memory_space<vmem>>, vector<128x32xf32>,
    return
  }
}

</mosaic_0001>

<bundles_post_ra>
// kernel: tpu_custom_call.1
= control target key start
LH: loop header
LB: loop body
LE: loop exit
PB: predicated region body
PF: predicated region fallthrough
CT: control target
= control target key end

     0   :  { %vm73_vm0 = vcmask 523264   ;;  %vm1306_vm1 = vcmask 130048   ;;  %s7544_s27 = smov 124   ;;  %s7545_s28 = smov 116   ;;  %vm1440_vm2 = vcmask 31744   ;;  %vm1442_vm3 = vcmask 64512   ;;  %s9806_s2 = inlined_call_operand.vmem [shape: f32[64,16], index: 2, kind: input, shape index: {}]   ;;  %s9807_s0 = inlined_call_operand.vmem [shape: f32[128,64], index: 0, kind: input, shape index: {}]   ;;  %s9808_s5 = inlined_call_operand.vmem [shape: f32[16,16], index: 5, kind: input, shape index: {}]   ;;  %s9809_s3 = inlined_call_operand.vmem [shape: f32[1,16], index: 3, kind: input, shape index: {}]   ;;  %s9810_s4 = inlined_call_operand.vmem [shape: f32[1,16], index: 4, kind: input, shape index: {}]   ;;  %s9811_s13 = inlined_call_operand.<no memory space> [shape: f32[1], index: 13, kind: input, shape index: {}]   ;;  %s9812_s1 = inlined_call_operand.vmem [shape: f32[128,16], index: 1, kind: input, shape index: {}]   ;;  %s9813_s8 = inlined_call_operand.vmem [shape: f32[16,32], index: 8, kind: input, shape index: {}]   ;;  %s9814_s6 = inlined_call_operand.vmem [shape: f32[1,16], index: 6, kind: input, shape index: {}]   ;;  %s9815_s7 = inlined_call_operand.vmem [shape: f32[1,16], index: 7, kind: input, shape index: {}]   ;;  %s9816_s11 = inlined_call_operand.vmem [shape: f32[64,32], index: 11, kind: input, shape index: {}]   ;;  %s9817_s12 = inlined_call_operand.vmem [shape: f32[1,32], index: 12, kind: input, shape index: {}]   ;;  %s9818_s9 = inlined_call_operand.vmem [shape: f32[1,32], index: 9, kind: input, shape index: {}]   ;;  %s9819_s10 = inlined_call_operand.vmem [shape: f32[1,32], index: 10, kind: input, shape index: {}]   ;;  %s9820_s14 = inlined_call_operand.vmem [shape: f32[128,32], index: 14, kind: output, shape index: {}]  }
   0x1   :  { %v65_v0 = vld [vmem:[%s9806_s2] sm:$0xff]  ;;  %v66_v1 = vld [vmem:[%s9806_s2 + $0x8] sm:$0xff]  ;;  %v7637_v2 = vld [vmem:[%s9806_s2 + $0x10] sm:$0xff]  ;;  %s7546_s29 = smov 4   ;;  %s7547_s30 = smov 8   ;;  %vm1444_vm4 = vcmask 97280  }
   0x2   :  { %v123_v3 = vand.u32 4294901760, %v65_v0  ;;  %v126_v4 = vand.u32 4294901760, %v66_v1  ;;  %v7642_v5 = vld [vmem:[%s9806_s2 + $0x18] sm:$0xff]  ;;  %v129_v6 = vand.u32 4294901760, %v7637_v2  ;;  %v7648_v7 = vld [vmem:[%s9806_s2 + $0x20] sm:$0xff]  ;;  %v7653_v8 = vld [vmem:[%s9806_s2 + $0x28] sm:$0xff] }
   0x3   :  { %v132_v9 = vand.u32 4294901760, %v7642_v5  ;;  %v135_v10 = vand.u32 4294901760, %v7648_v7  ;;  %v138_v11 = vand.u32 4294901760, %v7653_v8  ;;  %v7661_v12 = vld [vmem:[%s9806_s2 + $0x30] sm:$0xff]  ;;  %v7666_v13 = vld [vmem:[%s9806_s2 + $0x38] sm:$0xff]  ;;  %v49_v14 = vld [vmem:[%s9807_s0] sm:$0xff] }
   0x4   :  { %v7671_v15 = vpack.c.bf16 %v126_v4, %v123_v3  ;;  %v9826_v16 = vand.u32 4294901760, %v7661_v12  ;;  %v9825_v17 = vand.u32 4294901760, %v7666_v13  ;;  %v75_v18 = vsel %vm73_vm0, %v49_v14, 0  ;;  %v50_v19 = vld [vmem:[%s9807_s0 + $0x8] sm:$0xff]  ;;  %v51_v20 = vld [vmem:[%s9807_s0 + $0x10] sm:$0xff]  ;;  %v52_v21 = vld [vmem:[%s9807_s0 + $0x18] sm:$0xff] }
   0x5   :  { %v7689_v22 = vpack.c.bf16 %v132_v9, %v129_v6  ;;  %v7695_v23 = vpack.c.bf16 %v138_v11, %v135_v10  ;;  %v7697_v24 = vand.u32 4294901760, %v75_v18  ;;  %v78_v25 = vsel %vm73_vm0, %v50_v19, 0  ;;  %v53_v26 = vld [vmem:[%s9807_s0 + $0x20] sm:$0xff]  ;;  %v54_v31 = vld [vmem:[%s9807_s0 + $0x28] sm:$0xff]  ;;  %v55_v60 = vld [vmem:[%s9807_s0 + $0x30] sm:$0xff]  ;;  %s7548_s2 = smov 12  }
   0x6   :  { %6944 = vmatprep.subr.bf16.mxu0 %v7671_v15  ;;  %v7708_v27 = vpack.c.bf16 %v9825_v17, %v9826_v16  ;;  %v7710_v28 = vand.u32 4294901760, %v78_v25  ;;  %v7712_v29 = vsub.f32 %v65_v0, %v123_v3  ;;  %v7714_v30 = vsub.f32 %v66_v1, %v126_v4  ;;  %v56_v61 = vld [vmem:[%s9807_s0 + $0x38] sm:$0xff] }
   0x7   :  { %6946 = vmatpush3.bf16.msra.mxu0 %v7671_v15  ;;  %v7721_v32 = vsub.f32 %v75_v18, %v7697_v24  ;;  %v81_v33 = vsel %vm73_vm0, %v51_v20, 0  ;;  %v84_v34 = vsel %vm73_vm0, %v52_v21, 0  ;;  %v87_v35 = vsel %vm73_vm0, %v53_v26, 0  ;;  %v58_v21 = vld [vmem:[%s9807_s0 + $0x48] sm:$0xff] }
   0x8   :  { %6948 = vmatprep.subr.bf16.mxu0 %v7689_v22  ;;  %v7728_v36 = vsub.f32 %v78_v25, %v7710_v28  ;;  %v9824_v37 = vand.u32 4294901760, %v7712_v29  ;;  %v9823_v38 = vand.u32 4294901760, %v7714_v30  ;;  %v7732_v39 = vand.u32 4294901760, %v81_v33 }
   0x9   :  { %9967 = vst [vmem:[#allocation3_spill] sm:$0xff] %v7721_v32  ;;  %v7735_v40 = vand.u32 4294901760, %v7721_v32  ;;  %v7737_v41 = vand.u32 4294901760, %v84_v34  ;;  %v7739_v42 = vand.u32 4294901760, %v87_v35  ;;  %v90_v43 = vsel %vm73_vm0, %v54_v31, 0 }
   0xa   :  { %9968 = vst [vmem:[#allocation4_spill] sm:$0xff] %v7728_v36  ;;  %v7743_v44 = vand.u32 4294901760, %v7728_v36  ;;  %v359_v45 = vsub.f32 %v7712_v29, %v9824_v37  ;;  %v366_v46 = vsub.f32 %v7714_v30, %v9823_v38  ;;  %v7752_v47 = vsub.f32 %v81_v33, %v7732_v39  ;;  %v61_v38 = vld [vmem:[%s9807_s0 + $0x60] sm:$0xff]  ;;  %v62_v37 = vld [vmem:[%s9807_s0 + $0x68] sm:$0xff] }
   0xb   :  { %9969 = vst [vmem:[#allocation5_spill] sm:$0xff] %v7735_v40  ;;  %6950 = vmatpush3.bf16.msra.mxu0 %v7689_v22  ;;  %v198_v48 = vsub.f32 %v7721_v32, %v7735_v40  ;;  %v7758_v49 = vsub.f32 %v84_v34, %v7737_v41  ;;  %v7761_v50 = vsub.f32 %v87_v35, %v7739_v42  ;;  %v7763_v51 = vand.u32 4294901760, %v90_v43 }
   0xc   :  { %9970 = vst [vmem:[#allocation6_spill] sm:$0xff] %v7743_v44  ;;  %9971 = vst [vmem:[#allocation7_spill] sm:$0xff] %v7752_v47  ;;  %6952 = vmatprep.subr.bf16.mxu0 %v7695_v23  ;;  %v208_v52 = vsub.f32 %v7728_v36, %v7743_v44  ;;  %v360_v53 = vand.u32 4294901760, %v359_v45  ;;  %v367_v54 = vand.u32 4294901760, %v366_v46  ;;  %v7769_v55 = vand.u32 4294901760, %v7752_v47 }
   0xd   :  { %9972 = vst [vmem:[#allocation8_spill] sm:$0xff] %v7758_v49  ;;  %9973 = vst [vmem:[#allocation9_spill] sm:$0xff] %v7761_v50  ;;  %v7771_v56 = vand.u32 4294901760, %v198_v48  ;;  %v7774_v57 = vand.u32 4294901760, %v7758_v49  ;;  %v7777_v58 = vand.u32 4294901760, %v7761_v50  ;;  %v7780_v59 = vsub.f32 %v90_v43, %v7763_v51 }
   0xe   :  { %9974 = vst [vmem:[#allocation10_spill] sm:$0xff] %v7769_v55  ;;  %v7788_v62 = vand.u32 4294901760, %v208_v52  ;;  %v218_v63 = vsub.f32 %v7752_v47, %v7769_v55  ;;  %v7795_v0 = vsub.f32 %v7637_v2, %v129_v6  ;;  %v7809_v14 = vsub.f32 %v7642_v5, %v132_v9  ;;  %v57_v2 = vld [vmem:[%s9807_s0 + $0x40] sm:$0xff]  ;;  %v59_v52 = vld [vmem:[%s9807_s0 + $0x50] sm:$0xff] }
   0xf   :  { %9975 = vst [vmem:[#allocation11_spill] sm:$0xff] %v7771_v56  ;;  %9976 = vst [vmem:[#allocation12_spill] sm:$0xff] %v7774_v57  ;;  %6954 = vmatpush3.bf16.msra.mxu0 %v7695_v23  ;;  %6143 = vmatprep.mubr.f32.mxu0 %v7771_v56  ;;  %v228_v1 = vsub.f32 %v7758_v49, %v7774_v57  ;;  %v238_v3 = vsub.f32 %v7761_v50, %v7777_v58  ;;  %v7804_v4 = vand.u32 4294901760, %v7780_v59 }
  0x10   :  { %9977 = vst [vmem:[#allocation13_spill] sm:$0xff] %v7777_v58  ;;  %9978 = vst [vmem:[#allocation14_spill] sm:$0xff] %v7780_v59  ;;  %6956 = vmatprep.subr.bf16.mxu0 %v7708_v27  ;;  %v6959_v6 = vpack.c.bf16 %v367_v54, %v360_v53  ;;  %v9822_v18 = vand.u32 4294901760, %v7795_v0  ;;  %v93_v19 = vsel %vm73_vm0, %v55_v60, 0  ;;  %v96_v20 = vsel %vm73_vm0, %v56_v61, 0 }
  0x11   :  { %9979 = vst [vmem:[#allocation15_spill] sm:$0xff] %v7788_v62  ;;  %9980 = vst [vmem:[#allocation16_spill] sm:$0xff] %v7804_v4  ;;  %v7821_v25 = vand.u32 4294901760, %v218_v63  ;;  %v7823_v5 = vand.u32 4294901760, %v228_v1  ;;  %v7825_v9 = vand.u32 4294901760, %v238_v3  ;;  %v9821_v26 = vand.u32 4294901760, %v7809_v14 }
  0x12   :  { %v373_v31 = vsub.f32 %v7795_v0, %v9822_v18  ;;  %v7831_v33 = vand.u32 4294901760, %v93_v19  ;;  %v7833_v34 = vand.u32 4294901760, %v96_v20  ;;  %v99_v35 = vsel %vm73_vm0, %v57_v2, 0 }
  0x13   :  { %9981 = vst [vmem:[#allocation17_spill] sm:$0xff] %v7821_v25  ;;  %9982 = vst [vmem:[#allocation18_spill] sm:$0xff] %v7823_v5  ;;  %6958 = vmatpush3.bf16.msra.mxu0 %v7708_v27  ;;  %v248_v43 = vsub.f32 %v7780_v59, %v7804_v4  ;;  %v380_v45 = vsub.f32 %v7809_v14, %v9821_v26  ;;  %v7842_v46 = vand.u32 4294901760, %v99_v35  ;;  %v102_v48 = vsel %vm73_vm0, %v58_v21, 0 }
  0x14   :  { %9983 = vst [vmem:[#allocation19_spill] sm:$0xff] %v7825_v9  ;;  %9984 = vst [vmem:[#allocation20_spill] sm:$0xff] %v7831_v33  ;;  %6960 = vmatprep.subr.bf16.mxu0 %v6959_v6  ;;  %v374_v53 = vand.u32 4294901760, %v373_v31  ;;  %v7849_v54 = vsub.f32 %v93_v19, %v7831_v33  ;;  %v7852_v60 = vsub.f32 %v96_v20, %v7833_v34  ;;  %v7854_v61 = vand.u32 4294901760, %v102_v48 }
  0x15   :  { %9985 = vst [vmem:[#allocation21_spill] sm:$0xff] %v7833_v34  ;;  %9986 = vst [vmem:[#allocation22_spill] sm:$0xff] %v7842_v46  ;;  %v381_v63 = vand.u32 4294901760, %v380_v45  ;;  %v7857_v1 = vsub.f32 %v99_v35, %v7842_v46  ;;  %v7862_v3 = vsub.f32 %v7648_v7, %v135_v10  ;;  %v7867_v2 = vsub.f32 %v7653_v8, %v138_v11  ;;  %v60_v7 = vld [vmem:[%s9807_s0 + $0x58] sm:$0xff] }
  0x16   :  { %9987 = vst [vmem:[#allocation23_spill] sm:$0xff] %v7849_v54  ;;  %9988 = vst [vmem:[#allocation24_spill] sm:$0xff] %v7852_v60  ;;  %6144 = vmatmul.mubr.f32.vlgmr.msra.gmra.mrb[0].mxu0 %v7788_v62  ;;  %v7871_v19 = vand.u32 4294901760, %v7849_v54  ;;  %v7874_v20 = vand.u32 4294901760, %v7852_v60  ;;  %v7877_v21 = vsub.f32 %v102_v48, %v7854_v61  ;;  %v105_v31 = vsel %vm73_vm0, %v59_v52, 0 }
  0x17   :  { %9989 = vst [vmem:[#allocation25_spill] sm:$0xff] %v7854_v61  ;;  %9990 = vst [vmem:[#allocation26_spill] sm:$0xff] %v7857_v1  ;;  %6962 = vmatpush3.bf16.msra.mxu0 %v6959_v6  ;;  %6146 = vmatprep.mubr.f32.mxu0 %v7821_v25  ;;  %v6963_v8 = vpack.c.bf16 %v381_v63, %v374_v53  ;;  %v7885_v10 = vand.u32 4294901760, %v7857_v1  ;;  %v9827_v11 = vand.u32 4294901760, %v7862_v3  ;;  %v9828_v35 = vand.u32 4294901760, %v7867_v2 }
  0x18   :  { %9991 = vst [vmem:[#allocation27_spill] sm:$0xff] %v7871_v19  ;;  %9992 = vst [vmem:[#allocation28_spill] sm:$0xff] %v7874_v20  ;;  %v258_v45 = vsub.f32 %v7849_v54, %v7871_v19  ;;  %v268_v48 = vsub.f32 %v7852_v60, %v7874_v20  ;;  %v7894_v52 = vand.u32 4294901760, %v7877_v21  ;;  %v7896_v6 = vand.u32 4294901760, %v105_v31 }
  0x19   :  { %9993 = vst [vmem:[#allocation29_spill] sm:$0xff] %v7877_v21  ;;  %9994 = vst [vmem:[#allocation30_spill] sm:$0xff] %v7885_v10  ;;  %6964 = vmatprep.subr.bf16.mxu0 %v6963_v8  ;;  %v278_v53 = vsub.f32 %v7857_v1, %v7885_v10  ;;  %v387_v63 = vsub.f32 %v7862_v3, %v9827_v11  ;;  %v394_v26 = vsub.f32 %v7867_v2, %v9828_v35 }
  0x1a   :  { %9995 = vst [vmem:[#allocation31_spill] sm:$0xff] %v7894_v52  ;;  %9996 = vst [vmem:[#allocation32_spill] sm:$0xff] %v7896_v6  ;;  %v108_v18 = vsel %vm73_vm0, %v60_v7, 0  ;;  %6147 = vmatmul.mubr.f32.gmra.mrb[2].mxu0 %v7823_v5  ;;  %v7914_v17 = vand.u32 4294901760, %v248_v43  ;;  %v7916_v16 = vand.u32 4294901760, %v258_v45  ;;  %v7918_v11 = vand.u32 4294901760, %v268_v48 }
  0x1b   :  { %v7921_v35 = vsub.f32 %v105_v31, %v7896_v6  ;;  %6149 = vmatprep.mubr.f32.mxu0 %v7825_v9  ;;  %6966 = vmatpush3.bf16.msra.mxu0 %v6963_v8  ;;  %v288_v7 = vsub.f32 %v7877_v21, %v7894_v52  ;;  %v388_v25 = vand.u32 4294901760, %v387_v63  ;;  %v395_v62 = vand.u32 4294901760, %v394_v26  ;;  %v63_v43 = vld [vmem:[%s9807_s0 + $0x70] sm:$0xff] }
  0x1c   :  { %9997 = vst [vmem:[#allocation33_spill] sm:$0xff] %v7914_v17  ;;  %9998 = vst [vmem:[#allocation34_spill] sm:$0xff] %v7916_v16  ;;  %v7926_v56 = vand.u32 4294901760, %v108_v18  ;;  %v7931_v45 = vand.u32 4294901760, %v278_v53  ;;  %v111_v31 = vsel %vm73_vm0, %v61_v38, 0  ;;  %v114_v8 = vsel %vm73_vm0, %v62_v37, 0 }
  0x1d   :  { %9999 = vst [vmem:[#allocation35_spill] sm:$0xff] %v7918_v11  ;;  %10000 = vst [vmem:[#allocation36_spill] sm:$0xff] %v7921_v35  ;;  %v7934_v48 = vand.u32 4294901760, %v7921_v35  ;;  %v6967_v9 = vpack.c.bf16 %v395_v62, %v388_v25  ;;  %v7941_v26 = vand.u32 4294901760, %v111_v31  ;;  %v7943_v63 = vand.u32 4294901760, %v114_v8  ;;  %v64_v53 = vld [vmem:[%s9807_s0 + $0x78] sm:$0xff] }
  0x1e   :  { %10001 = vst [vmem:[#allocation37_spill] sm:$0xff] %v7926_v56  ;;  %10002 = vst [vmem:[#allocation38_spill] sm:$0xff] %v7931_v45  ;;  %v7939_v5 = vsub.f32 %v108_v18, %v7926_v56  ;;  %6150 = vmatmul.mubr.f32.gmra.mrb[4].mxu0 %v7914_v17  ;;  %v10007_v38 = vand.u32 4294901760, %v7661_v12  ;;  %v10008_v62 = vand.u32 4294901760, %v7666_v13  ;;  %v117_v25 = vsel %vm73_vm0, %v63_v43, 0  ;;  %s7543_s0 = smov 120  }
  0x1f   :  { %10003 = vst [vmem:[#allocation39_spill] sm:$0xff] %v7934_v48  ;;  %10005 = vst [vmem:[#allocation41_spill] sm:$0xff] %v7941_v26  ;;  %v298_v52 = vsub.f32 %v7921_v35, %v7934_v48  ;;  %6152 = vmatprep.mubr.f32.mxu0 %v7916_v16  ;;  %6968 = vmatprep.subr.bf16.mxu0 %v6967_v9  ;;  %v7967_v48 = vsub.f32 %v111_v31, %v7941_v26  ;;  %v120_v43 = vsel %vm73_vm0, %v64_v53, 0 }
  0x20   :  { %10004 = vst [vmem:[#allocation40_spill] sm:$0xff] %v7939_v5  ;;  %10006 = vst [vmem:[#allocation42_spill] sm:$0xff] %v7943_v63  ;;  %v7954_v37 = vsub.f32 %v7661_v12, %v10007_v38  ;;  %v7959_v18 = vsub.f32 %v7666_v13, %v10008_v62  ;;  %v7964_v17 = vand.u32 4294901760, %v7939_v5  ;;  %v7970_v10 = vsub.f32 %v114_v8, %v7943_v63 }
  0x21   :  { %10010 = vst [vmem:[#allocation44_spill] sm:$0xff] %v7967_v48  ;;  %v7972_v12 = vand.u32 4294901760, %v117_v25  ;;  %6970 = vmatpush3.bf16.msra.mxu0 %v6967_v9  ;;  %v7980_v16 = vand.u32 4294901760, %v7967_v48  ;;  %v7989_v9 = vand.u32 4294901760, %v288_v7  ;;  %v7993_v19 = vand.u32 4294901760, %v120_v43 }
  0x22   :  { %10009 = vst [vmem:[#allocation43_spill] sm:$0xff] %v7964_v17  ;;  %10011 = vst [vmem:[#allocation45_spill] sm:$0xff] %v7970_v10  ;;  %v400_v13 = vand.u32 4294901760, %v7954_v37  ;;  %v407_v38 = vand.u32 4294901760, %v7959_v18  ;;  %v308_v62 = vsub.f32 %v7939_v5, %v7964_v17  ;;  %v7983_v31 = vand.u32 4294901760, %v7970_v10  ;;  %6153 = vmatmul.mubr.f32.gmra.mrb[6].mxu0 %v7918_v11 }
  0x23   :  { %10012 = vst [vmem:[#allocation46_spill] sm:$0xff] %v7972_v12  ;;  %10013 = vst [vmem:[#allocation47_spill] sm:$0xff] %v7980_v16  ;;  %v7986_v8 = vsub.f32 %v117_v25, %v7972_v12  ;;  %6155 = vmatprep.mubr.f32.mxu0 %v7931_v45  ;;  %v7996_v17 = vand.u32 4294901760, %v298_v52  ;;  %v318_v4 = vsub.f32 %v7967_v48, %v7980_v16 }
  0x24   :  { %10014 = vst [vmem:[#allocation48_spill] sm:$0xff] %v7983_v31  ;;  %10016 = vst [vmem:[#allocation50_spill] sm:$0xff] %v7989_v9  ;;  %v401_v20 = vsub.f32 %v7954_v37, %v400_v13  ;;  %v408_v53 = vsub.f32 %v7959_v18, %v407_v38  ;;  %v8004_v7 = vsub.f32 %v120_v43, %v7993_v19  ;;  %v8006_v57 = vand.u32 4294901760, %v308_v62 }
  0x25   :  { %10015 = vst [vmem:[#allocation49_spill] sm:$0xff] %v7986_v8  ;;  %10017 = vst [vmem:[#allocation51_spill] sm:$0xff] %v7993_v19  ;;  %v8001_v25 = vand.u32 4294901760, %v7986_v8  ;;  %v328_v55 = vsub.f32 %v7970_v10, %v7983_v31  ;;  %v6975_v52 = vpack.c.bf16 %v7714_v30, %v7712_v29  ;;  %v8013_v45 = vand.u32 4294901760, %v318_v4 }
  0x26   :  { %v402_v58 = vand.u32 4294901760, %v401_v20  ;;  %v409_v11 = vand.u32 4294901760, %v408_v53  ;;  %10019 = vst [vmem:[#allocation53_spill] sm:$0xff] %v8004_v7  ;;  %6156 = vmatmul.mubr.f32.gmra.mrb[8].mxu0 %v7989_v9  ;;  %v8016_v44 = vand.u32 4294901760, %v8004_v7  ;;  %v10021_v20 = vand.u32 4294901760, %v7712_v29 }
  0x27   :  { %10018 = vst [vmem:[#allocation52_spill] sm:$0xff] %v8001_v25  ;;  %v10022_v43 = vand.u32 4294901760, %v7714_v30  ;;  %6158 = vmatprep.mubr.f32.mxu0 %v7996_v17  ;;  %v338_v53 = vsub.f32 %v7986_v8, %v8001_v25  ;;  %v10023_v31 = vand.u32 4294901760, %v7795_v0  ;;  %v10024_v4 = vand.u32 4294901760, %v7809_v14 }
  0x28   :  { %v6971_v16 = vpack.c.bf16 %v409_v11, %v402_v58  ;;  %10020 = vst [vmem:[#allocation54_spill] sm:$0xff] %v8016_v44  ;;  %v10025_v58 = vand.u32 4294901760, %v7862_v3  ;;  %v10026_v11 = vand.u32 4294901760, %v7867_v2  ;;  %v8039_v30 = vpack.c.bf16 %v407_v38, %v400_v13  ;;  %v10035_v38 = vld [vmem:[#allocation28_spill] sm:$0xff] }
  0x29   :  { %v8022_v62 = vpack.c.bf16 %v10022_v43, %v10021_v20  ;;  %v8031_v9 = vpack.c.bf16 %v10024_v4, %v10023_v31  ;;  %v8042_v20 = vand.u32 4294901760, %v328_v55  ;;  %v348_v43 = vsub.f32 %v8004_v7, %v8016_v44 }
  0x2a   :  { %v8037_v29 = vpack.c.bf16 %v10026_v11, %v10025_v58  ;;  %6972 = vmatprep.subr.bf16.mxu0 %v6971_v16  ;;  %6159 = vmatmul.mubr.f32.gmra.mrb[10].mxu0 %v8006_v57  ;;  %v8047_v31 = vand.u32 4294901760, %v338_v53  ;;  %v6983_v55 = vpack.c.bf16 %v7867_v2, %v7862_v3  ;;  %v6987_v13 = vpack.c.bf16 %v7959_v18, %v7954_v37  ;;  %v10031_v3 = vld [vmem:[#allocation12_spill] sm:$0xff]  ;;  %v10032_v2 = vld [vmem:[#allocation13_spill] sm:$0xff]  ;;  %v10034_v18 = vld [vmem:[#allocation27_spill] sm:$0xff] }
  0x2b   :  { %6974 = vmatpush3.bf16.msra.mxu0 %v6971_v16  ;;  %6161 = vmatprep.mubr.f32.mxu0 %v8013_v45  ;;  %v8050_v4 = vand.u32 4294901760, %v348_v43  ;;  %v6979_v16 = vpack.c.bf16 %v7809_v14, %v7795_v0  ;;  %v10029_v0 = vld [vmem:[#allocation6_spill] sm:$0xff]  ;;  %v10033_v37 = vld [vmem:[#allocation16_spill] sm:$0xff]  ;;  %v10039_v53 = vld [vmem:[#allocation43_spill] sm:$0xff] }
  0x2c   :  { %6976 = vmatprep.subr.bf16.mxu0 %v6975_v52  ;;  %10027 = vst [vmem:[#allocation55_spill] sm:$0xff] %v8047_v31  ;;  %v10030_v14 = vld [vmem:[#allocation10_spill] sm:$0xff]  ;;  %v10040_v58 = vld [vmem:[#allocation47_spill] sm:$0xff]  ;;  %v10041_v11 = vld [vmem:[#allocation48_spill] sm:$0xff] }
  0x2d   :  { %10028 = vst [vmem:[#allocation56_spill] sm:$0xff] %v8050_v4 }
  0x2e   :  { %6162 = vmatmul.mubr.f32.gmra.mrb[12].mxu0 %v8042_v20 }
  0x2f   :  { %6164 = vmatprep.mubr.f32.mxu0 %v8047_v31 }
  0x32   :  { %6165 = vmatmul.mubr.f32.gmra.mrb[14].mxu0 %v8050_v4 }
  0x33   :  { %6183 = vmatprep.mubr.f32.mxu0 %v7697_v24 }
  0x36   :  { %6184 = vmatmul.mubr.f32.vlgmr.msra.gmra.mrb[0].mxu0 %v7710_v28 }
  0x37   :  { %6978 = vmatpush3.bf16.msra.mxu0 %v6975_v52  ;;  %6186 = vmatprep.mubr.f32.mxu0 %v7732_v39  ;;  %v10036_v52 = vld [vmem:[#allocation30_spill] sm:$0xff] }
  0x38   :  { %6980 = vmatprep.subr.bf16.mxu0 %v6979_v16 }
  0x3a   :  { %6187 = vmatmul.mubr.f32.gmra.mrb[2].mxu0 %v7737_v41 }
  0x3b   :  { %6189 = vmatprep.mubr.f32.mxu0 %v7739_v42  ;;  %6982 = vmatpush3.bf16.msra.mxu0 %v6979_v16 }
  0x3c   :  { %6984 = vmatprep.subr.bf16.mxu0 %v6983_v55 }
  0x3e   :  { %6190 = vmatmul.mubr.f32.gmra.mrb[4].mxu0 %v7763_v51 }
  0x3f   :  { %6192 = vmatprep.mubr.f32.mxu0 %v7831_v33  ;;  %6986 = vmatpush3.bf16.msra.mxu0 %v6983_v55 }
  0x40   :  { %6988 = vmatprep.subr.bf16.mxu0 %v6987_v13 }
  0x42   :  { %6193 = vmatmul.mubr.f32.gmra.mrb[6].mxu0 %v7833_v34 }
  0x43   :  { %6195 = vmatprep.mubr.f32.mxu0 %v7842_v46  ;;  %6990 = vmatpush3.bf16.msra.mxu0 %v6987_v13 }
  0x44   :  { %6992 = vmatprep.subr.bf16.mxu0 %v7671_v15 }
  0x46   :  { %6196 = vmatmul.mubr.f32.gmra.mrb[8].mxu0 %v7854_v61 }
  0x47   :  { %6198 = vmatprep.mubr.f32.mxu0 %v7896_v6 }
  0x4a   :  { %6199 = vmatmul.mubr.f32.gmra.mrb[10].mxu0 %v7926_v56 }
  0x4b   :  { %6201 = vmatprep.mubr.f32.mxu0 %v7941_v26 }
  0x4e   :  { %6202 = vmatmul.mubr.f32.gmra.mrb[12].mxu0 %v7943_v63 }
  0x4f   :  { %6204 = vmatprep.mubr.f32.mxu0 %v7972_v12 }
  0x52   :  { %6205 = vmatmul.mubr.f32.gmra.mrb[14].mxu0 %v7993_v19 }
  0x53   :  { %6223 = vmatprep.mubr.f32.mxu0 %v7721_v32 }
  0x56   :  { %6224 = vmatmul.mubr.f32.vlgmr.msra.gmra.mrb[0].mxu0 %v7728_v36 }
  0x57   :  { %6994 = vmatpush3.bf16.msra.mxu0 %v7671_v15  ;;  %6226 = vmatprep.mubr.f32.mxu0 %v7752_v47 }
  0x58   :  { %6996 = vmatprep.subr.bf16.mxu0 %v7689_v22 }
  0x5a   :  { %6227 = vmatmul.mubr.f32.gmra.mrb[2].mxu0 %v7758_v49 }
  0x5b   :  { %6229 = vmatprep.mubr.f32.mxu0 %v7761_v50  ;;  %6998 = vmatpush3.bf16.msra.mxu0 %v7689_v22 }
  0x5c   :  { %7000 = vmatprep.subr.bf16.mxu0 %v7695_v23 }
  0x5e   :  { %6230 = vmatmul.mubr.f32.gmra.mrb[4].mxu0 %v7780_v59 }
  0x5f   :  { %6232 = vmatprep.mubr.f32.mxu0 %v7849_v54  ;;  %7002 = vmatpush3.bf16.msra.mxu0 %v7695_v23 }
  0x60   :  { %7004 = vmatprep.subr.bf16.mxu0 %v7708_v27 }
  0x62   :  { %6233 = vmatmul.mubr.f32.gmra.mrb[6].mxu0 %v7852_v60 }
  0x63   :  { %6235 = vmatprep.mubr.f32.mxu0 %v7857_v1  ;;  %7006 = vmatpush3.bf16.msra.mxu0 %v7708_v27 }
  0x64   :  { %7008 = vmatprep.subr.bf16.mxu0 %v8022_v62 }
  0x66   :  { %6236 = vmatmul.mubr.f32.gmra.mrb[8].mxu0 %v7877_v21 }
  0x67   :  { %6238 = vmatprep.mubr.f32.mxu0 %v7921_v35 }
  0x6a   :  { %6239 = vmatmul.mubr.f32.gmra.mrb[10].mxu0 %v7939_v5 }
  0x6b   :  { %6241 = vmatprep.mubr.f32.mxu0 %v7967_v48 }
  0x6e   :  { %6242 = vmatmul.mubr.f32.gmra.mrb[12].mxu0 %v7970_v10 }
  0x6f   :  { %6244 = vmatprep.mubr.f32.mxu0 %v7986_v8 }
  0x72   :  { %6245 = vmatmul.mubr.f32.gmra.mrb[14].mxu0 %v8004_v7 }
  0x73   :  { %6263 = vmatprep.mubr.f32.mxu0 %v7735_v40 }
  0x76   :  { %6264 = vmatmul.mubr.f32.vlgmr.msra.gmra.mrb[0].mxu0 %v10029_v0 }
  0x77   :  { %7010 = vmatpush3.bf16.msra.mxu0 %v8022_v62  ;;  %6266 = vmatprep.mubr.f32.mxu0 %v10030_v14  ;;  %v10037_v62 = vld [vmem:[#allocation31_spill] sm:$0xff] }
  0x78   :  { %7012 = vmatprep.subr.bf16.mxu0 %v8031_v9 }
  0x7a   :  { %6267 = vmatmul.mubr.f32.gmra.mrb[2].mxu0 %v10031_v3 }
  0x7b   :  { %6269 = vmatprep.mubr.f32.mxu0 %v10032_v2  ;;  %7014 = vmatpush3.bf16.msra.mxu0 %v8031_v9  ;;  %v10038_v9 = vld [vmem:[#allocation39_spill] sm:$0xff] }
  0x7c   :  { %7016 = vmatprep.subr.bf16.mxu0 %v8037_v29 }
  0x7e   :  { %6270 = vmatmul.mubr.f32.gmra.mrb[4].mxu0 %v10033_v37 }
  0x7f   :  { %6272 = vmatprep.mubr.f32.mxu0 %v10034_v18  ;;  %7018 = vmatpush3.bf16.msra.mxu0 %v8037_v29 }
  0x80   :  { %7020 = vmatprep.subr.bf16.mxu0 %v8039_v30 }
  0x82   :  { %6273 = vmatmul.mubr.f32.gmra.mrb[6].mxu0 %v10035_v38 }
  0x83   :  { %6275 = vmatprep.mubr.f32.mxu0 %v10036_v52  ;;  %7022 = vmatpush3.bf16.msra.mxu0 %v8039_v30 }
  0x84   :  { %7024 = vmatprep.subr.bf16.mxu0 %v7671_v15 }
  0x86   :  { %6276 = vmatmul.mubr.f32.gmra.mrb[8].mxu0 %v10037_v62 }
  0x87   :  { %6278 = vmatprep.mubr.f32.mxu0 %v10038_v9 }
  0x8a   :  { %6279 = vmatmul.mubr.f32.gmra.mrb[10].mxu0 %v10039_v53 }
  0x8b   :  { %6281 = vmatprep.mubr.f32.mxu0 %v10040_v58 }
  0x8e   :  { %6282 = vmatmul.mubr.f32.gmra.mrb[12].mxu0 %v10041_v11 }
  0x8f   :  { %6284 = vmatprep.mubr.f32.mxu0 %v8001_v25 }
  0x92   :  { %6285 = vmatmul.mubr.f32.gmra.mrb[14].mxu0 %v8016_v44 }
  0x93   :  { %6303 = vmatprep.mubr.f32.mxu0 %v7697_v24 }
  0x96   :  { %6304 = vmatmul.mubr.f32.vlgmr.msra.gmra.mrb[0].mxu0 %v7710_v28 }
  0x97   :  { %7026 = vmatpush3.bf16.msra.mxu0 %v7671_v15  ;;  %6306 = vmatprep.mubr.f32.mxu0 %v7732_v39  ;;  %v10042_v15 = vld [vmem:[#allocation11_spill] sm:$0xff] }
  0x98   :  { %7028 = vmatprep.subr.bf16.mxu0 %v7689_v22 }
  0x9a   :  { %6307 = vmatmul.mubr.f32.gmra.mrb[2].mxu0 %v7737_v41 }
  0x9b   :  { %6309 = vmatprep.mubr.f32.mxu0 %v7739_v42  ;;  %7030 = vmatpush3.bf16.msra.mxu0 %v7689_v22 }
  0x9c   :  { %7032 = vmatprep.subr.bf16.mxu0 %v7695_v23 }
  0x9e   :  { %6310 = vmatmul.mubr.f32.gmra.mrb[4].mxu0 %v7763_v51 }
  0x9f   :  { %6312 = vmatprep.mubr.f32.mxu0 %v7831_v33  ;;  %7034 = vmatpush3.bf16.msra.mxu0 %v7695_v23 }
  0xa0   :  { %7036 = vmatprep.subr.bf16.mxu0 %v7708_v27 }
  0xa2   :  { %6313 = vmatmul.mubr.f32.gmra.mrb[6].mxu0 %v7833_v34 }
  0xa3   :  { %6315 = vmatprep.mubr.f32.mxu0 %v7842_v46  ;;  %7038 = vmatpush3.bf16.msra.mxu0 %v7708_v27 }
  0xa6   :  { %6316 = vmatmul.mubr.f32.gmra.mrb[8].mxu0 %v7854_v61 }
  0xa7   :  { %6318 = vmatprep.mubr.f32.mxu0 %v7896_v6 }
  0xaa   :  { %6319 = vmatmul.mubr.f32.gmra.mrb[10].mxu0 %v7926_v56 }
  0xab   :  { %6321 = vmatprep.mubr.f32.mxu0 %v7941_v26 }
  0xae   :  { %6322 = vmatmul.mubr.f32.gmra.mrb[12].mxu0 %v7943_v63 }
  0xaf   :  { %6324 = vmatprep.mubr.f32.mxu0 %v7972_v12 }
  0xb2   :  { %6325 = vmatmul.mubr.f32.gmra.mrb[14].mxu0 %v7993_v19 }
  0xb3   :  { %6343 = vmatprep.mubr.f32.mxu0 %v7697_v24 }
  0xb6   :  { %6344 = vmatmul.mubr.f32.vlgmr.msra.gmra.mrb[0].mxu0 %v7710_v28 }
  0xb7   :  { %6346 = vmatprep.mubr.f32.mxu0 %v7732_v39 }
  0xba   :  { %6347 = vmatmul.mubr.f32.gmra.mrb[2].mxu0 %v7737_v41 }
  0xbb   :  { %6349 = vmatprep.mubr.f32.mxu0 %v7739_v42 }
  0xbe   :  { %6350 = vmatmul.mubr.f32.gmra.mrb[4].mxu0 %v7763_v51 }
  0xbf   :  { %6352 = vmatprep.mubr.f32.mxu0 %v7831_v33 }
  0xc2   :  { %6353 = vmatmul.mubr.f32.gmra.mrb[6].mxu0 %v7833_v34 }
  0xc3   :  { %6355 = vmatprep.mubr.f32.mxu0 %v7842_v46 }
  0xc6   :  { %6356 = vmatmul.mubr.f32.gmra.mrb[8].mxu0 %v7854_v61 }
  0xc7   :  { %6358 = vmatprep.mubr.f32.mxu0 %v7896_v6 }
  0xca   :  { %6359 = vmatmul.mubr.f32.gmra.mrb[10].mxu0 %v7926_v56 }
  0xcb   :  { %6361 = vmatprep.mubr.f32.mxu0 %v7941_v26 }
  0xce   :  { %6362 = vmatmul.mubr.f32.gmra.mrb[12].mxu0 %v7943_v63 }
  0xcf   :  { %6364 = vmatprep.mubr.f32.mxu0 %v7972_v12 }
  0xd2   :  { %6365 = vmatmul.mubr.f32.gmra.mrb[14].mxu0 %v7993_v19 }
  0xd3   :  { %6719 = vmatprep.mubr.f32.mxu0 %v10042_v15 }
 0x189   :  { %v8165_v22 = vpop.f32.mrb[0].mxu0 }
 0x18a   :  { %v1308_v23 = vsel %vm1306_vm1, %v8165_v22, 0.0  ;;  %v1345_v27 = vmul.f32 %v8165_v22, %v8165_v22  ;;  %v8171_v29 = vpop.f32.mrb[1].mxu0 }
 0x18b   :  { %v1307_v30 = vsel %vm1306_vm1, %v8171_v29, 0.0  ;;  %v1344_v43 = vmul.f32 %v8171_v29, %v8171_v29 }
 0x18c   :  { %v1361_v16 = vsel %vm1306_vm1, %v1345_v27, 0.0  ;;  %v1309_v55 = vadd.f32 %v1308_v23, %v1307_v30 }
 0x18d   :  { %v1360_v13 = vsel %vm1306_vm1, %v1344_v43, 0.0  ;;  %v8179_v15 = vpop.f32.mrb[2].mxu0 }
 0x18e   :  { %v1362_v4 = vadd.f32 %v1361_v16, %v1360_v13  ;;  %v8181_v31 = vpop.f32.mrb[3].mxu0  ;;  %v1347_v44 = vmul.f32 %v8179_v15, %v8179_v15  ;;  %v1312_v23 = vsel %vm1306_vm1, %v8179_v15, 0.0 }
 0x18f   :  { %v1310_v25 = vsel %vm1306_vm1, %v8181_v31, 0.0  ;;  %v1346_v11 = vmul.f32 %v8181_v31, %v8181_v31 }
 0x190   :  { %v1311_v58 = vadd.f32 %v1310_v25, %v1309_v55  ;;  %v1365_v53 = vsel %vm1306_vm1, %v1347_v44, 0.0 }
 0x191   :  { %v1363_v27 = vsel %vm1306_vm1, %v1346_v11, 0.0  ;;  %v8192_v30 = vpop.f32.mrb[4].mxu0 }
 0x192   :  { %v1364_v43 = vadd.f32 %v1363_v27, %v1362_v4  ;;  %v8194_v16 = vpop.f32.mrb[5].mxu0  ;;  %v1313_v13 = vadd.f32 %v1312_v23, %v1311_v58  ;;  %v1349_v9 = vmul.f32 %v8192_v30, %v8192_v30  ;;  %v1316_v11 = vsel %vm1306_vm1, %v8192_v30, 0.0 }
 0x193   :  { %v1314_v62 = vsel %vm1306_vm1, %v8194_v16, 0.0  ;;  %v1348_v25 = vmul.f32 %v8194_v16, %v8194_v16 }
 0x194   :  { %v1315_v55 = vadd.f32 %v1314_v62, %v1313_v13  ;;  %v1366_v52 = vadd.f32 %v1365_v53, %v1364_v43  ;;  %v1369_v38 = vsel %vm1306_vm1, %v1349_v9, 0.0 }
 0x195   :  { %v1367_v4 = vsel %vm1306_vm1, %v1348_v25, 0.0  ;;  %v8206_v27 = vpop.f32.mrb[6].mxu0 }
 0x196   :  { %v1368_v58 = vadd.f32 %v1367_v4, %v1366_v52  ;;  %v8208_v44 = vpop.f32.mrb[7].mxu0  ;;  %v1317_v23 = vadd.f32 %v1316_v11, %v1315_v55  ;;  %v1351_v18 = vmul.f32 %v8206_v27, %v8206_v27  ;;  %v1320_v25 = vsel %vm1306_vm1, %v8206_v27, 0.0 }
 0x197   :  { %v1318_v62 = vsel %vm1306_vm1, %v8208_v44, 0.0  ;;  %v1350_v53 = vmul.f32 %v8208_v44, %v8208_v44 }
 0x198   :  { %v1319_v43 = vadd.f32 %v1318_v62, %v1317_v23  ;;  %v1370_v13 = vadd.f32 %v1369_v38, %v1368_v58  ;;  %v1373_v37 = vsel %vm1306_vm1, %v1351_v18, 0.0 }
 0x199   :  { %v1371_v52 = vsel %vm1306_vm1, %v1350_v53, 0.0  ;;  %v8220_v4 = vpop.f32.mrb[8].mxu0 }
 0x19a   :  { %v1372_v55 = vadd.f32 %v1371_v52, %v1370_v13  ;;  %v8222_v9 = vpop.f32.mrb[9].mxu0  ;;  %v1321_v11 = vadd.f32 %v1320_v25, %v1319_v43  ;;  %v1353_v2 = vmul.f32 %v8220_v4, %v8220_v4  ;;  %v1324_v53 = vsel %vm1306_vm1, %v8220_v4, 0.0 }
 0x19b   :  { %v1322_v23 = vsel %vm1306_vm1, %v8222_v9, 0.0  ;;  %v1352_v38 = vmul.f32 %v8222_v9, %v8222_v9 }
 0x19c   :  { %v1323_v58 = vadd.f32 %v1322_v23, %v1321_v11  ;;  %v1374_v62 = vadd.f32 %v1373_v37, %v1372_v55  ;;  %v1377_v3 = vsel %vm1306_vm1, %v1353_v2, 0.0 }
 0x19d   :  { %v1375_v13 = vsel %vm1306_vm1, %v1352_v38, 0.0  ;;  %v8234_v52 = vpop.f32.mrb[10].mxu0 }
 0x19e   :  { %v1376_v43 = vadd.f32 %v1375_v13, %v1374_v62  ;;  %v8236_v18 = vpop.f32.mrb[11].mxu0  ;;  %v1325_v25 = vadd.f32 %v1324_v53, %v1323_v58  ;;  %v1355_v14 = vmul.f32 %v8234_v52, %v8234_v52  ;;  %v1328_v38 = vsel %vm1306_vm1, %v8234_v52, 0.0 }
 0x19f   :  { %v1326_v11 = vsel %vm1306_vm1, %v8236_v18, 0.0  ;;  %v1354_v37 = vmul.f32 %v8236_v18, %v8236_v18 }
 0x1a0   :  { %v1327_v55 = vadd.f32 %v1326_v11, %v1325_v25  ;;  %v1378_v23 = vadd.f32 %v1377_v3, %v1376_v43  ;;  %v1381_v0 = vsel %vm1306_vm1, %v1355_v14, 0.0 }
 0x1a1   :  { %v1379_v62 = vsel %vm1306_vm1, %v1354_v37, 0.0  ;;  %v8248_v13 = vpop.f32.mrb[12].mxu0 }
 0x1a2   :  { %v1380_v58 = vadd.f32 %v1379_v62, %v1378_v23  ;;  %v8250_v2 = vpop.f32.mrb[13].mxu0  ;;  %v1329_v53 = vadd.f32 %v1328_v38, %v1327_v55  ;;  %v1357_v40 = vmul.f32 %v8248_v13, %v8248_v13  ;;  %v1332_v37 = vsel %vm1306_vm1, %v8248_v13, 0.0 }
 0x1a3   :  { %v1330_v25 = vsel %vm1306_vm1, %v8250_v2, 0.0  ;;  %v1356_v3 = vmul.f32 %v8250_v2, %v8250_v2 }
 0x1a4   :  { %v1331_v43 = vadd.f32 %v1330_v25, %v1329_v53  ;;  %v1382_v11 = vadd.f32 %v1381_v0, %v1380_v58  ;;  %v1385_v7 = vsel %vm1306_vm1, %v1357_v40, 0.0 }
 0x1a5   :  { %v1383_v23 = vsel %vm1306_vm1, %v1356_v3, 0.0  ;;  %v8262_v62 = vpop.f32.mrb[14].mxu0 }
 0x1a6   :  { %v1384_v55 = vadd.f32 %v1383_v23, %v1382_v11  ;;  %v8264_v14 = vpop.f32.mrb[15].mxu0  ;;  %v1333_v38 = vadd.f32 %v1332_v37, %v1331_v43  ;;  %v1359_v8 = vmul.f32 %v8262_v62, %v8262_v62  ;;  %v1336_v3 = vsel %vm1306_vm1, %v8262_v62, 0.0 }
 0x1a7   :  { %v1334_v53 = vsel %vm1306_vm1, %v8264_v14, 0.0  ;;  %v1358_v0 = vmul.f32 %v8264_v14, %v8264_v14 }
 0x1a8   :  { %v1335_v58 = vadd.f32 %v1334_v53, %v1333_v38  ;;  %v1386_v25 = vadd.f32 %v1385_v7, %v1384_v55  ;;  %v1389_v40 = vsel %vm1306_vm1, %v1359_v8, 0.0 }
 0x1a9   :  { %v1387_v11 = vsel %vm1306_vm1, %v1358_v0, 0.0 }
 0x1aa   :  { %v1337_v23 = vadd.f32 %v1336_v3, %v1335_v58  ;;  %v1388_v43 = vadd.f32 %v1387_v11, %v1386_v25 }
 0x1ac   :  { %v1338_v37 = vrot.slane %v1337_v23, 4  ;;  %v1390_v10 = vadd.f32 %v1389_v40, %v1388_v43 }
 0x1ae   :  { %v1339_v48 = vadd.f32 %v1338_v37, %v1337_v23  ;;  %v1391_v5 = vrot.slane %v1390_v10, 4 }
 0x1b0   :  { %v1340_v35 = vrot.slane %v1339_v48, 2  ;;  %v1392_v21 = vadd.f32 %v1391_v5, %v1390_v10 }
 0x1b2   :  { %v1341_v1 = vadd.f32 %v1340_v35, %v1339_v48  ;;  %v1393_v60 = vrot.slane %v1392_v21, 2 }
 0x1b4   :  { %v1342_v54 = vrot.slane %v1341_v1, 1  ;;  %v1394_v38 = vadd.f32 %v1393_v60, %v1392_v21 }
 0x1b6   :  { %v1343_v7 = vadd.f32 %v1342_v54, %v1341_v1  ;;  %v1395_v55 = vrot.slane %v1394_v38, 1 }
 0x1b8   :  { %1407 = vrot.lane.b32.xlu1 %v1343_v7, %s7543_s0  ;;  %1398 = vrot.lane.b32.xlu0 %v1343_v7, %s7544_s27  ;;  %v1396_v53 = vadd.f32 %v1395_v55, %v1394_v38  ;;  %v1588_v55 = vld [vmem:[%s9808_s5 + $0x8] sm:$0xff] }
 0x1bc   :  { %1411 = vrot.lane.b32.xlu1 %v1396_v53, %s7543_s0  ;;  %1403 = vrot.lane.b32.xlu0 %v1396_v53, %s7544_s27 }
 0x1c0   :  { %1419 = vrot.lane.b32.xlu1 %v1396_v53, %s7545_s28  ;;  %1415 = vrot.lane.b32.xlu0 %v1343_v7, %s7545_s28 }
 0x22a   :  { %v1408_v5 = vpop.permute.xlu1 %1407  ;;  %v1399_v60 = vpop.permute.xlu0 %1398 }
 0x22b   :  { %v1401_v54 = vadd.f32 %v1399_v60, %v1343_v7  ;;  %v1587_v7 = vld [vmem:[%s9808_s5] sm:$0xff] }
 0x22d   :  { %v1410_v48 = vadd.f32 %v1408_v5, %v1401_v54  ;;  %v1641_v5 = vand.u32 4294901760, %v1588_v55 }
 0x22e   :  { %v1412_v1 = vpop.permute.xlu1 %1411  ;;  %v1404_v21 = vpop.permute.xlu0 %1403 }
 0x22f   :  { %v1406_v10 = vadd.f32 %v1404_v21, %v1396_v53  ;;  %v1638_v53 = vand.u32 4294901760, %v1587_v7 }
 0x231   :  { %v1414_v35 = vadd.f32 %v1412_v1, %v1406_v10  ;;  %v8294_v60 = vpack.c.bf16 %v1641_v5, %v1638_v53  ;;  %v8299_v54 = vsub.f32 %v1587_v7, %v1638_v53  ;;  %v8301_v1 = vsub.f32 %v1588_v55, %v1641_v5  ;;  %v1304_v55 = vld [vmem:[%s9809_s3] sm:$0x1] }
 0x232   :  { %v1420_v8 = vpop.permute.xlu1 %1419  ;;  %v1416_v0 = vpop.permute.xlu0 %1415 }
 0x233   :  { %v1422_v58 = vadd.f32 %v1420_v8, %v1414_v35  ;;  %v1418_v25 = vadd.f32 %v1416_v0, %v1410_v48  ;;  %7040 = vmatprep.subr.bf16.mxu1 %v8294_v60  ;;  %v9881_v21 = vand.u32 4294901760, %v8299_v54  ;;  %v9880_v10 = vand.u32 4294901760, %v8301_v1 }
 0x234   :  { %7042 = vmatpush3.bf16.msra.mxu1 %v8294_v60 }
 0x235   :  { %v1423_v3 = vmul.f32 0.001953125, %v1418_v25  ;;  %v1424_v11 = vmul.f32 0.001953125, %v1422_v58  ;;  %v1868_v35 = vsub.f32 %v8299_v54, %v9881_v21  ;;  %v1875_v48 = vsub.f32 %v8301_v1, %v9880_v10  ;;  %v1305_v21 = vld [vmem:[%s9810_s4] sm:$0x1] }
 0x236   :  { %v8316_v25 = vpack.c.bf16 %v8301_v1, %v8299_v54 }
 0x237   :  { %v1425_v23 = vmul.f32 %v1423_v3, %v1423_v3  ;;  %1431 = vrot.lane.b32.xlu0 %v1423_v3, %s7546_s29  ;;  %v1869_v8 = vand.u32 4294901760, %v1868_v35  ;;  %v1876_v0 = vand.u32 4294901760, %v1875_v48 }
 0x239   :  { %v1426_v43 = vsub.f32 %v1424_v11, %v1425_v23  ;;  %v8311_v58 = vpack.c.bf16 %v1876_v0, %v1869_v8  ;;  %v1463_v23 = vlaneseq }
 0x23b   :  { %v1427_v40 = vmax.f32 %v1426_v43, 0.0  ;;  %7044 = vmatprep.subr.bf16.mxu1 %v8311_v58 }
 0x23d   :  { %v1428_v37 = vadd.f32 1e-05, %v1427_v40 }
 0x23f   :  { %7537 = vrsqrt.f32 %v1428_v37  ;;  %v1464_v37 = vshrl.u32 %v1463_v23, 7 }
 0x241   :  { %v8322_v53 = vsub.s32 0, %v1464_v37 }
 0x243   :  { %10043 = vst [vmem:[#allocation11_spill] sm:$0xff] %v8322_v53 }
 0x249   :  { %v7538_v38 = vpop.eup %7537 }
 0x24a   :  { %1450 = vrot.lane.b32.xlu1 %v7538_v38, %s7547_s30  ;;  %1447 = vrot.lane.b32.xlu0 %v7538_v38, %s7546_s29 }
 0x24e   :  { %1453 = vrot.lane.b32.xlu1 %v7538_v38, %s7548_s2  ;;  %1434 = vrot.lane.b32.xlu0 %v1423_v3, %s7547_s30 }
 0x252   :  { %1437 = vrot.lane.b32.xlu1 %v1423_v3, %s7548_s2 }
 0x2a9   :  { %v1432_v11 = vpop.permute.xlu0 %1431 }
 0x2aa   :  { %v1441_v10 = vsel %vm1440_vm2, %v1423_v3, %v1432_v11 }
 0x2bc   :  { %v1451_v43 = vpop.permute.xlu1 %1450  ;;  %v1448_v40 = vpop.permute.xlu0 %1447 }
 0x2bd   :  { %v1456_v7 = vsel %vm1440_vm2, %v7538_v38, %v1448_v40 }
 0x2be   :  { %v1457_v35 = vsel %vm1442_vm3, %v1456_v7, %v1451_v43  ;;  %v8337_v7 = vstv %s9811_s13 }
 0x2bf   :  { %10044 = vst [vmem:[#allocation57_spill] sm:$0xff] %v8337_v7 }
 0x2c0   :  { %v1454_v5 = vpop.permute.xlu1 %1453  ;;  %v1435_v8 = vpop.permute.xlu0 %1434 }
 0x2c1   :  { %v1458_v48 = vsel %vm1444_vm4, %v1457_v35, %v1454_v5  ;;  %v1443_v38 = vsel %vm1442_vm3, %v1441_v10, %v1435_v8 }
 0x2c2   :  { %v1459_v0 = vmul.f32 %v1458_v48, %v1304_v55 }
 0x2c4   :  { %v1466_v23 = vrot.slane %v1459_v0, %v8322_v53  ;;  %v1438_v40 = vpop.permute.xlu1 %1437 }
 0x2c5   :  { %v1445_v37 = vsel %vm1444_vm4, %v1443_v38, %v1438_v40  ;;  %v1556_v38 = vld [vmem:[%s9812_s1 + $0x8] sm:$0xff] }
 0x2c6   :  { %v1460_v59 = vmul.f32 %v1459_v0, %v1445_v37  ;;  %v1468_v43 = vmul.f32 %v1466_v23, %v8171_v29  ;;  %v1469_v3 = vmul.f32 %v8165_v22, %v1466_v23  ;;  %v1470_v10 = vmul.f32 %v1466_v23, %v8181_v31  ;;  %v1557_v37 = vld [vmem:[%s9812_s1 + $0x10] sm:$0xff] }
 0x2c7   :  { %v1471_v55 = vmul.f32 %v8179_v15, %v1466_v23  ;;  %v1472_v5 = vmul.f32 %v1466_v23, %v8194_v16  ;;  %v1473_v35 = vmul.f32 %v8192_v30, %v1466_v23  ;;  %v1474_v48 = vmul.f32 %v1466_v23, %v8208_v44 }
 0x2c8   :  { %v1461_v11 = vsub.f32 %v1305_v21, %v1460_v59  ;;  %v1475_v29 = vmul.f32 %v8206_v27, %v1466_v23  ;;  %v8347_v8 = vmul.f32 %v1466_v23, %v8222_v9  ;;  %v8353_v59 = vmul.f32 %v8220_v4, %v1466_v23  ;;  %v1555_v21 = vld [vmem:[%s9812_s1] sm:$0xff] }
 0x2c9   :  { %v8356_v31 = vmul.f32 %v1466_v23, %v8236_v18  ;;  %v8359_v22 = vmul.f32 %v8234_v52, %v1466_v23  ;;  %v8362_v15 = vmul.f32 %v1466_v23, %v8250_v2  ;;  %v8365_v30 = vmul.f32 %v8248_v13, %v1466_v23 }
 0x2ca   :  { %v8350_v0 = vrot.slane %v1461_v11, %v8322_v53  ;;  %v8368_v16 = vmul.f32 %v1466_v23, %v8264_v14  ;;  %v8371_v27 = vmul.f32 %v8262_v62, %v1466_v23 }
 0x2cc   :  { %v1490_v44 = vadd.f32 %v8350_v0, %v1468_v43  ;;  %v1491_v4 = vadd.f32 %v8350_v0, %v1469_v3  ;;  %v1492_v9 = vadd.f32 %v8350_v0, %v1470_v10  ;;  %v1493_v52 = vadd.f32 %v8350_v0, %v1471_v55  ;;  %v1558_v3 = vld [vmem:[%s9812_s1 + $0x18] sm:$0xff] }
 0x2cd   :  { %v1494_v18 = vadd.f32 %v8350_v0, %v1472_v5  ;;  %v1495_v2 = vadd.f32 %v8350_v0, %v1473_v35  ;;  %v1496_v13 = vadd.f32 %v8350_v0, %v1474_v48  ;;  %v8381_v14 = vadd.f32 %v8350_v0, %v1475_v29  ;;  %v1559_v5 = vld [vmem:[%s9812_s1 + $0x20] sm:$0xff] }
 0x2ce   :  { %vm1506_vm5 = vcmp.ge.f32.partialorder %v1490_v44, 0.0  ;;  %v1523_v62 = vmul.f32 %v8337_v7, %v1490_v44  ;;  %vm1507_vm6 = vcmp.ge.f32.partialorder %v1491_v4, 0.0  ;;  %v1524_v23 = vmul.f32 %v8337_v7, %v1491_v4 }
 0x2cf   :  { %vm1508_vm7 = vcmp.ge.f32.partialorder %v1492_v9, 0.0  ;;  %v1525_v40 = vmul.f32 %v8337_v7, %v1492_v9  ;;  %vm1509_vm8 = vcmp.ge.f32.partialorder %v1493_v52, 0.0  ;;  %v1526_v43 = vmul.f32 %v8337_v7, %v1493_v52 }
 0x2d0   :  { %v1539_v11 = vsel %vm1506_vm5, %v1490_v44, %v1523_v62  ;;  %v1540_v10 = vsel %vm1507_vm6, %v1491_v4, %v1524_v23  ;;  %vm1510_vm9 = vcmp.ge.f32.partialorder %v1494_v18, 0.0  ;;  %v1527_v55 = vmul.f32 %v8337_v7, %v1494_v18  ;;  %v1560_v23 = vld [vmem:[%s9812_s1 + $0x28] sm:$0xff] }
 0x2d1   :  { %v1571_v35 = vmul.f32 %v1555_v21, %v1539_v11  ;;  %v1572_v48 = vmul.f32 %v1556_v38, %v1540_v10  ;;  %v1541_v29 = vsel %vm1508_vm7, %v1492_v9, %v1525_v40  ;;  %v1542_v50 = vsel %vm1509_vm8, %v1493_v52, %v1526_v43 }
 0x2d2   :  { %v1573_v49 = vmul.f32 %v1557_v37, %v1541_v29  ;;  %v1574_v47 = vmul.f32 %v1558_v3, %v1542_v50  ;;  %v1543_v36 = vsel %vm1510_vm9, %v1494_v18, %v1527_v55  ;;  %vm1511_vm10 = vcmp.ge.f32.partialorder %v1495_v2, 0.0 }
 0x2d3   :  { %v1590_v32 = vsel %vm1306_vm1, %v1571_v35, 0  ;;  %v1593_v44 = vsel %vm1306_vm1, %v1572_v48, 0  ;;  %v1575_v4 = vmul.f32 %v1559_v5, %v1543_v36  ;;  %v1528_v62 = vmul.f32 %v8337_v7, %v1495_v2 }
 0x2d4   :  { %v8409_v19 = vand.u32 4294901760, %v1590_v32  ;;  %v8411_v21 = vand.u32 4294901760, %v1593_v44  ;;  %v1596_v9 = vsel %vm1306_vm1, %v1573_v49, 0  ;;  %v1599_v50 = vsel %vm1306_vm1, %v1574_v47, 0 }
 0x2d5   :  { %v8415_v52 = vand.u32 4294901760, %v1596_v9  ;;  %v8417_v18 = vand.u32 4294901760, %v1599_v50  ;;  %v1602_v36 = vsel %vm1306_vm1, %v1575_v4, 0  ;;  %v1544_v38 = vsel %vm1511_vm10, %v1495_v2, %v1528_v62 }
 0x2d6   :  { %v8421_v40 = vsub.f32 %v1590_v32, %v8409_v19  ;;  %v8424_v37 = vsub.f32 %v1593_v44, %v8411_v21  ;;  %v8426_v43 = vand.u32 4294901760, %v1602_v36  ;;  %v1576_v3 = vmul.f32 %v1560_v23, %v1544_v38  ;;  %v1561_v32 = vld [vmem:[%s9812_s1 + $0x30] sm:$0xff] }
 0x2d7   :  { %v8429_v49 = vsub.f32 %v1596_v9, %v8415_v52  ;;  %v8432_v47 = vsub.f32 %v1599_v50, %v8417_v18  ;;  %vm1512_vm11 = vcmp.ge.f32.partialorder %v1496_v13, 0.0  ;;  %v1529_v11 = vmul.f32 %v8337_v7, %v1496_v13 }
 0x2d8   :  { %v9892_v2 = vand.u32 4294901760, %v8421_v40  ;;  %v9890_v10 = vand.u32 4294901760, %v8424_v37  ;;  %v8441_v55 = vsub.f32 %v1602_v36, %v8426_v43  ;;  %v1605_v5 = vsel %vm1306_vm1, %v1576_v3, 0 }
 0x2d9   :  { %v9891_v35 = vand.u32 4294901760, %v8429_v49  ;;  %v9893_v48 = vand.u32 4294901760, %v8432_v47  ;;  %v8446_v29 = vand.u32 4294901760, %v1605_v5  ;;  %v1545_v44 = vsel %vm1512_vm11, %v1496_v13, %v1529_v11 }
 0x2da   :  { %v1707_v4 = vsub.f32 %v8421_v40, %v9892_v2  ;;  %v1717_v62 = vsub.f32 %v8424_v37, %v9890_v10  ;;  %v9895_v23 = vand.u32 4294901760, %v8441_v55  ;;  %v1577_v9 = vmul.f32 %v1561_v32, %v1545_v44 }
 0x2db   :  { %v1727_v50 = vsub.f32 %v8429_v49, %v9891_v35  ;;  %v1737_v36 = vsub.f32 %v8432_v47, %v9893_v48  ;;  %v8462_v13 = vsub.f32 %v1605_v5, %v8446_v29  ;;  %vm1513_vm12 = vcmp.ge.f32.partialorder %v8381_v14, 0.0 }
 0x2dc   :  { %v1708_v38 = vand.u32 4294901760, %v1707_v4  ;;  %v1718_v3 = vand.u32 4294901760, %v1717_v62  ;;  %v1747_v11 = vsub.f32 %v8441_v55, %v9895_v23  ;;  %v1608_v32 = vsel %vm1306_vm1, %v1577_v9, 0  ;;  %v1562_v4 = vld [vmem:[%s9812_s1 + $0x38] sm:$0xff] }
 0x2dd   :  { %v1728_v44 = vand.u32 4294901760, %v1727_v50  ;;  %v1738_v10 = vand.u32 4294901760, %v1737_v36  ;;  %v9894_v35 = vand.u32 4294901760, %v8462_v13  ;;  %v8470_v2 = vand.u32 4294901760, %v1608_v32 }
 0x2de   :  { %6371 = vmatprep.mubr.f32.mxu1 %v1708_v38  ;;  %v1748_v48 = vand.u32 4294901760, %v1747_v11  ;;  %v1530_v5 = vmul.f32 %v8337_v7, %v8381_v14  ;;  %v1498_v62 = vadd.f32 %v8350_v0, %v8347_v8  ;;  %v1499_v9 = vadd.f32 %v8350_v0, %v8353_v59 }
 0x2df   :  { %6372 = vmatmul.mubr.f32.vlgmr.msra.gmra.mrb[0].mxu1 %v1718_v3  ;;  %v1757_v50 = vsub.f32 %v8462_v13, %v9894_v35  ;;  %v8485_v36 = vsub.f32 %v1608_v32, %v8470_v2  ;;  %v1500_v38 = vadd.f32 %v8350_v0, %v8356_v31  ;;  %v1501_v11 = vadd.f32 %v8350_v0, %v8359_v22  ;;  %v1563_v3 = vld [vmem:[%s9812_s1 + $0x40] sm:$0xff] }
 0x2e0   :  { %6374 = vmatprep.mubr.f32.mxu1 %v1728_v44  ;;  %7046 = vmatpush3.bf16.msra.mxu1 %v8311_v58  ;;  %v1546_v8 = vsel %vm1513_vm12, %v8381_v14, %v1530_v5  ;;  %vm1514_vm13 = vcmp.ge.f32.partialorder %v1498_v62, 0.0  ;;  %v1531_v59 = vmul.f32 %v8337_v7, %v1498_v62  ;;  %vm1515_vm14 = vcmp.ge.f32.partialorder %v1499_v9, 0.0  ;;  %v1564_v58 = vld [vmem:[%s9812_s1 + $0x48] sm:$0xff]  ;;  %v1565_v5 = vld [vmem:[%s9812_s1 + $0x50] sm:$0xff] }
 0x2e1   :  { %v1758_v32 = vand.u32 4294901760, %v1757_v50  ;;  %v9904_v31 = vand.u32 4294901760, %v8485_v36  ;;  %v1578_v35 = vmul.f32 %v1562_v4, %v1546_v8  ;;  %v1532_v22 = vmul.f32 %v8337_v7, %v1499_v9  ;;  %7048 = vmatprep.subr.bf16.mxu1 %v8316_v25 }
 0x2e2   :  { %v1547_v14 = vsel %vm1514_vm13, %v1498_v62, %v1531_v59  ;;  %vm1516_vm15 = vcmp.ge.f32.partialorder %v1500_v38, 0.0  ;;  %v1533_v44 = vmul.f32 %v8337_v7, %v1500_v38  ;;  %vm1517_vm0 = vcmp.ge.f32.partialorder %v1501_v11, 0.0 }
 0x2e3   :  { %6375 = vmatmul.mubr.f32.gmra.mrb[2].mxu1 %v1738_v10  ;;  %v1767_v4 = vsub.f32 %v8485_v36, %v9904_v31  ;;  %v1611_v50 = vsel %vm1306_vm1, %v1578_v35, 0  ;;  %v1579_v8 = vmul.f32 %v1563_v3, %v1547_v14  ;;  %v1548_v23 = vsel %vm1515_vm14, %v1499_v9, %v1532_v22  ;;  %v1566_v10 = vld [vmem:[%s9812_s1 + $0x58] sm:$0xff] }
 0x2e4   :  { %6377 = vmatprep.mubr.f32.mxu1 %v1748_v48  ;;  %v8514_v62 = vand.u32 4294901760, %v1611_v50  ;;  %v1580_v59 = vmul.f32 %v1564_v58, %v1548_v23  ;;  %v1549_v12 = vsel %vm1516_vm15, %v1500_v38, %v1533_v44  ;;  %v1534_v63 = vmul.f32 %v8337_v7, %v1501_v11 }
 0x2e5   :  { %v1768_v26 = vand.u32 4294901760, %v1767_v4  ;;  %v1614_v56 = vsel %vm1306_vm1, %v1579_v8, 0  ;;  %v1581_v31 = vmul.f32 %v1565_v5, %v1549_v12  ;;  %v1502_v35 = vadd.f32 %v8350_v0, %v8362_v15 }
 0x2e6   :  { %v8524_v9 = vsub.f32 %v1611_v50, %v8514_v62  ;;  %v8526_v48 = vand.u32 4294901760, %v1614_v56  ;;  %v1617_v23 = vsel %vm1306_vm1, %v1580_v59, 0  ;;  %v1550_v38 = vsel %vm1517_vm0, %v1501_v11, %v1534_v63  ;;  %v1567_v50 = vld [vmem:[%s9812_s1 + $0x60] sm:$0xff]  ;;  %v1568_v59 = vld [vmem:[%s9812_s1 + $0x68] sm:$0xff] }
 0x2e7   :  { %6378 = vmatmul.mubr.f32.gmra.mrb[4].mxu1 %v1758_v32  ;;  %v8530_v3 = vand.u32 4294901760, %v1617_v23  ;;  %v1620_v22 = vsel %vm1306_vm1, %v1581_v31, 0  ;;  %v1582_v58 = vmul.f32 %v1566_v10, %v1550_v38  ;;  %vm1518_vm5 = vcmp.ge.f32.partialorder %v1502_v35, 0.0 }
 0x2e8   :  { %6380 = vmatprep.mubr.f32.mxu1 %v1768_v26  ;;  %v9905_v12 = vand.u32 4294901760, %v8524_v9  ;;  %v8535_v15 = vsub.f32 %v1614_v56, %v8526_v48  ;;  %v8537_v14 = vand.u32 4294901760, %v1620_v22  ;;  %v1535_v44 = vmul.f32 %v8337_v7, %v1502_v35 }
 0x2e9   :  { %v8541_v5 = vsub.f32 %v1617_v23, %v8530_v3  ;;  %v1623_v63 = vsel %vm1306_vm1, %v1582_v58, 0  ;;  %v1503_v11 = vadd.f32 %v8350_v0, %v8365_v30  ;;  %v1504_v26 = vadd.f32 %v8350_v0, %v8368_v16 }
 0x2ea   :  { %v1777_v56 = vsub.f32 %v8524_v9, %v9905_v12  ;;  %v9906_v32 = vand.u32 4294901760, %v8535_v15  ;;  %v8553_v31 = vsub.f32 %v1620_v22, %v8537_v14  ;;  %v8555_v4 = vand.u32 4294901760, %v1623_v63 }
 0x2eb   :  { %v9915_v30 = vand.u32 4294901760, %v8541_v5  ;;  %v1551_v8 = vsel %vm1518_vm5, %v1502_v35, %v1535_v44  ;;  %vm1519_vm6 = vcmp.ge.f32.partialorder %v1503_v11, 0.0  ;;  %v1536_v16 = vmul.f32 %v8337_v7, %v1503_v11 }
 0x2ec   :  { %v1778_v10 = vand.u32 4294901760, %v1777_v56  ;;  %v1787_v23 = vsub.f32 %v8535_v15, %v9906_v32  ;;  %v9914_v38 = vand.u32 4294901760, %v8553_v31  ;;  %v8571_v22 = vsub.f32 %v1623_v63, %v8555_v4 }
 0x2ed   :  { %v1797_v35 = vsub.f32 %v8541_v5, %v9915_v30  ;;  %v1583_v58 = vmul.f32 %v1567_v50, %v1551_v8  ;;  %v1552_v44 = vsel %vm1519_vm6, %v1503_v11, %v1536_v16  ;;  %vm1520_vm7 = vcmp.ge.f32.partialorder %v1504_v26, 0.0  ;;  %v1569_v50 = vld [vmem:[%s9812_s1 + $0x70] sm:$0xff] }
 0x2ee   :  { %6381 = vmatmul.mubr.f32.gmra.mrb[6].mxu1 %v1778_v10  ;;  %v1788_v12 = vand.u32 4294901760, %v1787_v23  ;;  %v1807_v56 = vsub.f32 %v8553_v31, %v9914_v38  ;;  %v9913_v32 = vand.u32 4294901760, %v8571_v22  ;;  %v1584_v6 = vmul.f32 %v1568_v59, %v1552_v44 }
 0x2ef   :  { %v1798_v61 = vand.u32 4294901760, %v1797_v35  ;;  %v1626_v63 = vsel %vm1306_vm1, %v1583_v58, 0  ;;  %v1537_v46 = vmul.f32 %v8337_v7, %v1504_v26  ;;  %v1505_v11 = vadd.f32 %v8350_v0, %v8371_v27  ;;  %v1570_v0 = vld [vmem:[%s9812_s1 + $0x78] sm:$0xff]  ;;  %s7550_s1 = smov 104  }
 0x2f0   :  { %6383 = vmatprep.mubr.f32.mxu1 %v1788_v12  ;;  %v1808_v8 = vand.u32 4294901760, %v1807_v56  ;;  %v1817_v16 = vsub.f32 %v8571_v22, %v9913_v32  ;;  %v8590_v10 = vand.u32 4294901760, %v1626_v63  ;;  %v1629_v59 = vsel %vm1306_vm1, %v1584_v6, 0 }
 0x2f1   :  { %v8593_v23 = vand.u32 4294901760, %v1629_v59  ;;  %v1553_v35 = vsel %vm1520_vm7, %v1504_v26, %v1537_v46  ;;  %vm1521_vm8 = vcmp.ge.f32.partialorder %v1505_v11, 0.0  ;;  %v1538_v58 = vmul.f32 %v8337_v7, %v1505_v11 }
 0x2f2   :  { %6384 = vmatmul.mubr.f32.gmra.mrb[8].mxu1 %v1798_v61  ;;  %v8601_v27 = vsub.f32 %v1626_v63, %v8590_v10  ;;  %v1585_v12 = vmul.f32 %v1569_v50, %v1553_v35  ;;  %v1818_v56 = vand.u32 4294901760, %v1817_v16 }
 0x2f3   :  { %6386 = vmatprep.mubr.f32.mxu1 %v1808_v8  ;;  %v8604_v44 = vsub.f32 %v1629_v59, %v8593_v23  ;;  %v1554_v6 = vsel %vm1521_vm8, %v1505_v11, %v1538_v58 }
 0x2f4   :  { %v1826_v46 = vand.u32 4294901760, %v8601_v27  ;;  %v1632_v26 = vsel %vm1306_vm1, %v1585_v12, 0  ;;  %v1586_v32 = vmul.f32 %v1570_v0, %v1554_v6 }
 0x2f5   :  { %v1836_v38 = vand.u32 4294901760, %v8604_v44  ;;  %v8609_v30 = vand.u32 4294901760, %v1632_v26 }
 0x2f6   :  { %6387 = vmatmul.mubr.f32.gmra.mrb[10].mxu1 %v1818_v56  ;;  %v1827_v61 = vsub.f32 %v8601_v27, %v1826_v46  ;;  %v1635_v63 = vsel %vm1306_vm1, %v1586_v32, 0 }
 0x2f7   :  { %v1837_v50 = vsub.f32 %v8604_v44, %v1836_v38  ;;  %v8619_v11 = vsub.f32 %v1632_v26, %v8609_v30  ;;  %v8621_v8 = vand.u32 4294901760, %v1635_v63  ;;  %v10046_v26 = vand.u32 4294901760, %v8301_v1 }
 0x2f8   :  { %v1828_v16 = vand.u32 4294901760, %v1827_v61  ;;  %v10048_v1 = vand.u32 4294901760, %v8424_v37 }
 0x2f9   :  { %v1838_v59 = vand.u32 4294901760, %v1837_v50  ;;  %v1846_v35 = vand.u32 4294901760, %v8619_v11  ;;  %v8625_v58 = vsub.f32 %v1635_v63, %v8621_v8  ;;  %v10049_v63 = vand.u32 4294901760, %v8429_v49 }
 0x2fa   :  { %6389 = vmatprep.mubr.f32.mxu1 %v1828_v16  ;;  %v10050_v50 = vand.u32 4294901760, %v8432_v47  ;;  %v10051_v16 = vand.u32 4294901760, %v8441_v55 }
 0x2fb   :  { %6390 = vmatmul.mubr.f32.gmra.mrb[12].mxu1 %v1838_v59  ;;  %v1847_v32 = vsub.f32 %v8619_v11, %v1846_v35  ;;  %v1856_v0 = vand.u32 4294901760, %v8625_v58  ;;  %v10052_v59 = vand.u32 4294901760, %v8462_v13 }
 0x2fd   :  { %v1848_v12 = vand.u32 4294901760, %v1847_v32  ;;  %v1857_v6 = vsub.f32 %v8625_v58, %v1856_v0 }
 0x2ff   :  { %6392 = vmatprep.mubr.f32.mxu1 %v1848_v12  ;;  %v1858_v56 = vand.u32 4294901760, %v1857_v6 }
 0x301   :  { %6393 = vmatmul.mubr.f32.gmra.mrb[14].mxu1 %v1858_v56 }
 0x302   :  { %6399 = vmatprep.mubr.f32.mxu1 %v8409_v19 }
 0x305   :  { %6400 = vmatmul.mubr.f32.vlgmr.msra.gmra.mrb[0].mxu1 %v8411_v21 }
 0x306   :  { %6402 = vmatprep.mubr.f32.mxu1 %v8415_v52  ;;  %7050 = vmatpush3.bf16.msra.mxu1 %v8316_v25  ;;  %v10045_v25 = vand.u32 4294901760, %v8299_v54  ;;  %v10047_v54 = vand.u32 4294901760, %v8421_v40 }
 0x307   :  { %7052 = vmatprep.subr.bf16.mxu1 %v8294_v60 }
 0x308   :  { %v7055_v61 = vpack.c.bf16 %v10046_v26, %v10045_v25 }
 0x309   :  { %6403 = vmatmul.mubr.f32.gmra.mrb[2].mxu1 %v8417_v18 }
 0x30a   :  { %6405 = vmatprep.mubr.f32.mxu1 %v8426_v43 }
 0x30d   :  { %6406 = vmatmul.mubr.f32.gmra.mrb[4].mxu1 %v8446_v29 }
 0x30e   :  { %6408 = vmatprep.mubr.f32.mxu1 %v8470_v2 }
 0x311   :  { %6409 = vmatmul.mubr.f32.gmra.mrb[6].mxu1 %v8514_v62 }
 0x312   :  { %6411 = vmatprep.mubr.f32.mxu1 %v8526_v48 }
 0x315   :  { %6412 = vmatmul.mubr.f32.gmra.mrb[8].mxu1 %v8530_v3 }
 0x316   :  { %6414 = vmatprep.mubr.f32.mxu1 %v8537_v14 }
 0x319   :  { %6415 = vmatmul.mubr.f32.gmra.mrb[10].mxu1 %v8555_v4 }
 0x31a   :  { %6417 = vmatprep.mubr.f32.mxu1 %v8590_v10 }
 0x31d   :  { %6418 = vmatmul.mubr.f32.gmra.mrb[12].mxu1 %v8593_v23 }
 0x31e   :  { %6420 = vmatprep.mubr.f32.mxu1 %v8609_v30 }
 0x321   :  { %6421 = vmatmul.mubr.f32.gmra.mrb[14].mxu1 %v8621_v8 }
 0x322   :  { %6427 = vmatprep.mubr.f32.mxu1 %v8421_v40  ;;  %v10053_v40 = vand.u32 4294901760, %v8485_v36 }
 0x325   :  { %6428 = vmatmul.mubr.f32.vlgmr.msra.gmra.mrb[0].mxu1 %v8424_v37  ;;  %v10054_v37 = vand.u32 4294901760, %v8524_v9 }
 0x326   :  { %6430 = vmatprep.mubr.f32.mxu1 %v8429_v49  ;;  %7054 = vmatpush3.bf16.msra.mxu1 %v8294_v60  ;;  %v10055_v49 = vand.u32 4294901760, %v8535_v15 }
 0x327   :  { %7056 = vmatprep.subr.bf16.mxu1 %v7055_v61 }
 0x329   :  { %6431 = vmatmul.mubr.f32.gmra.mrb[2].mxu1 %v8432_v47  ;;  %v10057_v47 = vand.u32 4294901760, %v8553_v31 }
 0x32a   :  { %6433 = vmatprep.mubr.f32.mxu1 %v8441_v55  ;;  %v10058_v55 = vand.u32 4294901760, %v8571_v22 }
 0x32d   :  { %6434 = vmatmul.mubr.f32.gmra.mrb[4].mxu1 %v8462_v13 }
 0x32e   :  { %6436 = vmatprep.mubr.f32.mxu1 %v8485_v36 }
 0x331   :  { %6437 = vmatmul.mubr.f32.gmra.mrb[6].mxu1 %v8524_v9 }
 0x332   :  { %6439 = vmatprep.mubr.f32.mxu1 %v8535_v15 }
 0x335   :  { %6440 = vmatmul.mubr.f32.gmra.mrb[8].mxu1 %v8541_v5 }
 0x336   :  { %6442 = vmatprep.mubr.f32.mxu1 %v8553_v31 }
 0x339   :  { %6443 = vmatmul.mubr.f32.gmra.mrb[10].mxu1 %v8571_v22 }
 0x33a   :  { %6445 = vmatprep.mubr.f32.mxu1 %v8601_v27 }
 0x33d   :  { %6446 = vmatmul.mubr.f32.gmra.mrb[12].mxu1 %v8604_v44 }
 0x33e   :  { %6448 = vmatprep.mubr.f32.mxu1 %v8619_v11 }
 0x341   :  { %6449 = vmatmul.mubr.f32.gmra.mrb[14].mxu1 %v8625_v58  ;;  %v10056_v58 = vand.u32 4294901760, %v8541_v5 }
 0x342   :  { %6455 = vmatprep.mubr.f32.mxu1 %v10047_v54 }
 0x345   :  { %6456 = vmatmul.mubr.f32.vlgmr.msra.gmra.mrb[0].mxu1 %v10048_v1 }
 0x346   :  { %6458 = vmatprep.mubr.f32.mxu1 %v10049_v63  ;;  %7058 = vmatpush3.bf16.msra.mxu1 %v7055_v61 }
 0x347   :  { %7060 = vmatprep.subr.bf16.mxu1 %v8294_v60 }
 0x349   :  { %6459 = vmatmul.mubr.f32.gmra.mrb[2].mxu1 %v10050_v50 }
 0x34a   :  { %6461 = vmatprep.mubr.f32.mxu1 %v10051_v16 }
 0x34d   :  { %6462 = vmatmul.mubr.f32.gmra.mrb[4].mxu1 %v10052_v59 }
 0x34e   :  { %6464 = vmatprep.mubr.f32.mxu1 %v10053_v40 }
 0x351   :  { %6465 = vmatmul.mubr.f32.gmra.mrb[6].mxu1 %v10054_v37 }
 0x352   :  { %6467 = vmatprep.mubr.f32.mxu1 %v10055_v49 }
 0x355   :  { %6468 = vmatmul.mubr.f32.gmra.mrb[8].mxu1 %v10056_v58 }
 0x356   :  { %6470 = vmatprep.mubr.f32.mxu1 %v10057_v47 }
 0x359   :  { %6471 = vmatmul.mubr.f32.gmra.mrb[10].mxu1 %v10058_v55 }
 0x35a   :  { %6473 = vmatprep.mubr.f32.mxu1 %v1826_v46 }
 0x35d   :  { %6474 = vmatmul.mubr.f32.gmra.mrb[12].mxu1 %v1836_v38 }
 0x35e   :  { %6476 = vmatprep.mubr.f32.mxu1 %v1846_v35 }
 0x361   :  { %6477 = vmatmul.mubr.f32.gmra.mrb[14].mxu1 %v1856_v0 }
 0x362   :  { %6483 = vmatprep.mubr.f32.mxu1 %v8409_v19 }
 0x365   :  { %6484 = vmatmul.mubr.f32.vlgmr.msra.gmra.mrb[0].mxu1 %v8411_v21 }
 0x366   :  { %6486 = vmatprep.mubr.f32.mxu1 %v8415_v52  ;;  %7062 = vmatpush3.bf16.msra.mxu1 %v8294_v60 }
 0x369   :  { %6487 = vmatmul.mubr.f32.gmra.mrb[2].mxu1 %v8417_v18 }
 0x36a   :  { %6489 = vmatprep.mubr.f32.mxu1 %v8426_v43 }
 0x36d   :  { %6490 = vmatmul.mubr.f32.gmra.mrb[4].mxu1 %v8446_v29 }
 0x36e   :  { %6492 = vmatprep.mubr.f32.mxu1 %v8470_v2 }
 0x371   :  { %6493 = vmatmul.mubr.f32.gmra.mrb[6].mxu1 %v8514_v62 }
 0x372   :  { %6495 = vmatprep.mubr.f32.mxu1 %v8526_v48 }
 0x375   :  { %6496 = vmatmul.mubr.f32.gmra.mrb[8].mxu1 %v8530_v3 }
 0x376   :  { %6498 = vmatprep.mubr.f32.mxu1 %v8537_v14 }
 0x379   :  { %6499 = vmatmul.mubr.f32.gmra.mrb[10].mxu1 %v8555_v4 }
 0x37a   :  { %6501 = vmatprep.mubr.f32.mxu1 %v8590_v10 }
 0x37d   :  { %6502 = vmatmul.mubr.f32.gmra.mrb[12].mxu1 %v8593_v23 }
 0x37e   :  { %6504 = vmatprep.mubr.f32.mxu1 %v8609_v30 }
 0x381   :  { %6505 = vmatmul.mubr.f32.gmra.mrb[14].mxu1 %v8621_v8 }
 0x382   :  { %6511 = vmatprep.mubr.f32.mxu1 %v8409_v19 }
 0x385   :  { %6512 = vmatmul.mubr.f32.vlgmr.msra.gmra.mrb[0].mxu1 %v8411_v21 }
 0x386   :  { %6514 = vmatprep.mubr.f32.mxu1 %v8415_v52 }
 0x389   :  { %6515 = vmatmul.mubr.f32.gmra.mrb[2].mxu1 %v8417_v18 }
 0x38a   :  { %6517 = vmatprep.mubr.f32.mxu1 %v8426_v43 }
 0x38d   :  { %6518 = vmatmul.mubr.f32.gmra.mrb[4].mxu1 %v8446_v29 }
 0x38e   :  { %6520 = vmatprep.mubr.f32.mxu1 %v8470_v2 }
 0x391   :  { %6521 = vmatmul.mubr.f32.gmra.mrb[6].mxu1 %v8514_v62 }
 0x392   :  { %6523 = vmatprep.mubr.f32.mxu1 %v8526_v48 }
 0x395   :  { %6524 = vmatmul.mubr.f32.gmra.mrb[8].mxu1 %v8530_v3 }
 0x396   :  { %6526 = vmatprep.mubr.f32.mxu1 %v8537_v14 }
 0x399   :  { %6527 = vmatmul.mubr.f32.gmra.mrb[10].mxu1 %v8555_v4 }
 0x39a   :  { %6529 = vmatprep.mubr.f32.mxu1 %v8590_v10 }
 0x39d   :  { %6530 = vmatmul.mubr.f32.gmra.mrb[12].mxu1 %v8593_v23 }
 0x39e   :  { %6532 = vmatprep.mubr.f32.mxu1 %v8609_v30 }
 0x3a1   :  { %6533 = vmatmul.mubr.f32.gmra.mrb[14].mxu1 %v8621_v8 }
 0x458   :  { %v8735_v19 = vpop.f32.mrb[0].mxu1 }
 0x459   :  { %v2744_v60 = vsel %vm1306_vm1, %v8735_v19, 0.0  ;;  %v2781_v21 = vmul.f32 %v8735_v19, %v8735_v19  ;;  %v8741_v52 = vpop.f32.mrb[1].mxu1 }
 0x45a   :  { %v2743_v18 = vsel %vm1306_vm1, %v8741_v52, 0.0  ;;  %v2780_v43 = vmul.f32 %v8741_v52, %v8741_v52 }
 0x45b   :  { %v2797_v2 = vsel %vm1306_vm1, %v2781_v21, 0.0  ;;  %v2745_v29 = vadd.f32 %v2744_v60, %v2743_v18 }
 0x45c   :  { %v2796_v13 = vsel %vm1306_vm1, %v2780_v43, 0.0  ;;  %v8749_v36 = vpop.f32.mrb[2].mxu1 }
 0x45d   :  { %v2798_v62 = vadd.f32 %v2797_v2, %v2796_v13  ;;  %v8751_v9 = vpop.f32.mrb[3].mxu1  ;;  %v2783_v48 = vmul.f32 %v8749_v36, %v8749_v36  ;;  %v2748_v5 = vsel %vm1306_vm1, %v8749_v36, 0.0 }
 0x45e   :  { %v2746_v3 = vsel %vm1306_vm1, %v8751_v9, 0.0  ;;  %v2782_v15 = vmul.f32 %v8751_v9, %v8751_v9 }
 0x45f   :  { %v2747_v14 = vadd.f32 %v2746_v3, %v2745_v29  ;;  %v2801_v10 = vsel %vm1306_vm1, %v2783_v48, 0.0 }
 0x460   :  { %v2799_v31 = vsel %vm1306_vm1, %v2782_v15, 0.0  ;;  %v8762_v4 = vpop.f32.mrb[4].mxu1 }
 0x461   :  { %v2800_v30 = vadd.f32 %v2799_v31, %v2798_v62  ;;  %v8764_v38 = vpop.f32.mrb[5].mxu1  ;;  %v2749_v22 = vadd.f32 %v2748_v5, %v2747_v14  ;;  %v2785_v23 = vmul.f32 %v8762_v4, %v8762_v4  ;;  %v2752_v8 = vsel %vm1306_vm1, %v8762_v4, 0.0 }
 0x462   :  { %v2750_v27 = vsel %vm1306_vm1, %v8764_v38, 0.0  ;;  %v2784_v44 = vmul.f32 %v8764_v38, %v8764_v38 }
 0x463   :  { %v2751_v46 = vadd.f32 %v2750_v27, %v2749_v22  ;;  %v2802_v11 = vadd.f32 %v2801_v10, %v2800_v30  ;;  %v2805_v56 = vsel %vm1306_vm1, %v2785_v23, 0.0 }
 0x464   :  { %v2803_v35 = vsel %vm1306_vm1, %v2784_v44, 0.0  ;;  %v8776_v32 = vpop.f32.mrb[6].mxu1 }
 0x465   :  { %v2804_v0 = vadd.f32 %v2803_v35, %v2802_v11  ;;  %v8778_v12 = vpop.f32.mrb[7].mxu1  ;;  %v2753_v6 = vadd.f32 %v2752_v8, %v2751_v46  ;;  %v2787_v25 = vmul.f32 %v8776_v32, %v8776_v32  ;;  %v2756_v63 = vsel %vm1306_vm1, %v8776_v32, 0.0 }
 0x466   :  { %v2754_v26 = vsel %vm1306_vm1, %v8778_v12, 0.0  ;;  %v2786_v61 = vmul.f32 %v8778_v12, %v8778_v12 }
 0x467   :  { %v2755_v54 = vadd.f32 %v2754_v26, %v2753_v6  ;;  %v2806_v1 = vadd.f32 %v2805_v56, %v2804_v0  ;;  %v2809_v49 = vsel %vm1306_vm1, %v2787_v25, 0.0 }
 0x468   :  { %v2807_v50 = vsel %vm1306_vm1, %v2786_v61, 0.0  ;;  %v8790_v16 = vpop.f32.mrb[8].mxu1 }
 0x469   :  { %v2808_v59 = vadd.f32 %v2807_v50, %v2806_v1  ;;  %v8792_v40 = vpop.f32.mrb[9].mxu1  ;;  %v2757_v37 = vadd.f32 %v2756_v63, %v2755_v54  ;;  %v2789_v58 = vmul.f32 %v8790_v16, %v8790_v16  ;;  %v2760_v18 = vsel %vm1306_vm1, %v8790_v16, 0.0 }
 0x46a   :  { %v2758_v47 = vsel %vm1306_vm1, %v8792_v40, 0.0  ;;  %v2788_v55 = vmul.f32 %v8792_v40, %v8792_v40 }
 0x46b   :  { %v2759_v60 = vadd.f32 %v2758_v47, %v2757_v37  ;;  %v2810_v21 = vadd.f32 %v2809_v49, %v2808_v59  ;;  %v2813_v48 = vsel %vm1306_vm1, %v2789_v58, 0.0 }
 0x46c   :  { %v2811_v43 = vsel %vm1306_vm1, %v2788_v55, 0.0  ;;  %v8804_v2 = vpop.f32.mrb[10].mxu1 }
 0x46d   :  { %v2812_v29 = vadd.f32 %v2811_v43, %v2810_v21  ;;  %v8806_v13 = vpop.f32.mrb[11].mxu1  ;;  %v2761_v62 = vadd.f32 %v2760_v18, %v2759_v60  ;;  %v2791_v3 = vmul.f32 %v8804_v2, %v8804_v2  ;;  %v2764_v30 = vsel %vm1306_vm1, %v8804_v2, 0.0 }
 0x46e   :  { %v2762_v15 = vsel %vm1306_vm1, %v8806_v13, 0.0  ;;  %v2790_v14 = vmul.f32 %v8806_v13, %v8806_v13 }
 0x46f   :  { %v2763_v5 = vadd.f32 %v2762_v15, %v2761_v62  ;;  %v2814_v31 = vadd.f32 %v2813_v48, %v2812_v29  ;;  %v2817_v46 = vsel %vm1306_vm1, %v2791_v3, 0.0 }
 0x470   :  { %v2815_v22 = vsel %vm1306_vm1, %v2790_v14, 0.0  ;;  %v8818_v10 = vpop.f32.mrb[12].mxu1 }
 0x471   :  { %v2816_v23 = vadd.f32 %v2815_v22, %v2814_v31  ;;  %v8820_v27 = vpop.f32.mrb[13].mxu1  ;;  %v2765_v44 = vadd.f32 %v2764_v30, %v2763_v5  ;;  %v2793_v11 = vmul.f32 %v8818_v10, %v8818_v10  ;;  %v2768_v56 = vsel %vm1306_vm1, %v8818_v10, 0.0 }
 0x472   :  { %v2766_v8 = vsel %vm1306_vm1, %v8820_v27, 0.0  ;;  %v2792_v35 = vmul.f32 %v8820_v27, %v8820_v27 }
 0x473   :  { %v2767_v0 = vadd.f32 %v2766_v8, %v2765_v44  ;;  %v2818_v6 = vadd.f32 %v2817_v46, %v2816_v23  ;;  %v2821_v63 = vsel %vm1306_vm1, %v2793_v11, 0.0 }
 0x474   :  { %v2819_v25 = vsel %vm1306_vm1, %v2792_v35, 0.0  ;;  %v8832_v26 = vpop.f32.mrb[14].mxu1 }
 0x475   :  { %v2820_v61 = vadd.f32 %v2819_v25, %v2818_v6  ;;  %v8834_v54 = vpop.f32.mrb[15].mxu1  ;;  %v2769_v1 = vadd.f32 %v2768_v56, %v2767_v0  ;;  %v2795_v50 = vmul.f32 %v8832_v26, %v8832_v26  ;;  %v2772_v47 = vsel %vm1306_vm1, %v8832_v26, 0.0 }
 0x476   :  { %v2770_v59 = vsel %vm1306_vm1, %v8834_v54, 0.0  ;;  %v2794_v37 = vmul.f32 %v8834_v54, %v8834_v54 }
 0x477   :  { %v2771_v49 = vadd.f32 %v2770_v59, %v2769_v1  ;;  %v2822_v58 = vadd.f32 %v2821_v63, %v2820_v61  ;;  %v2825_v18 = vsel %vm1306_vm1, %v2795_v50, 0.0 }
 0x478   :  { %v2823_v55 = vsel %vm1306_vm1, %v2794_v37, 0.0 }
 0x479   :  { %v2773_v60 = vadd.f32 %v2772_v47, %v2771_v49  ;;  %v2824_v21 = vadd.f32 %v2823_v55, %v2822_v58 }
 0x47b   :  { %v2774_v43 = vrot.slane %v2773_v60, 4  ;;  %v2826_v29 = vadd.f32 %v2825_v18, %v2824_v21  ;;  %v2988_v21 = vld [vmem:[%s9813_s8 + $0x8] sm:$0xff] }
 0x47d   :  { %v2775_v62 = vadd.f32 %v2774_v43, %v2773_v60  ;;  %v2827_v48 = vrot.slane %v2826_v29, 4  ;;  %v2987_v60 = vld [vmem:[%s9813_s8] sm:$0xff]  ;;  %v3041_v43 = vand.u32 4294901760, %v2988_v21 }
 0x47e   :  { %v3038_v18 = vand.u32 4294901760, %v2987_v60 }
 0x47f   :  { %v2776_v3 = vrot.slane %v2775_v62, 2  ;;  %v2828_v15 = vadd.f32 %v2827_v48, %v2826_v29 }
 0x480   :  { %v8860_v29 = vpack.c.bf16 %v3041_v43, %v3038_v18  ;;  %v8869_v48 = vsub.f32 %v2987_v60, %v3038_v18 }
 0x481   :  { %v2777_v14 = vadd.f32 %v2776_v3, %v2775_v62  ;;  %v2829_v5 = vrot.slane %v2828_v15, 2  ;;  %v8871_v3 = vsub.f32 %v2988_v21, %v3041_v43 }
 0x482   :  { %7064 = vmatprep.subr.bf16.mxu1 %v8860_v29 }
 0x483   :  { %v2778_v31 = vrot.slane %v2777_v14, 1  ;;  %v2830_v30 = vadd.f32 %v2829_v5, %v2828_v15  ;;  %7066 = vmatpush3.bf16.msra.mxu1 %v8860_v29  ;;  %v9929_v15 = vand.u32 4294901760, %v8869_v48 }
 0x485   :  { %v2779_v22 = vadd.f32 %v2778_v31, %v2777_v14  ;;  %v2831_v23 = vrot.slane %v2830_v30, 1  ;;  %v9928_v14 = vand.u32 4294901760, %v8871_v3  ;;  %v3268_v5 = vsub.f32 %v8869_v48, %v9929_v15 }
 0x487   :  { %2834 = vrot.lane.b32.xlu0 %v2779_v22, %s7544_s27  ;;  %v2832_v44 = vadd.f32 %v2831_v23, %v2830_v30  ;;  %v3275_v31 = vsub.f32 %v8871_v3, %v9928_v14  ;;  %v3269_v30 = vand.u32 4294901760, %v3268_v5 }
 0x489   :  { %2839 = vrot.lane.b32.xlu1 %v2832_v44, %s7544_s27 }
 0x48b   :  { %2843 = vrot.lane.b32.xlu0 %v2779_v22, %s7543_s0 }
 0x48d   :  { %2847 = vrot.lane.b32.xlu1 %v2832_v44, %s7543_s0 }
 0x48f   :  { %2851 = vrot.lane.b32.xlu0 %v2779_v22, %s7545_s28 }
 0x491   :  { %2855 = vrot.lane.b32.xlu1 %v2832_v44, %s7545_s28 }
 0x4f9   :  { %v2835_v46 = vpop.permute.xlu0 %2834 }
 0x4fa   :  { %v2837_v35 = vadd.f32 %v2835_v46, %v2779_v22  ;;  %v3276_v22 = vand.u32 4294901760, %v3275_v31 }
 0x4fb   :  { %v2840_v11 = vpop.permute.xlu1 %2839 }
 0x4fc   :  { %v2842_v6 = vadd.f32 %v2840_v11, %v2832_v44  ;;  %v8881_v23 = vpack.c.bf16 %v3276_v22, %v3269_v30  ;;  %v8886_v44 = vpack.c.bf16 %v8871_v3, %v8869_v48 }
 0x4fd   :  { %v2844_v8 = vpop.permute.xlu0 %2843 }
 0x4fe   :  { %v2846_v56 = vadd.f32 %v2844_v8, %v2837_v35  ;;  %7068 = vmatprep.subr.bf16.mxu1 %v8881_v23 }
 0x4ff   :  { %v2848_v0 = vpop.permute.xlu1 %2847 }
 0x500   :  { %v2850_v61 = vadd.f32 %v2848_v0, %v2842_v6  ;;  %v2741_v0 = vld [vmem:[%s9814_s6] sm:$0x1] }
 0x501   :  { %v2852_v25 = vpop.permute.xlu0 %2851 }
 0x502   :  { %v2854_v1 = vadd.f32 %v2852_v25, %v2846_v56 }
 0x503   :  { %v2856_v63 = vpop.permute.xlu1 %2855 }
 0x504   :  { %v2859_v50 = vmul.f32 0.001953125, %v2854_v1  ;;  %v2858_v59 = vadd.f32 %v2856_v63, %v2850_v61 }
 0x506   :  { %v2860_v37 = vmul.f32 0.001953125, %v2858_v59  ;;  %v2861_v49 = vmul.f32 %v2859_v50, %v2859_v50  ;;  %2867 = vrot.lane.b32.xlu0 %v2859_v50, %s7546_s29 }
 0x508   :  { %v2862_v58 = vsub.f32 %v2860_v37, %v2861_v49 }
 0x50a   :  { %v2863_v47 = vmax.f32 %v2862_v58, 0.0  ;;  %v2742_v58 = vld [vmem:[%s9815_s7] sm:$0x1] }
 0x50c   :  { %v2864_v55 = vadd.f32 1e-05, %v2863_v47 }
 0x50e   :  { %7539 = vrsqrt.f32 %v2864_v55 }
 0x518   :  { %v7540_v62 = vpop.eup %7539 }
 0x519   :  { %2883 = vrot.lane.b32.xlu1 %v7540_v62, %s7547_s30  ;;  %2880 = vrot.lane.b32.xlu0 %v7540_v62, %s7546_s29 }
 0x51d   :  { %2886 = vrot.lane.b32.xlu1 %v7540_v62, %s7548_s2  ;;  %2870 = vrot.lane.b32.xlu0 %v2859_v50, %s7547_s30 }
 0x521   :  { %2873 = vrot.lane.b32.xlu1 %v2859_v50, %s7548_s2 }
 0x578   :  { %v2868_v46 = vpop.permute.xlu0 %2867 }
 0x579   :  { %v2876_v63 = vsel %vm1440_vm2, %v2859_v50, %v2868_v46 }
 0x58b   :  { %v2884_v11 = vpop.permute.xlu1 %2883  ;;  %v2881_v8 = vpop.permute.xlu0 %2880 }
 0x58c   :  { %v2889_v35 = vsel %vm1440_vm2, %v7540_v62, %v2881_v8 }
 0x58d   :  { %v2890_v56 = vsel %vm1442_vm3, %v2889_v35, %v2884_v11 }
 0x58f   :  { %v2887_v6 = vpop.permute.xlu1 %2886  ;;  %v2871_v61 = vpop.permute.xlu0 %2870 }
 0x590   :  { %v2891_v25 = vsel %vm1444_vm4, %v2890_v56, %v2887_v6  ;;  %v2877_v37 = vsel %vm1442_vm3, %v2876_v63, %v2871_v61 }
 0x591   :  { %v2892_v1 = vmul.f32 %v2891_v25, %v2741_v0 }
 0x593   :  { %v2899_v59 = vrot.slane %v2892_v1, %v8322_v53  ;;  %v2874_v49 = vpop.permute.xlu1 %2873 }
 0x594   :  { %v2878_v47 = vsel %vm1444_vm4, %v2877_v37, %v2874_v49 }
 0x595   :  { %v2893_v55 = vmul.f32 %v2892_v1, %v2878_v47  ;;  %v2901_v60 = vmul.f32 %v2899_v59, %v8741_v52  ;;  %v2902_v21 = vmul.f32 %v8735_v19, %v2899_v59  ;;  %v2903_v43 = vmul.f32 %v2899_v59, %v8751_v9 }
 0x596   :  { %v2904_v50 = vmul.f32 %v8749_v36, %v2899_v59  ;;  %v2905_v62 = vmul.f32 %v2899_v59, %v8764_v38  ;;  %v2906_v5 = vmul.f32 %v8762_v4, %v2899_v59  ;;  %v2907_v31 = vmul.f32 %v2899_v59, %v8778_v12 }
 0x597   :  { %v2894_v18 = vsub.f32 %v2742_v58, %v2893_v55  ;;  %v2908_v30 = vmul.f32 %v8776_v32, %v2899_v59  ;;  %v8910_v22 = vmul.f32 %v2899_v59, %v8792_v40  ;;  %v8916_v19 = vmul.f32 %v8790_v16, %v2899_v59 }
 0x598   :  { %v8919_v9 = vmul.f32 %v2899_v59, %v8806_v13  ;;  %v8922_v36 = vmul.f32 %v8804_v2, %v2899_v59  ;;  %v8925_v4 = vmul.f32 %v2899_v59, %v8820_v27  ;;  %v8928_v38 = vmul.f32 %v8818_v10, %v2899_v59 }
 0x599   :  { %v8913_v52 = vrot.slane %v2894_v18, %v8322_v53  ;;  %v8931_v32 = vmul.f32 %v2899_v59, %v8834_v54  ;;  %v8934_v12 = vmul.f32 %v8832_v26, %v2899_v59 }
 0x59b   :  { %v2923_v16 = vadd.f32 %v8913_v52, %v2901_v60  ;;  %v2924_v40 = vadd.f32 %v8913_v52, %v2902_v21  ;;  %v2925_v13 = vadd.f32 %v8913_v52, %v2903_v43  ;;  %v2926_v2 = vadd.f32 %v8913_v52, %v2904_v50 }
 0x59c   :  { %v2927_v27 = vadd.f32 %v8913_v52, %v2905_v62  ;;  %v2928_v46 = vadd.f32 %v8913_v52, %v2906_v5  ;;  %v2929_v10 = vadd.f32 %v8913_v52, %v2907_v31  ;;  %v8944_v54 = vadd.f32 %v8913_v52, %v2908_v30 }
 0x59d   :  { %vm2939_vm2 = vcmp.ge.f32.partialorder %v2923_v16, 0.0  ;;  %v2955_v26 = vmul.f32 %v2923_v16, %v8337_v7  ;;  %vm2940_vm4 = vcmp.ge.f32.partialorder %v2924_v40, 0.0  ;;  %v2956_v11 = vmul.f32 %v2924_v40, %v8337_v7 }
 0x59e   :  { %vm2941_vm9 = vcmp.ge.f32.partialorder %v2925_v13, 0.0  ;;  %v2957_v8 = vmul.f32 %v2925_v13, %v8337_v7  ;;  %vm2942_vm10 = vcmp.ge.f32.partialorder %v2926_v2, 0.0  ;;  %v2958_v35 = vmul.f32 %v2926_v2, %v8337_v7 }
 0x59f   :  { %v2971_v0 = vsel %vm2939_vm2, %v2923_v16, %v2955_v26  ;;  %v2972_v6 = vsel %vm2940_vm4, %v2924_v40, %v2956_v11  ;;  %vm2943_vm11 = vcmp.ge.f32.partialorder %v2927_v27, 0.0  ;;  %v2959_v56 = vmul.f32 %v2927_v27, %v8337_v7 }
 0x5a0   :  { %v2990_v25 = vsel %vm1306_vm1, %v2971_v0, 0  ;;  %v2993_v61 = vsel %vm1306_vm1, %v2972_v6, 0  ;;  %v2973_v1 = vsel %vm2941_vm9, %v2925_v13, %v2957_v8  ;;  %v2974_v63 = vsel %vm2942_vm10, %v2926_v2, %v2958_v35 }
 0x5a1   :  { %v8953_v59 = vand.u32 4294901760, %v2990_v25  ;;  %v8955_v37 = vand.u32 4294901760, %v2993_v61  ;;  %v2996_v49 = vsel %vm1306_vm1, %v2973_v1, 0  ;;  %v2999_v58 = vsel %vm1306_vm1, %v2974_v63, 0 }
 0x5a2   :  { %v8959_v47 = vand.u32 4294901760, %v2996_v49  ;;  %v8961_v55 = vand.u32 4294901760, %v2999_v58  ;;  %v2975_v60 = vsel %vm2943_vm11, %v2927_v27, %v2959_v56  ;;  %vm2944_vm12 = vcmp.ge.f32.partialorder %v2928_v46, 0.0 }
 0x5a3   :  { %v8964_v21 = vsub.f32 %v2990_v25, %v8953_v59  ;;  %v8967_v18 = vsub.f32 %v2993_v61, %v8955_v37  ;;  %v3002_v43 = vsel %vm1306_vm1, %v2975_v60, 0  ;;  %v2960_v50 = vmul.f32 %v2928_v46, %v8337_v7 }
 0x5a4   :  { %v8972_v62 = vsub.f32 %v2996_v49, %v8959_v47  ;;  %v8975_v5 = vsub.f32 %v2999_v58, %v8961_v55  ;;  %v8977_v31 = vand.u32 4294901760, %v3002_v43  ;;  %vm2945_vm13 = vcmp.ge.f32.partialorder %v2929_v10, 0.0 }
 0x5a5   :  { %v9927_v30 = vand.u32 4294901760, %v8964_v21  ;;  %v9924_v16 = vand.u32 4294901760, %v8967_v18  ;;  %v2976_v40 = vsel %vm2944_vm12, %v2928_v46, %v2960_v50  ;;  %v2961_v13 = vmul.f32 %v2929_v10, %v8337_v7 }
 0x5a6   :  { %v9922_v2 = vand.u32 4294901760, %v8972_v62  ;;  %v9919_v27 = vand.u32 4294901760, %v8975_v5  ;;  %v8985_v26 = vsub.f32 %v3002_v43, %v8977_v31  ;;  %v3005_v11 = vsel %vm1306_vm1, %v2976_v40, 0 }
 0x5a7   :  { %v3107_v8 = vsub.f32 %v8964_v21, %v9927_v30  ;;  %v3117_v35 = vsub.f32 %v8967_v18, %v9924_v16  ;;  %v8994_v46 = vand.u32 4294901760, %v3005_v11  ;;  %v2977_v0 = vsel %vm2945_vm13, %v2929_v10, %v2961_v13 }
 0x5a8   :  { %v3127_v6 = vsub.f32 %v8972_v62, %v9922_v2  ;;  %v3137_v56 = vsub.f32 %v8975_v5, %v9919_v27  ;;  %v9917_v25 = vand.u32 4294901760, %v8985_v26  ;;  %v3008_v61 = vsel %vm1306_vm1, %v2977_v0, 0 }
 0x5a9   :  { %v3108_v1 = vand.u32 4294901760, %v3107_v8  ;;  %v3118_v63 = vand.u32 4294901760, %v3117_v35  ;;  %v9005_v49 = vsub.f32 %v3005_v11, %v8994_v46  ;;  %v9007_v58 = vand.u32 4294901760, %v3008_v61 }
 0x5aa   :  { %v3128_v10 = vand.u32 4294901760, %v3127_v6  ;;  %v3138_v60 = vand.u32 4294901760, %v3137_v56  ;;  %v3147_v43 = vsub.f32 %v8985_v26, %v9917_v25  ;;  %vm2946_vm14 = vcmp.ge.f32.partialorder %v8944_v54, 0.0 }
 0x5ab   :  { %10059 = vst [vmem:[#allocation58_spill] sm:$0xff] %v9005_v49  ;;  %6539 = vmatprep.mubr.f32.mxu1 %v3108_v1  ;;  %v9916_v50 = vand.u32 4294901760, %v9005_v49  ;;  %v9015_v40 = vsub.f32 %v3008_v61, %v9007_v58  ;;  %v2962_v13 = vmul.f32 %v8944_v54, %v8337_v7  ;;  %v2931_v11 = vadd.f32 %v8913_v52, %v8910_v22 }
 0x5ac   :  { %6540 = vmatmul.mubr.f32.vlgmr.msra.gmra.mrb[16].mxu1 %v3118_v63  ;;  %v3148_v8 = vand.u32 4294901760, %v3147_v43  ;;  %v2932_v35 = vadd.f32 %v8913_v52, %v8916_v19  ;;  %v2933_v0 = vadd.f32 %v8913_v52, %v8919_v9  ;;  %v2934_v6 = vadd.f32 %v8913_v52, %v8922_v36 }
 0x5ad   :  { %10060 = vst [vmem:[#allocation59_spill] sm:$0xff] %v9015_v40  ;;  %6542 = vmatprep.mubr.f32.mxu1 %v3128_v10  ;;  %7070 = vmatpush3.bf16.msra.mxu1 %v8881_v23  ;;  %v3157_v56 = vsub.f32 %v9005_v49, %v9916_v50  ;;  %v9918_v22 = vand.u32 4294901760, %v9015_v40  ;;  %v2978_v61 = vsel %vm2946_vm14, %v8944_v54, %v2962_v13  ;;  %vm2947_vm15 = vcmp.ge.f32.partialorder %v2931_v11, 0.0 }
 0x5ae   :  { %v3011_v19 = vsel %vm1306_vm1, %v2978_v61, 0  ;;  %v2963_v1 = vmul.f32 %v2931_v11, %v8337_v7  ;;  %vm2948_vm0 = vcmp.ge.f32.partialorder %v2932_v35, 0.0  ;;  %v2964_v9 = vmul.f32 %v2932_v35, %v8337_v7  ;;  %7072 = vmatprep.subr.bf16.mxu1 %v8886_v44 }
 0x5af   :  { %v3158_v36 = vand.u32 4294901760, %v3157_v56  ;;  %v3167_v23 = vsub.f32 %v9015_v40, %v9918_v22  ;;  %v9040_v63 = vand.u32 4294901760, %v3011_v19  ;;  %vm2949_vm5 = vcmp.ge.f32.partialorder %v2933_v0, 0.0 }
 0x5b0   :  { %6543 = vmatmul.mubr.f32.gmra.mrb[18].mxu1 %v3138_v60  ;;  %v2979_v54 = vsel %vm2947_vm15, %v2931_v11, %v2963_v1  ;;  %v2980_v10 = vsel %vm2948_vm0, %v2932_v35, %v2964_v9  ;;  %v2965_v43 = vmul.f32 %v2933_v0, %v8337_v7  ;;  %vm2950_vm6 = vcmp.ge.f32.partialorder %v2934_v6, 0.0 }
 0x5b1   :  { %6545 = vmatprep.mubr.f32.mxu1 %v3148_v8  ;;  %v3168_v13 = vand.u32 4294901760, %v3167_v23  ;;  %v9044_v61 = vsub.f32 %v3011_v19, %v9040_v63  ;;  %v3014_v56 = vsel %vm1306_vm1, %v2979_v54, 0  ;;  %v3017_v50 = vsel %vm1306_vm1, %v2980_v10, 0 }
 0x5b2   :  { %v9048_v25 = vand.u32 4294901760, %v3014_v56  ;;  %v9050_v22 = vand.u32 4294901760, %v3017_v50  ;;  %v2981_v27 = vsel %vm2949_vm5, %v2933_v0, %v2965_v43  ;;  %v2966_v60 = vmul.f32 %v2934_v6, %v8337_v7 }
 0x5b3   :  { %10061 = vst [vmem:[#allocation60_spill] sm:$0xff] %v9044_v61  ;;  %v9920_v11 = vand.u32 4294901760, %v9044_v61  ;;  %v3020_v35 = vsel %vm1306_vm1, %v2981_v27, 0  ;;  %v2935_v8 = vadd.f32 %v8913_v52, %v8925_v4  ;;  %v2936_v19 = vadd.f32 %v8913_v52, %v8928_v38 }
 0x5b4   :  { %6546 = vmatmul.mubr.f32.gmra.mrb[20].mxu1 %v3158_v36  ;;  %v9060_v1 = vsub.f32 %v3014_v56, %v9048_v25  ;;  %v9063_v9 = vsub.f32 %v3017_v50, %v9050_v22  ;;  %v9065_v0 = vand.u32 4294901760, %v3020_v35  ;;  %v2982_v23 = vsel %vm2950_vm6, %v2934_v6, %v2966_v60 }
 0x5b5   :  { %6548 = vmatprep.mubr.f32.mxu1 %v3168_v13  ;;  %v3177_v27 = vsub.f32 %v9044_v61, %v9920_v11  ;;  %v3023_v4 = vsel %vm1306_vm1, %v2982_v23, 0  ;;  %vm2951_vm7 = vcmp.ge.f32.partialorder %v2935_v8, 0.0  ;;  %v2967_v38 = vmul.f32 %v2935_v8, %v8337_v7 }
 0x5b6   :  { %10062 = vst [vmem:[#allocation61_spill] sm:$0xff] %v9060_v1  ;;  %10063 = vst [vmem:[#allocation62_spill] sm:$0xff] %v9063_v9  ;;  %v9921_v36 = vand.u32 4294901760, %v9060_v1  ;;  %v9923_v54 = vand.u32 4294901760, %v9063_v9  ;;  %v9076_v50 = vsub.f32 %v3020_v35, %v9065_v0  ;;  %v9078_v10 = vand.u32 4294901760, %v3023_v4 }
 0x5b7   :  { %v3178_v6 = vand.u32 4294901760, %v3177_v27  ;;  %v2983_v43 = vsel %vm2951_vm7, %v2935_v8, %v2967_v38  ;;  %vm2952_vm8 = vcmp.ge.f32.partialorder %v2936_v19, 0.0  ;;  %v2968_v13 = vmul.f32 %v2936_v19, %v8337_v7 }
 0x5b8   :  { %10064 = vst [vmem:[#allocation63_spill] sm:$0xff] %v9076_v50  ;;  %v3187_v56 = vsub.f32 %v9060_v1, %v9921_v36  ;;  %v3197_v60 = vsub.f32 %v9063_v9, %v9923_v54  ;;  %v9926_v23 = vand.u32 4294901760, %v9076_v50  ;;  %v9089_v35 = vsub.f32 %v3023_v4, %v9078_v10  ;;  %v4341_v4 = vld [vmem:[%s9816_s11] sm:$0xff] }
 0x5b9   :  { %6549 = vmatmul.mubr.f32.gmra.mrb[22].mxu1 %v3178_v6  ;;  %v3026_v27 = vsel %vm1306_vm1, %v2983_v43, 0  ;;  %v2984_v8 = vsel %vm2952_vm8, %v2936_v19, %v2968_v13  ;;  %v2937_v38 = vadd.f32 %v8913_v52, %v8931_v32  ;;  %v2938_v11 = vadd.f32 %v8913_v52, %v8934_v12  ;;  %v4342_v52 = vld [vmem:[%s9816_s11 + $0x8] sm:$0xff] }
 0x5ba   :  { %10065 = vst [vmem:[#allocation64_spill] sm:$0xff] %v9089_v35  ;;  %v3188_v36 = vand.u32 4294901760, %v3187_v56  ;;  %v3198_v2 = vand.u32 4294901760, %v3197_v60  ;;  %v3207_v54 = vsub.f32 %v9076_v50, %v9926_v23  ;;  %v9925_v16 = vand.u32 4294901760, %v9089_v35  ;;  %v9118_v56 = vld [vmem:[%s9816_s11 + $0x10] sm:$0xff] }
 0x5bb   :  { %v9103_v6 = vand.u32 4294901760, %v3026_v27  ;;  %v3029_v19 = vsel %vm1306_vm1, %v2984_v8, 0  ;;  %vm2953_vm2 = vcmp.ge.f32.partialorder %v2937_v38, 0.0  ;;  %v2969_v32 = vmul.f32 %v2937_v38, %v8337_v7 }
 0x5bc   :  { %6551 = vmatprep.mubr.f32.mxu1 %v3188_v36  ;;  %v3208_v12 = vand.u32 4294901760, %v3207_v54  ;;  %v3217_v43 = vsub.f32 %v9089_v35, %v9925_v16  ;;  %v9113_v13 = vand.u32 4294901760, %v3029_v19  ;;  %vm2954_vm4 = vcmp.ge.f32.partialorder %v2938_v11, 0.0  ;;  %v4344_v16 = vld [vmem:[%s9816_s11 + $0x18] sm:$0xff] }
 0x5bd   :  { %6552 = vmatmul.mubr.f32.gmra.mrb[24].mxu1 %v3198_v2  ;;  %v9121_v60 = vsub.f32 %v3026_v27, %v9103_v6  ;;  %v2985_v8 = vsel %vm2953_vm2, %v2937_v38, %v2969_v32  ;;  %v2970_v36 = vmul.f32 %v2938_v11, %v8337_v7  ;;  %v4357_v54 = vand.u32 4294901760, %v4341_v4  ;;  %v9134_v2 = vld [vmem:[%s9816_s11 + $0x20] sm:$0xff] }
 0x5be   :  { %6554 = vmatprep.mubr.f32.mxu1 %v3208_v12  ;;  %v3218_v23 = vand.u32 4294901760, %v3217_v43  ;;  %v9128_v30 = vsub.f32 %v3029_v19, %v9113_v13  ;;  %v3032_v14 = vsel %vm1306_vm1, %v2985_v8, 0  ;;  %v4360_v15 = vand.u32 4294901760, %v4342_v52  ;;  %v4346_v19 = vld [vmem:[%s9816_s11 + $0x28] sm:$0xff]  ;;  %v9160_v43 = vld [vmem:[%s9816_s11 + $0x30] sm:$0xff] }
 0x5bf   :  { %10066 = vst [vmem:[#allocation65_spill] sm:$0xff] %v9121_v60  ;;  %v9938_v27 = vand.u32 4294901760, %v9121_v60  ;;  %v9137_v38 = vand.u32 4294901760, %v3032_v14  ;;  %v2986_v32 = vsel %vm2954_vm4, %v2938_v11, %v2970_v36  ;;  %v4363_v12 = vand.u32 4294901760, %v9118_v56 }
 0x5c0   :  { %10067 = vst [vmem:[#allocation66_spill] sm:$0xff] %v9128_v30  ;;  %v3035_v8 = vsel %vm1306_vm1, %v2986_v32, 0  ;;  %v9146_v7 = vpack.c.bf16 %v4360_v15, %v4357_v54  ;;  %v4366_v53 = vand.u32 4294901760, %v4344_v16  ;;  %v4369_v50 = vand.u32 4294901760, %v9134_v2 }
 0x5c1   :  { %6555 = vmatmul.mubr.f32.gmra.mrb[26].mxu1 %v3218_v23  ;;  %v3227_v35 = vsub.f32 %v9121_v60, %v9938_v27  ;;  %v9152_v11 = vsub.f32 %v3032_v14, %v9137_v38  ;;  %v9154_v36 = vand.u32 4294901760, %v3035_v8  ;;  %v9165_v23 = vld [vmem:[%s9816_s11 + $0x38] sm:$0xff]  ;;  %v10070_v32 = vand.u32 4294901760, %v9128_v30  ;;  %s7549_s11 = smov 112  }
 0x5c2   :  { %10068 = vst [vmem:[#allocation67_spill] sm:$0xff] %v9146_v7  ;;  %7088 = vmatprep.subr.bf16.mxu0 %v9146_v7  ;;  %v9171_v14 = vpack.c.bf16 %v4366_v53, %v4363_v12  ;;  %v4372_v60 = vand.u32 4294901760, %v4346_v19  ;;  %v9194_v49 = vsub.f32 %v4341_v4, %v4357_v54  ;;  %v9212_v54 = vsub.f32 %v4344_v16, %v4366_v53 }
 0x5c3   :  { %10069 = vst [vmem:[#allocation68_spill] sm:$0xff] %v9152_v11  ;;  %v3237_v27 = vsub.f32 %v9128_v30, %v10070_v32  ;;  %v3228_v9 = vand.u32 4294901760, %v3227_v35  ;;  %v9959_v1 = vand.u32 4294901760, %v9152_v11  ;;  %v9175_v61 = vsub.f32 %v3035_v8, %v9154_v36  ;;  %7090 = vmatpush3.bf16.msra.mxu0 %v9146_v7 }
 0x5c4   :  { %7092 = vmatprep.subr.bf16.mxu0 %v9171_v14  ;;  %v9179_v40 = vpack.c.bf16 %v4372_v60, %v4369_v50  ;;  %v4375_v32 = vand.u32 4294901760, %v9160_v43  ;;  %v4378_v30 = vand.u32 4294901760, %v9165_v23  ;;  %v9224_v16 = vsub.f32 %v9134_v2, %v4369_v50 }
 0x5c5   :  { %v3238_v34 = vand.u32 4294901760, %v3237_v27  ;;  %6557 = vmatprep.mubr.f32.mxu1 %v3228_v9  ;;  %v3247_v35 = vsub.f32 %v9152_v11, %v9959_v1  ;;  %v9962_v33 = vand.u32 4294901760, %v9175_v61  ;;  %v9196_v9 = vsub.f32 %v4342_v52, %v4360_v15 }
 0x5c6   :  { %v9192_v7 = vpack.c.bf16 %v4378_v30, %v4375_v32  ;;  %v4592_v11 = vand.u32 4294901760, %v9194_v49  ;;  %v9210_v52 = vsub.f32 %v9118_v56, %v4363_v12  ;;  %v9230_v12 = vsub.f32 %v4346_v19, %v4372_v60 }
 0x5c7   :  { %6558 = vmatmul.mubr.f32.gmra.mrb[28].mxu1 %v3238_v34  ;;  %v3248_v8 = vand.u32 4294901760, %v3247_v35  ;;  %v3257_v27 = vsub.f32 %v9175_v61, %v9962_v33  ;;  %7094 = vmatpush3.bf16.msra.mxu0 %v9171_v14  ;;  %v9965_v34 = vand.u32 4294901760, %v9196_v9  ;;  %v9240_v60 = vsub.f32 %v9160_v43, %v4375_v32  ;;  %v10075_v32 = vld [vmem:[#allocation33_spill] sm:$0xff] }
 0x5c8   :  { %7096 = vmatprep.subr.bf16.mxu0 %v9179_v40  ;;  %v4593_v4 = vsub.f32 %v9194_v49, %v4592_v11  ;;  %v4627_v2 = vand.u32 4294901760, %v9230_v12  ;;  %v9243_v19 = vsub.f32 %v9165_v23, %v4378_v30  ;;  %vm9966_vm9 = vcmask 261120  }
 0x5c9   :  { %6560 = vmatprep.mubr.f32.mxu1 %v3248_v8  ;;  %v3258_v1 = vand.u32 4294901760, %v3257_v27  ;;  %v4600_v15 = vsub.f32 %v9196_v9, %v9965_v34  ;;  %v9964_v8 = vand.u32 4294901760, %v9210_v52  ;;  %v9963_v27 = vand.u32 4294901760, %v9212_v54 }
 0x5ca   :  { %vm4279_vm10 = vcmask 195584  }
 0x5cb   :  { %6561 = vmatmul.mubr.f32.gmra.mrb[30].mxu1 %v3258_v1  ;;  %7098 = vmatpush3.bf16.msra.mxu0 %v9179_v40  ;;  %v4594_v1 = vand.u32 4294901760, %v4593_v4  ;;  %v4601_v35 = vand.u32 4294901760, %v4600_v15  ;;  %v4607_v53 = vsub.f32 %v9210_v52, %v9964_v8  ;;  %v4614_v56 = vsub.f32 %v9212_v54, %v9963_v27  ;;  %v10071_v4 = vld [vmem:[#allocation15_spill] sm:$0xff]  ;;  %v10073_v27 = vld [vmem:[#allocation18_spill] sm:$0xff] }
 0x5cc   :  { %6567 = vmatprep.mubr.f32.mxu1 %v8953_v59  ;;  %7100 = vmatprep.subr.bf16.mxu0 %v9192_v7  ;;  %v4620_v15 = vand.u32 4294901760, %v9224_v16  ;;  %v4641_v8 = vand.u32 4294901760, %v9243_v19 }
 0x5cd   :  { %v7103_v33 = vpack.c.bf16 %v4601_v35, %v4594_v1  ;;  %v10072_v1 = vld [vmem:[#allocation17_spill] sm:$0xff]  ;;  %v4615_v50 = vand.u32 4294901760, %v4614_v56  ;;  %v4634_v56 = vand.u32 4294901760, %v9240_v60 }
 0x5ce   :  { %v4621_v35 = vsub.f32 %v9224_v16, %v4620_v15  ;;  %v4642_v43 = vsub.f32 %v9243_v19, %v4641_v8 }
 0x5cf   :  { %6568 = vmatmul.mubr.f32.vlgmr.msra.gmra.mrb[16].mxu1 %v8955_v37  ;;  %7102 = vmatpush3.bf16.msra.mxu0 %v9192_v7  ;;  %v4635_v30 = vsub.f32 %v9240_v60, %v4634_v56 }
 0x5d0   :  { %6570 = vmatprep.mubr.f32.mxu1 %v8959_v47  ;;  %7074 = vmatpush3.bf16.msra.mxu1 %v8886_v44  ;;  %v4608_v44 = vand.u32 4294901760, %v4607_v53 }
 0x5d1   :  { %7076 = vmatprep.subr.bf16.mxu1 %v8860_v29  ;;  %7104 = vmatprep.subr.bf16.mxu0 %v7103_v33 }
 0x5d2   :  { %6720 = vmatmul.mubr.f32.vlgmr.msra.gmra.mrb[16].mxu0 %v10071_v4  ;;  %v7107_v53 = vpack.c.bf16 %v4615_v50, %v4608_v44  ;;  %v4628_v4 = vsub.f32 %v9230_v12, %v4627_v2  ;;  %v4643_v44 = vand.u32 4294901760, %v4642_v43  ;;  %v10076_v50 = vld [vmem:[#allocation34_spill] sm:$0xff]  ;;  %v9290_v43 = vpack.c.bf16 %v4641_v8, %v4634_v56  ;;  %v10089_v8 = vld [vmem:[#allocation60_spill] sm:$0xff]  ;;  %v10096_v56 = vld [vmem:[#allocation63_spill] sm:$0xff] }
 0x5d3   :  { %6571 = vmatmul.mubr.f32.gmra.mrb[18].mxu1 %v8961_v55  ;;  %6722 = vmatprep.mubr.f32.mxu0 %v10072_v1  ;;  %v4622_v1 = vand.u32 4294901760, %v4621_v35 }
 0x5d4   :  { %6573 = vmatprep.mubr.f32.mxu1 %v8977_v31  ;;  %7106 = vmatpush3.bf16.msra.mxu0 %v7103_v33  ;;  %v10074_v33 = vld [vmem:[#allocation19_spill] sm:$0xff]  ;;  %v4629_v34 = vand.u32 4294901760, %v4628_v4 }
 0x5d5   :  { %7108 = vmatprep.subr.bf16.mxu0 %v7107_v53  ;;  %v10077_v4 = vld [vmem:[#allocation35_spill] sm:$0xff] }
 0x5d6   :  { %6723 = vmatmul.mubr.f32.gmra.mrb[18].mxu0 %v10073_v27  ;;  %v7111_v23 = vpack.c.bf16 %v4629_v34, %v4622_v1  ;;  %v4636_v27 = vand.u32 4294901760, %v4635_v30  ;;  %v10079_v34 = vld [vmem:[#allocation50_spill] sm:$0xff]  ;;  %v7119_v1 = vpack.c.bf16 %v9196_v9, %v9194_v49  ;;  %v7123_v49 = vpack.c.bf16 %v9212_v54, %v9210_v52 }
 0x5d7   :  { %6574 = vmatmul.mubr.f32.gmra.mrb[20].mxu1 %v8994_v46  ;;  %6725 = vmatprep.mubr.f32.mxu0 %v10074_v33  ;;  %v10082_v33 = vand.u32 4294901760, %v9212_v54  ;;  %v10088_v54 = vld [vmem:[#allocation21_spill] sm:$0xff] }
 0x5d8   :  { %6576 = vmatprep.mubr.f32.mxu1 %v9007_v58  ;;  %7110 = vmatpush3.bf16.msra.mxu0 %v7107_v53  ;;  %v7115_v35 = vpack.c.bf16 %v4643_v44, %v4636_v27  ;;  %v10078_v53 = vld [vmem:[#allocation38_spill] sm:$0xff]  ;;  %v10097_v44 = vld [vmem:[#allocation37_spill] sm:$0xff] }
 0x5d9   :  { %7112 = vmatprep.subr.bf16.mxu0 %v7111_v23 }
 0x5da   :  { %6726 = vmatmul.mubr.f32.gmra.mrb[20].mxu0 %v10075_v32  ;;  %v10084_v32 = vand.u32 4294901760, %v8871_v3  ;;  %v7131_v3 = vpack.c.bf16 %v9243_v19, %v9240_v60  ;;  %v10094_v60 = vld [vmem:[#allocation62_spill] sm:$0xff]  ;;  %v10095_v19 = vld [vmem:[#allocation32_spill] sm:$0xff] }
 0x5db   :  { %6577 = vmatmul.mubr.f32.gmra.mrb[22].mxu1 %v9040_v63  ;;  %6728 = vmatprep.mubr.f32.mxu0 %v10076_v50  ;;  %v10098_v50 = vld [vmem:[#allocation64_spill] sm:$0xff] }
 0x5dc   :  { %6579 = vmatprep.mubr.f32.mxu1 %v9048_v25  ;;  %7114 = vmatpush3.bf16.msra.mxu0 %v7111_v23  ;;  %v10083_v23 = vand.u32 4294901760, %v8869_v48  ;;  %v7127_v48 = vpack.c.bf16 %v9230_v12, %v9224_v16  ;;  %v10090_v16 = vld [vmem:[#allocation22_spill] sm:$0xff]  ;;  %v10091_v12 = vld [vmem:[#allocation61_spill] sm:$0xff] }
 0x5dd   :  { %7116 = vmatprep.subr.bf16.mxu0 %v7115_v35 }
 0x5de   :  { %6729 = vmatmul.mubr.f32.gmra.mrb[22].mxu0 %v10077_v4  ;;  %v7079_v27 = vpack.c.bf16 %v10084_v32, %v10083_v23  ;;  %v10100_v4 = vld [vmem:[#allocation65_spill] sm:$0xff]  ;;  %v10107_v23 = vand.u32 4294901760, %v8964_v21  ;;  %v10108_v32 = vld [vmem:[#allocation4_spill] sm:$0xff] }
 0x5df   :  { %6580 = vmatmul.mubr.f32.gmra.mrb[24].mxu1 %v9050_v22  ;;  %6731 = vmatprep.mubr.f32.mxu0 %v10078_v53  ;;  %v10101_v53 = vld [vmem:[#allocation42_spill] sm:$0xff] }
 0x5e0   :  { %6582 = vmatprep.mubr.f32.mxu1 %v9065_v0  ;;  %7118 = vmatpush3.bf16.msra.mxu0 %v7115_v35  ;;  %v10099_v35 = vld [vmem:[#allocation41_spill] sm:$0xff] }
 0x5e1   :  { %7120 = vmatprep.subr.bf16.mxu0 %v7119_v1 }
 0x5e2   :  { %6732 = vmatmul.mubr.f32.gmra.mrb[24].mxu0 %v10079_v34  ;;  %v10102_v34 = vld [vmem:[#allocation66_spill] sm:$0xff] }
 0x5e3   :  { %6583 = vmatmul.mubr.f32.gmra.mrb[26].mxu1 %v9078_v10  ;;  %6734 = vmatprep.mubr.f32.mxu0 %v7996_v17  ;;  %v10080_v17 = vand.u32 4294901760, %v9196_v9  ;;  %v10086_v9 = vld [vmem:[#allocation20_spill] sm:$0xff] }
 0x5e4   :  { %6585 = vmatprep.mubr.f32.mxu1 %v9103_v6 }
 0x5e6   :  { %6735 = vmatmul.mubr.f32.gmra.mrb[26].mxu0 %v8006_v57  ;;  %v9280_v57 = vpack.c.bf16 %v10080_v17, %v4592_v11  ;;  %v10085_v11 = vld [vmem:[#allocation58_spill] sm:$0xff]  ;;  %v10104_v17 = vld [vmem:[#allocation68_spill] sm:$0xff] }
 0x5e7   :  { %6586 = vmatmul.mubr.f32.gmra.mrb[28].mxu1 %v9113_v13  ;;  %6737 = vmatprep.mubr.f32.mxu0 %v8013_v45  ;;  %v10081_v45 = vand.u32 4294901760, %v9210_v52  ;;  %v10087_v52 = vld [vmem:[#allocation59_spill] sm:$0xff] }
 0x5e8   :  { %6588 = vmatprep.mubr.f32.mxu1 %v9137_v38 }
 0x5e9   :  { %v9286_v30 = vpack.c.bf16 %v10082_v33, %v10081_v45  ;;  %v10105_v45 = vld [vmem:[#allocation51_spill] sm:$0xff] }
 0x5ea   :  { %6738 = vmatmul.mubr.f32.gmra.mrb[28].mxu0 %v8042_v20  ;;  %v9288_v20 = vpack.c.bf16 %v4627_v2, %v4620_v15  ;;  %v10092_v15 = vld [vmem:[#allocation25_spill] sm:$0xff]  ;;  %v10093_v2 = vld [vmem:[#allocation67_spill] sm:$0xff] }
 0x5eb   :  { %6589 = vmatmul.mubr.f32.gmra.mrb[30].mxu1 %v9154_v36  ;;  %6759 = vmatprep.mubr.f32.mxu0 %v7697_v24  ;;  %v10106_v33 = vld [vmem:[#allocation3_spill] sm:$0xff] }
 0x5ec   :  { %6595 = vmatprep.mubr.f32.mxu1 %v8964_v21  ;;  %v10113_v21 = vand.u32 4294901760, %v8975_v5 }
 0x5ee   :  { %6760 = vmatmul.mubr.f32.vlgmr.msra.gmra.mrb[16].mxu0 %v7710_v28 }
 0x5ef   :  { %6596 = vmatmul.mubr.f32.vlgmr.msra.gmra.mrb[16].mxu1 %v8967_v18  ;;  %6762 = vmatprep.mubr.f32.mxu0 %v7732_v39 }
 0x5f0   :  { %6598 = vmatprep.mubr.f32.mxu1 %v8972_v62  ;;  %7078 = vmatpush3.bf16.msra.mxu1 %v8860_v29 }
 0x5f1   :  { %7080 = vmatprep.subr.bf16.mxu1 %v7079_v27  ;;  %7122 = vmatpush3.bf16.msra.mxu0 %v7119_v1  ;;  %v10103_v1 = vld [vmem:[#allocation46_spill] sm:$0xff] }
 0x5f2   :  { %6763 = vmatmul.mubr.f32.gmra.mrb[18].mxu0 %v7737_v41  ;;  %7124 = vmatprep.subr.bf16.mxu0 %v7123_v49 }
 0x5f3   :  { %6599 = vmatmul.mubr.f32.gmra.mrb[18].mxu1 %v8975_v5  ;;  %6765 = vmatprep.mubr.f32.mxu0 %v7739_v42  ;;  %v10120_v5 = vld [vmem:[#allocation24_spill] sm:$0xff] }
 0x5f4   :  { %6601 = vmatprep.mubr.f32.mxu1 %v8985_v26 }
 0x5f5   :  { %7126 = vmatpush3.bf16.msra.mxu0 %v7123_v49  ;;  %v10109_v49 = vand.u32 4294901760, %v8967_v18  ;;  %v10115_v18 = vand.u32 4294901760, %v8985_v26  ;;  %v10121_v26 = vand.u32 4294901760, %v10089_v8 }
 0x5f6   :  { %6766 = vmatmul.mubr.f32.gmra.mrb[20].mxu0 %v7763_v51  ;;  %7128 = vmatprep.subr.bf16.mxu0 %v7127_v48 }
 0x5f7   :  { %6602 = vmatmul.mubr.f32.gmra.mrb[20].mxu1 %v10085_v11  ;;  %6768 = vmatprep.mubr.f32.mxu0 %v10086_v9 }
 0x5f8   :  { %6604 = vmatprep.mubr.f32.mxu1 %v10087_v52 }
 0x5f9   :  { %7130 = vmatpush3.bf16.msra.mxu0 %v7127_v48  ;;  %v10110_v48 = vld [vmem:[#allocation7_spill] sm:$0xff] }
 0x5fa   :  { %6769 = vmatmul.mubr.f32.gmra.mrb[22].mxu0 %v10088_v54  ;;  %7132 = vmatprep.subr.bf16.mxu0 %v7131_v3 }
 0x5fb   :  { %6605 = vmatmul.mubr.f32.gmra.mrb[22].mxu1 %v10089_v8  ;;  %6771 = vmatprep.mubr.f32.mxu0 %v10090_v16  ;;  %v10128_v8 = vld [vmem:[#allocation40_spill] sm:$0xff] }
 0x5fc   :  { %6607 = vmatprep.mubr.f32.mxu1 %v10091_v12 }
 0x5fd   :  { %7134 = vmatpush3.bf16.msra.mxu0 %v7131_v3  ;;  %v10111_v3 = vand.u32 4294901760, %v8972_v62  ;;  %v10116_v62 = vld [vmem:[#allocation14_spill] sm:$0xff] }
 0x5fe   :  { %6772 = vmatmul.mubr.f32.gmra.mrb[24].mxu0 %v10092_v15  ;;  %7136 = vmatprep.subr.bf16.mxu0 %v10093_v2 }
 0x5ff   :  { %6608 = vmatmul.mubr.f32.gmra.mrb[24].mxu1 %v10094_v60  ;;  %6774 = vmatprep.mubr.f32.mxu0 %v10095_v19 }
 0x600   :  { %6610 = vmatprep.mubr.f32.mxu1 %v10096_v56 }
 0x602   :  { %6775 = vmatmul.mubr.f32.gmra.mrb[26].mxu0 %v10097_v44 }
 0x603   :  { %6611 = vmatmul.mubr.f32.gmra.mrb[26].mxu1 %v10098_v50  ;;  %6777 = vmatprep.mubr.f32.mxu0 %v10099_v35 }
 0x604   :  { %6613 = vmatprep.mubr.f32.mxu1 %v10100_v4 }
 0x606   :  { %6778 = vmatmul.mubr.f32.gmra.mrb[28].mxu0 %v10101_v53 }
 0x607   :  { %6614 = vmatmul.mubr.f32.gmra.mrb[28].mxu1 %v10102_v34  ;;  %6780 = vmatprep.mubr.f32.mxu0 %v10103_v1 }
 0x608   :  { %6616 = vmatprep.mubr.f32.mxu1 %v10104_v17 }
 0x60a   :  { %6781 = vmatmul.mubr.f32.gmra.mrb[30].mxu0 %v10105_v45  ;;  %v10112_v45 = vld [vmem:[#allocation8_spill] sm:$0xff] }
 0x60b   :  { %6617 = vmatmul.mubr.f32.gmra.mrb[30].mxu1 %v9175_v61  ;;  %6799 = vmatprep.mubr.f32.mxu0 %v10106_v33  ;;  %v10114_v33 = vld [vmem:[#allocation9_spill] sm:$0xff] }
 0x60c   :  { %6623 = vmatprep.mubr.f32.mxu1 %v10107_v23  ;;  %v10119_v23 = vand.u32 4294901760, %v10087_v52  ;;  %v10125_v52 = vand.u32 4294901760, %v10094_v60  ;;  %v10133_v60 = vand.u32 4294901760, %v10102_v34  ;;  %v10140_v34 = vld [vmem:[#allocation10_spill] sm:$0xff] }
 0x60e   :  { %6800 = vmatmul.mubr.f32.vlgmr.msra.gmra.mrb[16].mxu0 %v10108_v32  ;;  %v10122_v32 = vld [vmem:[#allocation26_spill] sm:$0xff] }
 0x60f   :  { %6624 = vmatmul.mubr.f32.vlgmr.msra.gmra.mrb[16].mxu1 %v10109_v49  ;;  %6802 = vmatprep.mubr.f32.mxu0 %v10110_v48  ;;  %v10123_v49 = vand.u32 4294901760, %v10091_v12  ;;  %v10126_v48 = vld [vmem:[#allocation36_spill] sm:$0xff] }
 0x610   :  { %6626 = vmatprep.mubr.f32.mxu1 %v10111_v3  ;;  %7082 = vmatpush3.bf16.msra.mxu1 %v7079_v27  ;;  %v10117_v27 = vand.u32 4294901760, %v10085_v11  ;;  %v10124_v11 = vld [vmem:[#allocation29_spill] sm:$0xff]  ;;  %v10127_v3 = vand.u32 4294901760, %v10096_v56  ;;  %v10130_v12 = vld [vmem:[#allocation44_spill] sm:$0xff]  ;;  %v10135_v56 = vand.u32 4294901760, %v10104_v17 }
 0x611   :  { %7084 = vmatprep.subr.bf16.mxu1 %v8860_v29  ;;  %7138 = vmatpush3.bf16.msra.mxu0 %v10093_v2  ;;  %v10142_v17 = vld [vmem:[#allocation13_spill] sm:$0xff] }
 0x612   :  { %6803 = vmatmul.mubr.f32.gmra.mrb[18].mxu0 %v10112_v45  ;;  %7140 = vmatprep.subr.bf16.mxu0 %v9171_v14  ;;  %v10118_v45 = vld [vmem:[#allocation23_spill] sm:$0xff] }
 0x613   :  { %6627 = vmatmul.mubr.f32.gmra.mrb[18].mxu1 %v10113_v21  ;;  %6805 = vmatprep.mubr.f32.mxu0 %v10114_v33  ;;  %v10129_v21 = vand.u32 4294901760, %v10098_v50  ;;  %v10131_v33 = vand.u32 4294901760, %v10100_v4  ;;  %v10137_v50 = vand.u32 4294901760, %v9175_v61  ;;  %v10139_v4 = vld [vmem:[#allocation6_spill] sm:$0xff]  ;;  %v10141_v61 = vld [vmem:[#allocation12_spill] sm:$0xff] }
 0x614   :  { %6629 = vmatprep.mubr.f32.mxu1 %v10115_v18  ;;  %v10132_v18 = vld [vmem:[#allocation45_spill] sm:$0xff] }
 0x615   :  { %7142 = vmatpush3.bf16.msra.mxu0 %v9171_v14 }
 0x616   :  { %6806 = vmatmul.mubr.f32.gmra.mrb[20].mxu0 %v10116_v62  ;;  %7144 = vmatprep.subr.bf16.mxu0 %v9179_v40  ;;  %v10134_v62 = vld [vmem:[#allocation49_spill] sm:$0xff] }
 0x617   :  { %6630 = vmatmul.mubr.f32.gmra.mrb[20].mxu1 %v10117_v27  ;;  %6808 = vmatprep.mubr.f32.mxu0 %v10118_v45  ;;  %v10136_v27 = vld [vmem:[#allocation53_spill] sm:$0xff] }
 0x618   :  { %6632 = vmatprep.mubr.f32.mxu1 %v10119_v23  ;;  %v10138_v45 = vld [vmem:[#allocation5_spill] sm:$0xff]  ;;  %v10143_v23 = vld [vmem:[#allocation16_spill] sm:$0xff] }
 0x619   :  { %7146 = vmatpush3.bf16.msra.mxu0 %v9179_v40 }
 0x61a   :  { %6809 = vmatmul.mubr.f32.gmra.mrb[22].mxu0 %v10120_v5  ;;  %7148 = vmatprep.subr.bf16.mxu0 %v9192_v7  ;;  %v10146_v5 = vld [vmem:[#allocation30_spill] sm:$0xff] }
 0x61b   :  { %6633 = vmatmul.mubr.f32.gmra.mrb[22].mxu1 %v10121_v26  ;;  %6811 = vmatprep.mubr.f32.mxu0 %v10122_v32  ;;  %v10148_v26 = vld [vmem:[#allocation39_spill] sm:$0xff] }
 0x61c   :  { %6635 = vmatprep.mubr.f32.mxu1 %v10123_v49  ;;  %v10150_v32 = vld [vmem:[#allocation47_spill] sm:$0xff]  ;;  %v10151_v49 = vld [vmem:[#allocation48_spill] sm:$0xff] }
 0x61d   :  { %7150 = vmatpush3.bf16.msra.mxu0 %v9192_v7 }
 0x61e   :  { %6812 = vmatmul.mubr.f32.gmra.mrb[24].mxu0 %v10124_v11  ;;  %7152 = vmatprep.subr.bf16.mxu0 %v9280_v57  ;;  %v10153_v11 = vld [vmem:[#allocation54_spill] sm:$0xff] }
 0x61f   :  { %6636 = vmatmul.mubr.f32.gmra.mrb[24].mxu1 %v10125_v52  ;;  %6814 = vmatprep.mubr.f32.mxu0 %v10126_v48 }
 0x620   :  { %6638 = vmatprep.mubr.f32.mxu1 %v10127_v3 }
 0x622   :  { %6815 = vmatmul.mubr.f32.gmra.mrb[26].mxu0 %v10128_v8 }
 0x623   :  { %6639 = vmatmul.mubr.f32.gmra.mrb[26].mxu1 %v10129_v21  ;;  %6817 = vmatprep.mubr.f32.mxu0 %v10130_v12 }
 0x624   :  { %6641 = vmatprep.mubr.f32.mxu1 %v10131_v33 }
 0x626   :  { %6818 = vmatmul.mubr.f32.gmra.mrb[28].mxu0 %v10132_v18 }
 0x627   :  { %6642 = vmatmul.mubr.f32.gmra.mrb[28].mxu1 %v10133_v60  ;;  %6820 = vmatprep.mubr.f32.mxu0 %v10134_v62 }
 0x628   :  { %6644 = vmatprep.mubr.f32.mxu1 %v10135_v56 }
 0x62a   :  { %6821 = vmatmul.mubr.f32.gmra.mrb[30].mxu0 %v10136_v27 }
 0x62b   :  { %6645 = vmatmul.mubr.f32.gmra.mrb[30].mxu1 %v10137_v50  ;;  %6839 = vmatprep.mubr.f32.mxu0 %v10138_v45 }
 0x62c   :  { %6651 = vmatprep.mubr.f32.mxu1 %v8953_v59 }
 0x62e   :  { %6840 = vmatmul.mubr.f32.vlgmr.msra.gmra.mrb[16].mxu0 %v10139_v4 }
 0x62f   :  { %6652 = vmatmul.mubr.f32.vlgmr.msra.gmra.mrb[16].mxu1 %v8955_v37  ;;  %6842 = vmatprep.mubr.f32.mxu0 %v10140_v34 }
 0x630   :  { %6654 = vmatprep.mubr.f32.mxu1 %v8959_v47  ;;  %7086 = vmatpush3.bf16.msra.mxu1 %v8860_v29  ;;  %v10144_v29 = vld [vmem:[#allocation27_spill] sm:$0xff] }
 0x631   :  { %7154 = vmatpush3.bf16.msra.mxu0 %v9280_v57  ;;  %7183 = vmatprep.subr.bf16.mxu1 %v10093_v2  ;;  %v10145_v57 = vld [vmem:[#allocation28_spill] sm:$0xff] }
 0x632   :  { %6843 = vmatmul.mubr.f32.gmra.mrb[18].mxu0 %v10141_v61  ;;  %7156 = vmatprep.subr.bf16.mxu0 %v9286_v30 }
 0x633   :  { %6655 = vmatmul.mubr.f32.gmra.mrb[18].mxu1 %v8961_v55  ;;  %6845 = vmatprep.mubr.f32.mxu0 %v10142_v17 }
 0x634   :  { %6657 = vmatprep.mubr.f32.mxu1 %v8977_v31 }
 0x635   :  { %7158 = vmatpush3.bf16.msra.mxu0 %v9286_v30  ;;  %v10147_v30 = vld [vmem:[#allocation31_spill] sm:$0xff] }
 0x636   :  { %6846 = vmatmul.mubr.f32.gmra.mrb[20].mxu0 %v10143_v23  ;;  %7160 = vmatprep.subr.bf16.mxu0 %v9288_v20 }
 0x637   :  { %6658 = vmatmul.mubr.f32.gmra.mrb[20].mxu1 %v8994_v46  ;;  %6848 = vmatprep.mubr.f32.mxu0 %v10144_v29 }
 0x638   :  { %6660 = vmatprep.mubr.f32.mxu1 %v9007_v58 }
 0x639   :  { %7162 = vmatpush3.bf16.msra.mxu0 %v9288_v20  ;;  %v10149_v20 = vld [vmem:[#allocation43_spill] sm:$0xff] }
 0x63a   :  { %6849 = vmatmul.mubr.f32.gmra.mrb[22].mxu0 %v10145_v57  ;;  %7164 = vmatprep.subr.bf16.mxu0 %v9290_v43 }
 0x63b   :  { %6661 = vmatmul.mubr.f32.gmra.mrb[22].mxu1 %v9040_v63  ;;  %6851 = vmatprep.mubr.f32.mxu0 %v10146_v5 }
 0x63c   :  { %6663 = vmatprep.mubr.f32.mxu1 %v9048_v25 }
 0x63d   :  { %7166 = vmatpush3.bf16.msra.mxu0 %v9290_v43  ;;  %v10152_v43 = vld [vmem:[#allocation52_spill] sm:$0xff] }
 0x63e   :  { %6852 = vmatmul.mubr.f32.gmra.mrb[24].mxu0 %v10147_v30  ;;  %7168 = vmatprep.subr.bf16.mxu0 %v10093_v2 }
 0x63f   :  { %6664 = vmatmul.mubr.f32.gmra.mrb[24].mxu1 %v9050_v22  ;;  %6854 = vmatprep.mubr.f32.mxu0 %v10148_v26 }
 0x640   :  { %6666 = vmatprep.mubr.f32.mxu1 %v9065_v0 }
 0x642   :  { %6855 = vmatmul.mubr.f32.gmra.mrb[26].mxu0 %v10149_v20 }
 0x643   :  { %6667 = vmatmul.mubr.f32.gmra.mrb[26].mxu1 %v9078_v10  ;;  %6857 = vmatprep.mubr.f32.mxu0 %v10150_v32 }
 0x644   :  { %6669 = vmatprep.mubr.f32.mxu1 %v9103_v6 }
 0x646   :  { %6858 = vmatmul.mubr.f32.gmra.mrb[28].mxu0 %v10151_v49 }
 0x647   :  { %6670 = vmatmul.mubr.f32.gmra.mrb[28].mxu1 %v9113_v13  ;;  %6860 = vmatprep.mubr.f32.mxu0 %v10152_v43 }
 0x648   :  { %6672 = vmatprep.mubr.f32.mxu1 %v9137_v38 }
 0x64a   :  { %6861 = vmatmul.mubr.f32.gmra.mrb[30].mxu0 %v10153_v11 }
 0x64b   :  { %6673 = vmatmul.mubr.f32.gmra.mrb[30].mxu1 %v9154_v36  ;;  %6879 = vmatprep.mubr.f32.mxu0 %v7697_v24 }
 0x64c   :  { %6679 = vmatprep.mubr.f32.mxu1 %v8953_v59  ;;  %v10155_v59 = vld [vmem:[#allocation55_spill] sm:$0xff] }
 0x64e   :  { %6880 = vmatmul.mubr.f32.vlgmr.msra.gmra.mrb[16].mxu0 %v7710_v28 }
 0x64f   :  { %6680 = vmatmul.mubr.f32.vlgmr.msra.gmra.mrb[16].mxu1 %v8955_v37  ;;  %6882 = vmatprep.mubr.f32.mxu0 %v7732_v39  ;;  %v10156_v37 = vld [vmem:[#allocation56_spill] sm:$0xff] }
 0x650   :  { %6682 = vmatprep.mubr.f32.mxu1 %v8959_v47  ;;  %7170 = vmatpush3.bf16.msra.mxu0 %v10093_v2 }
 0x651   :  { %7172 = vmatprep.subr.bf16.mxu0 %v9171_v14  ;;  %7187 = vmatpush3.bf16.msra.mxu1 %v10093_v2 }
 0x652   :  { %6883 = vmatmul.mubr.f32.gmra.mrb[18].mxu0 %v7737_v41  ;;  %7184 = vmatprep.subr.bf16.mxu1 %v9171_v14 }
 0x653   :  { %6683 = vmatmul.mubr.f32.gmra.mrb[18].mxu1 %v8961_v55  ;;  %6885 = vmatprep.mubr.f32.mxu0 %v7739_v42 }
 0x654   :  { %6685 = vmatprep.mubr.f32.mxu1 %v8977_v31  ;;  %7174 = vmatpush3.bf16.msra.mxu0 %v9171_v14 }
 0x655   :  { %7176 = vmatprep.subr.bf16.mxu0 %v9179_v40  ;;  %7188 = vmatpush3.bf16.msra.mxu1 %v9171_v14 }
 0x656   :  { %6886 = vmatmul.mubr.f32.gmra.mrb[20].mxu0 %v7763_v51  ;;  %7185 = vmatprep.subr.bf16.mxu1 %v9179_v40 }
 0x657   :  { %6686 = vmatmul.mubr.f32.gmra.mrb[20].mxu1 %v8994_v46  ;;  %6888 = vmatprep.mubr.f32.mxu0 %v10086_v9 }
 0x658   :  { %6688 = vmatprep.mubr.f32.mxu1 %v9007_v58  ;;  %7178 = vmatpush3.bf16.msra.mxu0 %v9179_v40 }
 0x659   :  { %7180 = vmatprep.subr.bf16.mxu0 %v9192_v7  ;;  %7189 = vmatpush3.bf16.msra.mxu1 %v9179_v40 }
 0x65a   :  { %6889 = vmatmul.mubr.f32.gmra.mrb[22].mxu0 %v10088_v54  ;;  %7186 = vmatprep.subr.bf16.mxu1 %v9192_v7 }
 0x65b   :  { %6689 = vmatmul.mubr.f32.gmra.mrb[22].mxu1 %v9040_v63  ;;  %6891 = vmatprep.mubr.f32.mxu0 %v10090_v16 }
 0x65c   :  { %6691 = vmatprep.mubr.f32.mxu1 %v9048_v25  ;;  %7182 = vmatpush3.bf16.msra.mxu0 %v9192_v7 }
 0x65d   :  { %7190 = vmatpush3.bf16.msra.mxu1 %v9192_v7  ;;  %v10154_v7 = vld [vmem:[#allocation51_spill] sm:$0xff] }
 0x65e   :  { %6892 = vmatmul.mubr.f32.gmra.mrb[24].mxu0 %v10092_v15 }
 0x65f   :  { %6692 = vmatmul.mubr.f32.gmra.mrb[24].mxu1 %v9050_v22  ;;  %6894 = vmatprep.mubr.f32.mxu0 %v10095_v19 }
 0x660   :  { %6694 = vmatprep.mubr.f32.mxu1 %v9065_v0 }
 0x662   :  { %6895 = vmatmul.mubr.f32.gmra.mrb[26].mxu0 %v10097_v44 }
 0x663   :  { %6695 = vmatmul.mubr.f32.gmra.mrb[26].mxu1 %v9078_v10  ;;  %6897 = vmatprep.mubr.f32.mxu0 %v10099_v35 }
 0x664   :  { %6697 = vmatprep.mubr.f32.mxu1 %v9103_v6 }
 0x666   :  { %6898 = vmatmul.mubr.f32.gmra.mrb[28].mxu0 %v10101_v53 }
 0x667   :  { %6698 = vmatmul.mubr.f32.gmra.mrb[28].mxu1 %v9113_v13  ;;  %6900 = vmatprep.mubr.f32.mxu0 %v10103_v1 }
 0x668   :  { %6700 = vmatprep.mubr.f32.mxu1 %v9137_v38 }
 0x66a   :  { %6901 = vmatmul.mubr.f32.gmra.mrb[30].mxu0 %v10154_v7 }
 0x66b   :  { %6701 = vmatmul.mubr.f32.gmra.mrb[30].mxu1 %v9154_v36  ;;  %6919 = vmatprep.mubr.f32.mxu0 %v7697_v24 }
 0x66c   :  { %6740 = vmatprep.mubr.f32.mxu1 %v10155_v59 }
 0x66e   :  { %6920 = vmatmul.mubr.f32.vlgmr.msra.gmra.mrb[16].mxu0 %v7710_v28 }
 0x66f   :  { %6922 = vmatprep.mubr.f32.mxu0 %v7732_v39  ;;  %6741 = vmatmul.mubr.f32.vlgmr.msra.gmra.mrb[32].mxu1 %v10156_v37 }
 0x672   :  { %6923 = vmatmul.mubr.f32.gmra.mrb[18].mxu0 %v7737_v41 }
 0x673   :  { %6925 = vmatprep.mubr.f32.mxu0 %v7739_v42 }
 0x676   :  { %6926 = vmatmul.mubr.f32.gmra.mrb[20].mxu0 %v7763_v51 }
 0x677   :  { %6928 = vmatprep.mubr.f32.mxu0 %v10086_v9 }
 0x67a   :  { %6929 = vmatmul.mubr.f32.gmra.mrb[22].mxu0 %v10088_v54 }
 0x67b   :  { %6931 = vmatprep.mubr.f32.mxu0 %v10090_v16 }
 0x67e   :  { %6932 = vmatmul.mubr.f32.gmra.mrb[24].mxu0 %v10092_v15 }
 0x67f   :  { %6934 = vmatprep.mubr.f32.mxu0 %v10095_v19 }
 0x682   :  { %6935 = vmatmul.mubr.f32.gmra.mrb[26].mxu0 %v10097_v44 }
 0x683   :  { %6937 = vmatprep.mubr.f32.mxu0 %v10099_v35 }
 0x686   :  { %6938 = vmatmul.mubr.f32.gmra.mrb[28].mxu0 %v10101_v53 }
 0x687   :  { %6940 = vmatprep.mubr.f32.mxu0 %v10103_v1 }
 0x68a   :  { %6941 = vmatmul.mubr.f32.gmra.mrb[30].mxu0 %v10154_v7 }
 0x722   :  { %v9497_v24 = vpop.f32.mrb[16].mxu1 }
 0x723   :  { %v4145_v28 = vsel %vm9966_vm9, %v9497_v24, 0.0  ;;  %v4182_v39 = vmul.f32 %v9497_v24, %v9497_v24  ;;  %v9503_v41 = vpop.f32.mrb[17].mxu1 }
 0x724   :  { %v4144_v42 = vsel %vm9966_vm9, %v9503_v41, 0.0  ;;  %v4181_v51 = vmul.f32 %v9503_v41, %v9503_v41 }
 0x725   :  { %v4198_v47 = vsel %vm9966_vm9, %v4182_v39, 0.0  ;;  %v4146_v55 = vadd.f32 %v4145_v28, %v4144_v42 }
 0x726   :  { %v4197_v31 = vsel %vm9966_vm9, %v4181_v51, 0.0  ;;  %v9511_v46 = vpop.f32.mrb[18].mxu1 }
 0x727   :  { %v4199_v25 = vadd.f32 %v4198_v47, %v4197_v31  ;;  %v9513_v58 = vpop.f32.mrb[19].mxu1  ;;  %v4184_v40 = vmul.f32 %v9511_v46, %v9511_v46  ;;  %v4149_v10 = vsel %vm9966_vm9, %v9511_v46, 0.0 }
 0x728   :  { %v4147_v22 = vsel %vm9966_vm9, %v9513_v58, 0.0  ;;  %v4183_v63 = vmul.f32 %v9513_v58, %v9513_v58 }
 0x729   :  { %v4148_v0 = vadd.f32 %v4147_v22, %v4146_v55  ;;  %v4202_v9 = vsel %vm9966_vm9, %v4184_v40, 0.0 }
 0x72a   :  { %v4200_v6 = vsel %vm9966_vm9, %v4183_v63, 0.0  ;;  %v9524_v13 = vpop.f32.mrb[20].mxu1 }
 0x72b   :  { %v4201_v38 = vadd.f32 %v4200_v6, %v4199_v25  ;;  %v9526_v36 = vpop.f32.mrb[21].mxu1  ;;  %v4150_v14 = vadd.f32 %v4149_v10, %v4148_v0  ;;  %v4186_v54 = vmul.f32 %v9524_v13, %v9524_v13  ;;  %v4153_v44 = vsel %vm9966_vm9, %v9524_v13, 0.0 }
 0x72c   :  { %v4151_v16 = vsel %vm9966_vm9, %v9526_v36, 0.0  ;;  %v4185_v15 = vmul.f32 %v9526_v36, %v9526_v36 }
 0x72d   :  { %v4152_v2 = vadd.f32 %v4151_v16, %v4150_v14  ;;  %v4203_v19 = vadd.f32 %v4202_v9, %v4201_v38  ;;  %v4206_v3 = vsel %vm9966_vm9, %v4186_v54, 0.0 }
 0x72e   :  { %v4204_v35 = vsel %vm9966_vm9, %v4185_v15, 0.0  ;;  %v9538_v53 = vpop.f32.mrb[22].mxu1 }
 0x72f   :  { %v4205_v1 = vadd.f32 %v4204_v35, %v4203_v19  ;;  %v9540_v52 = vpop.f32.mrb[23].mxu1  ;;  %v4154_v48 = vadd.f32 %v4153_v44, %v4152_v2  ;;  %v4188_v8 = vmul.f32 %v9538_v53, %v9538_v53  ;;  %v4157_v60 = vsel %vm9966_vm9, %v9538_v53, 0.0 }
 0x730   :  { %v4155_v21 = vsel %vm9966_vm9, %v9540_v52, 0.0  ;;  %v4187_v12 = vmul.f32 %v9540_v52, %v9540_v52 }
 0x731   :  { %v4156_v33 = vadd.f32 %v4155_v21, %v4154_v48  ;;  %v4207_v18 = vadd.f32 %v4206_v3, %v4205_v1  ;;  %v4210_v4 = vsel %vm9966_vm9, %v4188_v8, 0.0 }
 0x732   :  { %v4208_v62 = vsel %vm9966_vm9, %v4187_v12, 0.0  ;;  %v9552_v56 = vpop.f32.mrb[24].mxu1 }
 0x733   :  { %v4209_v27 = vadd.f32 %v4208_v62, %v4207_v18  ;;  %v9554_v50 = vpop.f32.mrb[25].mxu1  ;;  %v4158_v45 = vadd.f32 %v4157_v60, %v4156_v33  ;;  %v4190_v34 = vmul.f32 %v9552_v56, %v9552_v56  ;;  %v4161_v57 = vsel %vm9966_vm9, %v9552_v56, 0.0 }
 0x734   :  { %v4159_v61 = vsel %vm9966_vm9, %v9554_v50, 0.0  ;;  %v4189_v17 = vmul.f32 %v9554_v50, %v9554_v50 }
 0x735   :  { %v4160_v23 = vadd.f32 %v4159_v61, %v4158_v45  ;;  %v4211_v29 = vadd.f32 %v4210_v4, %v4209_v27  ;;  %v4214_v49 = vsel %vm9966_vm9, %v4190_v34, 0.0 }
 0x736   :  { %v4212_v5 = vsel %vm9966_vm9, %v4189_v17, 0.0  ;;  %v9566_v30 = vpop.f32.mrb[26].mxu1 }
 0x737   :  { %v4213_v26 = vadd.f32 %v4212_v5, %v4211_v29  ;;  %v9568_v20 = vpop.f32.mrb[27].mxu1  ;;  %v4162_v32 = vadd.f32 %v4161_v57, %v4160_v23  ;;  %v4192_v43 = vmul.f32 %v9566_v30, %v9566_v30  ;;  %v4165_v28 = vsel %vm9966_vm9, %v9566_v30, 0.0 }
 0x738   :  { %v4163_v11 = vsel %vm9966_vm9, %v9568_v20, 0.0  ;;  %v4191_v7 = vmul.f32 %v9568_v20, %v9568_v20 }
 0x739   :  { %v4164_v59 = vadd.f32 %v4163_v11, %v4162_v32  ;;  %v4215_v37 = vadd.f32 %v4214_v49, %v4213_v26  ;;  %v4218_v31 = vsel %vm9966_vm9, %v4192_v43, 0.0 }
 0x73a   :  { %v4216_v39 = vsel %vm9966_vm9, %v4191_v7, 0.0  ;;  %v9580_v42 = vpop.f32.mrb[28].mxu1 }
 0x73b   :  { %v4217_v51 = vadd.f32 %v4216_v39, %v4215_v37  ;;  %v9582_v47 = vpop.f32.mrb[29].mxu1  ;;  %v4166_v55 = vadd.f32 %v4165_v28, %v4164_v59  ;;  %v4194_v25 = vmul.f32 %v9580_v42, %v9580_v42  ;;  %v4169_v10 = vsel %vm9966_vm9, %v9580_v42, 0.0 }
 0x73c   :  { %v4167_v40 = vsel %vm9966_vm9, %v9582_v47, 0.0  ;;  %v4193_v22 = vmul.f32 %v9582_v47, %v9582_v47 }
 0x73d   :  { %v4168_v63 = vadd.f32 %v4167_v40, %v4166_v55  ;;  %v4219_v0 = vadd.f32 %v4218_v31, %v4217_v51  ;;  %v4222_v16 = vsel %vm9966_vm9, %v4194_v25, 0.0  ;;  %v9638_v55 = vld [vmem:[%s9817_s12] ss:$0 sm:$0xff]  ;;  %s7551_s12 = smov 16  }
 0x73e   :  { %v4220_v6 = vsel %vm9966_vm9, %v4193_v22, 0.0  ;;  %v9594_v38 = vpop.f32.mrb[30].mxu1 }
 0x73f   :  { %v4221_v14 = vadd.f32 %v4220_v6, %v4219_v0  ;;  %v9596_v9 = vpop.f32.mrb[31].mxu1  ;;  %v4170_v54 = vadd.f32 %v4169_v10, %v4168_v63  ;;  %v4196_v15 = vmul.f32 %v9594_v38, %v9594_v38  ;;  %v4173_v48 = vsel %vm9966_vm9, %v9594_v38, 0.0 }
 0x740   :  { %v4171_v2 = vsel %vm9966_vm9, %v9596_v9, 0.0  ;;  %v4195_v19 = vmul.f32 %v9596_v9, %v9596_v9 }
 0x741   :  { %v4172_v44 = vadd.f32 %v4171_v2, %v4170_v54  ;;  %v4223_v35 = vadd.f32 %v4222_v16, %v4221_v14  ;;  %v9605_v1 = vpop.f32.mrb[16].mxu0  ;;  %v4226_v33 = vsel %vm9966_vm9, %v4196_v15, 0.0 }
 0x742   :  { %v4224_v3 = vsel %vm9966_vm9, %v4195_v19, 0.0  ;;  %v9610_v8 = vpop.f32.mrb[17].mxu0  ;;  %v6742_v51 = vpop.f32.mrb[32].mxu1  ;;  %vm10159_vm9 = vcmask 261120  }
 0x743   :  { %v4174_v21 = vadd.f32 %v4173_v48, %v4172_v44  ;;  %v4225_v12 = vadd.f32 %v4224_v3, %v4223_v35  ;;  %v4575_v25 = vpop.f32.mrb[33].mxu1  ;;  %v4586_v22 = vadd.f32 %v6742_v51, %v9638_v55 }
 0x744   :  { %v4576_v10 = vadd.f32 %v9638_v55, %v4575_v25 }
 0x745   :  { %v4175_v18 = vrot.slane %v4174_v21, 4  ;;  %v4227_v60 = vadd.f32 %v4226_v33, %v4225_v12  ;;  %v9613_v62 = vpop.f32.mrb[18].mxu0 }
 0x746   :  { %v9615_v27 = vpop.f32.mrb[19].mxu0 }
 0x747   :  { %v4176_v45 = vadd.f32 %v4175_v18, %v4174_v21  ;;  %v4228_v4 = vrot.slane %v4227_v60, 4 }
 0x749   :  { %v4177_v34 = vrot.slane %v4176_v45, 2  ;;  %v4229_v61 = vadd.f32 %v4228_v4, %v4227_v60  ;;  %v9617_v17 = vpop.f32.mrb[20].mxu0 }
 0x74a   :  { %v9619_v23 = vpop.f32.mrb[21].mxu0 }
 0x74b   :  { %v4178_v29 = vadd.f32 %v4177_v34, %v4176_v45  ;;  %v4230_v57 = vrot.slane %v4229_v61, 2 }
 0x74d   :  { %v4179_v5 = vrot.slane %v4178_v29, 1  ;;  %v4231_v26 = vadd.f32 %v4230_v57, %v4229_v61  ;;  %v9621_v32 = vpop.f32.mrb[22].mxu0 }
 0x74e   :  { %v9623_v49 = vpop.f32.mrb[23].mxu0 }
 0x74f   :  { %v4180_v43 = vadd.f32 %v4179_v5, %v4178_v29  ;;  %v4232_v11 = vrot.slane %v4231_v26, 1 }
 0x751   :  { %4235 = vrot.lane.b32.xlu0 %v4180_v43, %s7543_s0  ;;  %v4233_v7 = vadd.f32 %v4232_v11, %v4231_v26  ;;  %v9626_v59 = vpop.f32.mrb[24].mxu0  ;;  %v4141_v11 = vld [vmem:[%s9818_s9] sm:$0x1] }
 0x752   :  { %v9628_v37 = vpop.f32.mrb[25].mxu0 }
 0x753   :  { %4240 = vrot.lane.b32.xlu1 %v4233_v7, %s7543_s0  ;;  %s7552_s0 = smov 24  }
 0x755   :  { %4244 = vrot.lane.b32.xlu0 %v4180_v43, %s7549_s11  ;;  %v9631_v28 = vpop.f32.mrb[26].mxu0 }
 0x756   :  { %v9633_v39 = vpop.f32.mrb[27].mxu0 }
 0x757   :  { %4248 = vrot.lane.b32.xlu1 %v4233_v7, %s7549_s11 }
 0x759   :  { %4252 = vrot.lane.b32.xlu0 %v4180_v43, %s7550_s1  ;;  %v9640_v31 = vpop.f32.mrb[28].mxu0 }
 0x75a   :  { %v9642_v40 = vpop.f32.mrb[29].mxu0 }
 0x75b   :  { %4256 = vrot.lane.b32.xlu1 %v4233_v7, %s7550_s1 }
 0x75d   :  { %v6942_v63 = vpop.f32.mrb[30].mxu0 }
 0x75e   :  { %v9645_v0 = vadd.f32 %v6942_v63, %v4586_v22  ;;  %v5528_v6 = vpop.f32.mrb[31].mxu0 }
 0x75f   :  { %v9648_v14 = vadd.f32 %v5528_v6, %v4576_v10 }
 0x7c3   :  { %v4236_v54 = vpop.permute.xlu0 %4235 }
 0x7c4   :  { %v4238_v2 = vadd.f32 %v4236_v54, %v4180_v43 }
 0x7c5   :  { %v4241_v16 = vpop.permute.xlu1 %4240 }
 0x7c6   :  { %v4243_v44 = vadd.f32 %v4241_v16, %v4233_v7  ;;  %v7191_v16 = vadd.f32 %v9605_v1, %v9638_v55  ;;  %v7197_v1 = vadd.f32 %v9621_v32, %v9638_v55 }
 0x7c7   :  { %v4245_v15 = vpop.permute.xlu0 %4244 }
 0x7c8   :  { %v4247_v35 = vadd.f32 %v4245_v15, %v4238_v2  ;;  %v10157_v15 = vld [vmem:[#allocation11_spill] sm:$0xff] }
 0x7c9   :  { %v4249_v19 = vpop.permute.xlu1 %4248 }
 0x7ca   :  { %v4251_v3 = vadd.f32 %v4249_v19, %v4243_v44  ;;  %v7192_v44 = vadd.f32 %v9638_v55, %v9610_v8  ;;  %v7199_v8 = vadd.f32 %v9626_v59, %v9638_v55  ;;  %v7204_v59 = vadd.f32 %v9638_v55, %v9642_v40 }
 0x7cb   :  { %v4253_v48 = vpop.permute.xlu0 %4252 }
 0x7cc   :  { %v4255_v21 = vadd.f32 %v4253_v48, %v4247_v35  ;;  %v7193_v35 = vadd.f32 %v9613_v62, %v9638_v55  ;;  %v7194_v48 = vadd.f32 %v9638_v55, %v9615_v27  ;;  %v4142_v62 = vld [vmem:[%s9819_s10] sm:$0x1]  ;;  %v7200_v27 = vadd.f32 %v9638_v55, %v9628_v37 }
 0x7cd   :  { %v4257_v12 = vpop.permute.xlu1 %4256 }
 0x7ce   :  { %v4260_v33 = vmul.f32 0.001953125, %v4255_v21  ;;  %v4259_v18 = vadd.f32 %v4257_v12, %v4251_v3  ;;  %v7195_v3 = vadd.f32 %v9617_v17, %v9638_v55  ;;  %v7196_v21 = vadd.f32 %v9638_v55, %v9619_v23 }
 0x7cf   :  { %v7198_v12 = vadd.f32 %v9638_v55, %v9623_v49  ;;  %v7201_v17 = vadd.f32 %v9631_v28, %v9638_v55  ;;  %v7202_v23 = vadd.f32 %v9638_v55, %v9633_v39  ;;  %v7203_v49 = vadd.f32 %v9640_v31, %v9638_v55 }
 0x7d0   :  { %v4261_v60 = vmul.f32 0.001953125, %v4259_v18  ;;  %v4262_v45 = vmul.f32 %v4260_v33, %v4260_v33  ;;  %4268 = vrot.lane.b32.xlu0 %v4260_v33, %s7547_s30 }
 0x7d2   :  { %v4263_v4 = vsub.f32 %v4261_v60, %v4262_v45 }
 0x7d4   :  { %v4264_v34 = vmax.f32 %v4263_v4, 0.0 }
 0x7d6   :  { %v4265_v61 = vadd.f32 1e-05, %v4264_v34 }
 0x7d8   :  { %7541 = vrsqrt.f32 %v4265_v61 }
 0x7e2   :  { %v7542_v29 = vpop.eup %7541 }
 0x7e3   :  { %4285 = vrot.lane.b32.xlu1 %v7542_v29, %s7551_s12  ;;  %4282 = vrot.lane.b32.xlu0 %v7542_v29, %s7547_s30 }
 0x7e7   :  { %4288 = vrot.lane.b32.xlu1 %v7542_v29, %s7552_s0  ;;  %4271 = vrot.lane.b32.xlu0 %v4260_v33, %s7551_s12 }
 0x7eb   :  { %4274 = vrot.lane.b32.xlu1 %v4260_v33, %s7552_s0 }
 0x842   :  { %v4269_v57 = vpop.permute.xlu0 %4268 }
 0x843   :  { %v4277_v6 = vsel %vm1442_vm3, %v4260_v33, %v4269_v57 }
 0x855   :  { %v4286_v5 = vpop.permute.xlu1 %4285  ;;  %v4283_v26 = vpop.permute.xlu0 %4282 }
 0x856   :  { %v4291_v43 = vsel %vm1442_vm3, %v7542_v29, %v4283_v26 }
 0x857   :  { %v4292_v51 = vsel %vm1306_vm1, %v4291_v43, %v4286_v5 }
 0x859   :  { %v4289_v7 = vpop.permute.xlu1 %4288  ;;  %v4272_v63 = vpop.permute.xlu0 %4271 }
 0x85a   :  { %v4293_v25 = vsel %vm4279_vm10, %v4292_v51, %v4289_v7  ;;  %v4278_v54 = vsel %vm1306_vm1, %v4277_v6, %v4272_v63 }
 0x85b   :  { %v4294_v22 = vmul.f32 %v4293_v25, %v4141_v11 }
 0x85d   :  { %v4275_v10 = vpop.permute.xlu1 %4274  ;;  %v4301_v2 = vrot.slane %v4294_v22, %v10157_v15 }
 0x85e   :  { %v4280_v19 = vsel %vm4279_vm10, %v4278_v54, %v4275_v10 }
 0x85f   :  { %v4295_v32 = vmul.f32 %v4294_v22, %v4280_v19  ;;  %v4303_v33 = vmul.f32 %v4301_v2, %v9503_v41  ;;  %v4304_v18 = vmul.f32 %v9497_v24, %v4301_v2  ;;  %v4305_v60 = vmul.f32 %v4301_v2, %v9513_v58 }
 0x860   :  { %v4306_v37 = vmul.f32 %v9511_v46, %v4301_v2  ;;  %v4307_v28 = vmul.f32 %v4301_v2, %v9526_v36  ;;  %v4308_v39 = vmul.f32 %v9524_v13, %v4301_v2  ;;  %v4309_v4 = vmul.f32 %v4301_v2, %v9540_v52 }
 0x861   :  { %v4296_v45 = vsub.f32 %v4142_v62, %v4295_v32  ;;  %v4310_v31 = vmul.f32 %v9538_v53, %v4301_v2  ;;  %v4311_v34 = vmul.f32 %v4301_v2, %v9554_v50  ;;  %v4312_v55 = vmul.f32 %v9552_v56, %v4301_v2 }
 0x862   :  { %v4313_v41 = vmul.f32 %v4301_v2, %v9568_v20  ;;  %v4314_v24 = vmul.f32 %v9566_v30, %v4301_v2  ;;  %v4315_v46 = vmul.f32 %v4301_v2, %v9582_v47  ;;  %v4316_v36 = vmul.f32 %v9580_v42, %v4301_v2 }
 0x863   :  { %v4323_v58 = vrot.slane %v4296_v45, %v10157_v15  ;;  %v4317_v13 = vmul.f32 %v4301_v2, %v9596_v9  ;;  %v4318_v52 = vmul.f32 %v9594_v38, %v4301_v2 }
 0x865   :  { %v4325_v40 = vadd.f32 %v4323_v58, %v4303_v33  ;;  %v4326_v53 = vadd.f32 %v4323_v58, %v4304_v18  ;;  %v4327_v61 = vadd.f32 %v4323_v58, %v4305_v60  ;;  %v4328_v50 = vadd.f32 %v4323_v58, %v4306_v37 }
 0x866   :  { %v4329_v29 = vadd.f32 %v4323_v58, %v4307_v28  ;;  %v4330_v56 = vadd.f32 %v4323_v58, %v4308_v39  ;;  %v4331_v57 = vadd.f32 %v4323_v58, %v4309_v4  ;;  %v4332_v20 = vadd.f32 %v4323_v58, %v4310_v31 }
 0x867   :  { %v4333_v5 = vadd.f32 %v4323_v58, %v4311_v34  ;;  %v4334_v30 = vadd.f32 %v4323_v58, %v4312_v55  ;;  %v4335_v26 = vadd.f32 %v4323_v58, %v4313_v41  ;;  %v4336_v43 = vadd.f32 %v4323_v58, %v4314_v24 }
 0x868   :  { %v4337_v11 = vadd.f32 %v4323_v58, %v4315_v46  ;;  %v4338_v47 = vadd.f32 %v4323_v58, %v4316_v36  ;;  %v4339_v7 = vadd.f32 %v4323_v58, %v4317_v13  ;;  %v4340_v42 = vadd.f32 %v4323_v58, %v4318_v52 }
 0x869   :  { %v5538_v51 = vadd.f32 %v7192_v44, %v4325_v40  ;;  %v5539_v9 = vadd.f32 %v7191_v16, %v4326_v53  ;;  %v5540_v25 = vadd.f32 %v7194_v48, %v4327_v61  ;;  %v5541_v38 = vadd.f32 %v7193_v35, %v4328_v50  ;;  %v10158_v16 = vld [vmem:[#allocation57_spill] sm:$0xff] }
 0x86a   :  { %v5542_v22 = vadd.f32 %v7196_v21, %v4329_v29  ;;  %v5543_v63 = vadd.f32 %v7195_v3, %v4330_v56  ;;  %v5544_v10 = vadd.f32 %v7198_v12, %v4331_v57  ;;  %v5545_v6 = vadd.f32 %v7197_v1, %v4332_v20 }
 0x86b   :  { %v5546_v54 = vadd.f32 %v7200_v27, %v4333_v5  ;;  %v5547_v15 = vadd.f32 %v7199_v8, %v4334_v30  ;;  %v5548_v2 = vadd.f32 %v7202_v23, %v4335_v26  ;;  %v5549_v19 = vadd.f32 %v7201_v17, %v4336_v43 }
 0x86c   :  { %v5550_v62 = vadd.f32 %v7204_v59, %v4337_v11  ;;  %v5551_v32 = vadd.f32 %v7203_v49, %v4338_v47  ;;  %v5552_v33 = vadd.f32 %v9648_v14, %v4339_v7  ;;  %v5553_v18 = vadd.f32 %v9645_v0, %v4340_v42 }
 0x86d   :  { %vm5554_vm1 = vcmp.ge.f32.partialorder %v5538_v51, 0.0  ;;  %vm5555_vm3 = vcmp.ge.f32.partialorder %v5539_v9, 0.0  ;;  %vm5556_vm11 = vcmp.ge.f32.partialorder %v5540_v25, 0.0  ;;  %vm5557_vm12 = vcmp.ge.f32.partialorder %v5541_v38, 0.0 }
 0x86e   :  { %vm5558_vm13 = vcmp.ge.f32.partialorder %v5542_v22, 0.0  ;;  %vm5559_vm14 = vcmp.ge.f32.partialorder %v5543_v63, 0.0  ;;  %vm5560_vm15 = vcmp.ge.f32.partialorder %v5544_v10, 0.0  ;;  %vm5561_vm0 = vcmp.ge.f32.partialorder %v5545_v6, 0.0 }
 0x86f   :  { %vm5562_vm5 = vcmp.ge.f32.partialorder %v5546_v54, 0.0  ;;  %vm5563_vm6 = vcmp.ge.f32.partialorder %v5547_v15, 0.0  ;;  %vm5564_vm7 = vcmp.ge.f32.partialorder %v5548_v2, 0.0  ;;  %vm5565_vm8 = vcmp.ge.f32.partialorder %v5549_v19, 0.0 }
 0x870   :  { %vm5566_vm2 = vcmp.ge.f32.partialorder %v5550_v62, 0.0  ;;  %vm5567_vm4 = vcmp.ge.f32.partialorder %v5551_v32, 0.0  ;;  %vm5568_vm10 = vcmp.ge.f32.partialorder %v5552_v33, 0.0  ;;  %v5570_v14 = vmul.f32 %v5538_v51, %v10158_v16 }
 0x871   :  { %v5571_v0 = vmul.f32 %v5539_v9, %v10158_v16  ;;  %v5572_v44 = vmul.f32 %v5540_v25, %v10158_v16  ;;  %v5573_v35 = vmul.f32 %v5541_v38, %v10158_v16  ;;  %v5574_v48 = vmul.f32 %v5542_v22, %v10158_v16 }
 0x872   :  { %v5575_v3 = vmul.f32 %v5543_v63, %v10158_v16  ;;  %v5576_v21 = vmul.f32 %v5544_v10, %v10158_v16  ;;  %v5577_v1 = vmul.f32 %v5545_v6, %v10158_v16  ;;  %v5578_v12 = vmul.f32 %v5546_v54, %v10158_v16 }
 0x873   :  { %v5579_v8 = vmul.f32 %v5547_v15, %v10158_v16  ;;  %v5580_v27 = vmul.f32 %v5548_v2, %v10158_v16  ;;  %v5581_v17 = vmul.f32 %v5549_v19, %v10158_v16  ;;  %v5582_v23 = vmul.f32 %v5550_v62, %v10158_v16 }
 0x874   :  { %v5583_v49 = vmul.f32 %v5551_v32, %v10158_v16  ;;  %v5584_v59 = vmul.f32 %v5552_v33, %v10158_v16  ;;  %v5585_v60 = vmul.f32 %v5553_v18, %v10158_v16  ;;  %v5586_v37 = vsel %vm5554_vm1, %v5538_v51, %v5570_v14  ;;  %vm10160_vm1 = vmmov %vm10159_vm9 }
 0x875   :  { %v5587_v28 = vsel %vm5555_vm3, %v5539_v9, %v5571_v0  ;;  %v5588_v45 = vsel %vm5556_vm11, %v5540_v25, %v5572_v44  ;;  %v5589_v39 = vsel %vm5557_vm12, %v5541_v38, %v5573_v35  ;;  %v5590_v4 = vsel %vm5558_vm13, %v5542_v22, %v5574_v48  ;;  %5602 = vst.msk [vmem:[%s9820_s14] sm:$0xff] %vm10159_vm9, %v5586_v37  ;;  %vm10161_vm3 = vmmov %vm10160_vm1 }
 0x876   :  { %v5591_v31 = vsel %vm5559_vm14, %v5543_v63, %v5575_v3  ;;  %v5592_v34 = vsel %vm5560_vm15, %v5544_v10, %v5576_v21  ;;  %v5593_v55 = vsel %vm5561_vm0, %v5545_v6, %v5577_v1  ;;  %5603 = vst.msk [vmem:[%s9820_s14 + $0x8] sm:$0xff] %vm10160_vm1, %v5587_v28  ;;  %vm10162_vm11 = vmmov %vm10160_vm1  ;;  %v5594_v41 = vsel %vm5562_vm5, %v5546_v54, %v5578_v12 }
 0x877   :  { %5604 = vst.msk [vmem:[%s9820_s14 + $0x10] sm:$0xff] %vm10161_vm3, %v5588_v45  ;;  %v5595_v24 = vsel %vm5563_vm6, %v5547_v15, %v5579_v8  ;;  %v5596_v58 = vsel %vm5564_vm7, %v5548_v2, %v5580_v27  ;;  %v5597_v46 = vsel %vm5565_vm8, %v5549_v19, %v5581_v17  ;;  %vm10163_vm9 = vmmov %vm10160_vm1  ;;  %v5598_v36 = vsel %vm5566_vm2, %v5550_v62, %v5582_v23 }
 0x878   :  { %5605 = vst.msk [vmem:[%s9820_s14 + $0x18] sm:$0xff] %vm10162_vm11, %v5589_v39  ;;  %vm10164_vm12 = vmmov %vm10160_vm1  ;;  %v5599_v13 = vsel %vm5567_vm4, %v5551_v32, %v5583_v49  ;;  %v5600_v52 = vsel %vm5568_vm10, %v5552_v33, %v5584_v59  ;;  %vm10167_vm15 = vcmp.ge.f32.partialorder %v5553_v18, 0.0 }
 0x879   :  { %5606 = vst.msk [vmem:[%s9820_s14 + $0x20] sm:$0xff] %vm10163_vm9, %v5590_v4  ;;  %vm10165_vm13 = vmmov %vm10160_vm1  ;;  %v5601_v40 = vsel %vm10167_vm15, %v5553_v18, %v5585_v60 }
 0x87a   :  { %5607 = vst.msk [vmem:[%s9820_s14 + $0x28] sm:$0xff] %vm10164_vm12, %v5591_v31  ;;  %vm10166_vm14 = vmmov %vm10160_vm1 }
 0x87b   :  { %5608 = vst.msk [vmem:[%s9820_s14 + $0x30] sm:$0xff] %vm10165_vm13, %v5592_v34  ;;  %vm10168_vm0 = vmmov %vm10160_vm1 }
 0x87c   :  { %5609 = vst.msk [vmem:[%s9820_s14 + $0x38] sm:$0xff] %vm10166_vm14, %v5593_v55  ;;  %vm10169_vm5 = vmmov %vm10168_vm0 }
 0x87d   :  { %5610 = vst.msk [vmem:[%s9820_s14 + $0x40] sm:$0xff] %vm10168_vm0, %v5594_v41  ;;  %vm10170_vm6 = vmmov %vm10168_vm0 }
 0x87e   :  { %5611 = vst.msk [vmem:[%s9820_s14 + $0x48] sm:$0xff] %vm10169_vm5, %v5595_v24  ;;  %vm10171_vm7 = vmmov %vm10168_vm0 }
 0x87f   :  { %5612 = vst.msk [vmem:[%s9820_s14 + $0x50] sm:$0xff] %vm10170_vm6, %v5596_v58  ;;  %vm10172_vm8 = vmmov %vm10168_vm0 }
 0x880   :  { %5613 = vst.msk [vmem:[%s9820_s14 + $0x58] sm:$0xff] %vm10171_vm7, %v5597_v46  ;;  %vm10173_vm2 = vmmov %vm10168_vm0 }
 0x881   :  { %5614 = vst.msk [vmem:[%s9820_s14 + $0x60] sm:$0xff] %vm10172_vm8, %v5598_v36  ;;  %vm10174_vm4 = vmmov %vm10168_vm0 }
 0x882   :  { %5615 = vst.msk [vmem:[%s9820_s14 + $0x68] sm:$0xff] %vm10173_vm2, %v5599_v13  ;;  %vm10175_vm10 = vmmov %vm10168_vm0 }
 0x883   :  { %5616 = vst.msk [vmem:[%s9820_s14 + $0x70] sm:$0xff] %vm10174_vm4, %v5600_v52 }
 0x884   :  { %5617 = vst.msk [vmem:[%s9820_s14 + $0x78] sm:$0xff] %vm10175_vm10, %v5601_v40 }

</bundles_post_ra>
